<compile_context>
chip_gen: v5e
topology: v5e:2x2
jax: 0.10.0
libtpu: 0.0.40
codegen_flags: <defaults>
</compile_context>

<pallas_src>
import math

import jax
import jax.numpy as jnp
from jax.experimental import pallas as pl
from jax.experimental.pallas import tpu as pltpu

# ----------------------------- configuration --------------------------------
EN_SIZE = 50          # source (EN) vocab
DE_SIZE = 48          # target (DE) vocab
D_MODEL = 32
NUM_LAYERS = 2        # small for the demo (module default is 6)
HEADS = 4
EXPAND = 4
MAX_LEN = 100
HEAD_DIM = D_MODEL // HEADS
FF_DIM = EXPAND * D_MODEL            # 128
LANE = 128                           # common padded lane width / vocab pad
LN_EPS = 1e-5
ATTN_SCALE = 1.0 / math.sqrt(D_MODEL)  # reference scales by sqrt(d_model)
NEG_INF = -1e20

# ----------------------- packed-slab index layout ----------------------------
# wslab rows: (D_MODEL, LANE) bf16, zero-padded lanes.
#   encoder layer l   : +0 Wqkv(96) | +1 Wo(32) | +2 W1(128)
#   dec self-attn l   : +0 Wqkv     | +1 Wo
#   dec cross block l : +0 Wqkv     | +1 Wo     | +2 W1
#   final             : FC (32 x 48 padded to 128)
def _wi_enc(l): return 3 * l
_W_DSA0 = 3 * NUM_LAYERS
def _wi_dsa(l): return _W_DSA0 + 2 * l
_W_DCX0 = _W_DSA0 + 2 * NUM_LAYERS
def _wi_dcx(l): return _W_DCX0 + 3 * l
W_FC = _W_DCX0 + 3 * NUM_LAYERS
NW = W_FC + 1

# w2slab entries: (FF_DIM, D_MODEL) bf16 (second FFN matmul).
def _w2_enc(l): return l
def _w2_dcx(l): return NUM_LAYERS + l
NW2 = 2 * NUM_LAYERS

# bslab rows: (LANE,) f32, zero-padded lanes.
#   encoder / cross block (8 rows): bqkv, bo, ln1_g, ln1_b, b1, b2, ln2_g, ln2_b
#   dec self-attn block  (4 rows): bqkv, bo, ln_g, ln_b
def _bi_enc(l): return 8 * l
_B_DSA0 = 8 * NUM_LAYERS
def _bi_dsa(l): return _B_DSA0 + 4 * l
_B_DCX0 = _B_DSA0 + 4 * NUM_LAYERS
def _bi_dcx(l): return _B_DCX0 + 8 * l
B_FC = _B_DCX0 + 8 * NUM_LAYERS
NB = B_FC + 1


# --------------------------- in-kernel helpers -------------------------------
def _row(b_ref, i, w=LANE):
    """One (1, w) f32 row of the bias/LN slab (static index; full-lane load)."""
    r = b_ref[i:i + 1, :]
    return r if w == LANE else r[:, :w]


def _layernorm(h, g, b):
    """LayerNorm over the last dim (f32 math). g, b: (1, D)."""
    mu = jnp.mean(h, axis=-1, keepdims=True)
    var = jnp.mean(jnp.square(h - mu), axis=-1, keepdims=True)
    return (h - mu) * jax.lax.rsqrt(var + LN_EPS) * g + b


def _mha(xq_bf, xkv_bf, w_ref, b_ref, wi, bi, bias, self_attn):
    """Multi-head attention, all heads fused.

    wi : wslab row of Wqkv (wi+1 = Wo).  bi : bslab row of bqkv (bi+1 = bo).
    Wqkv column layout: [Q(32) | K(32) | V(32) | pad(32)]; Q columns/bias are
    pre-scaled by 1/sqrt(d_model) at pack time (no in-kernel scale multiply).
    """
    bqkv = _row(b_ref, bi)                                        # (1, 128)
    q_full = (jnp.dot(xq_bf, w_ref[wi], preferred_element_type=jnp.float32)
              + bqkv).astype(jnp.bfloat16)                        # (Lq, 128)
    if self_attn:
        kv_full = q_full                                          # one matmul total
    else:
        kv_full = (jnp.dot(xkv_bf, w_ref[wi],
                           preferred_element_type=jnp.float32)
                   + bqkv).astype(jnp.bfloat16)                   # (Lk, 128)

    lq, lk = q_full.shape[0], kv_full.shape[0]
    bias_full = jnp.broadcast_to(bias, (lq, lk))                  # hoisted broadcast

    ctx = []
    for h in range(HEADS):                                        # tiny trip count
        q = q_full[:, h * HEAD_DIM:(h + 1) * HEAD_DIM]
        k = kv_full[:, D_MODEL + h * HEAD_DIM:D_MODEL + (h + 1) * HEAD_DIM]
        v = kv_full[:, 2 * D_MODEL + h * HEAD_DIM:
                    2 * D_MODEL + (h + 1) * HEAD_DIM]
        e = jax.lax.dot_general(q, k, (((1,), (1,)), ((), ())),
                                preferred_element_type=jnp.float32)  # (Lq, Lk)
        e = e + bias_full                                         # additive mask
        e = e - jnp.max(e, axis=-1, keepdims=True)
        p = jnp.exp(e)
        p = p * pl.reciprocal(jnp.sum(p, axis=-1, keepdims=True), approx=True)
        ctx.append(jnp.dot(p.astype(jnp.bfloat16), v,
                           preferred_element_type=jnp.float32))   # (Lq, hd)

    ctx = jnp.concatenate(ctx, axis=-1).astype(jnp.bfloat16)      # (Lq, D)
    out = jnp.dot(ctx, w_ref[wi + 1][:, :D_MODEL],                # single O-proj
                  preferred_element_type=jnp.float32)
    return out + _row(b_ref, bi + 1, D_MODEL)


def _ffn(x, w_ref, w2_ref, b_ref, w1_i, w2_i, b1_i, b2_i):
    h = (jnp.dot(x.astype(jnp.bfloat16), w_ref[w1_i],
                 preferred_element_type=jnp.float32)
         + _row(b_ref, b1_i))                                     # (Lx, 128)
    h = jnp.maximum(h, 0.0).astype(jnp.bfloat16)                  # ReLU
    out = jnp.dot(h, w2_ref[w2_i], preferred_element_type=jnp.float32)
    return out + _row(b_ref, b2_i, D_MODEL)


# ------------------------------ fused kernel ---------------------------------
def _wmt_kernel(src_ref, trg_ref, sbias_ref, tbias_ref,
                w_ref, w2_ref, b_ref, out_ref):
    sbias = sbias_ref[...]        # (1, Ls)  additive key-padding bias
    tbias = tbias_ref[...]        # (Lt, Lt) additive causal bias

    # ----- encoder stack -----
    x = src_ref[...]              # (Ls, D) embedded + PE source
    for l in range(NUM_LAYERS):
        wi, bi = _wi_enc(l), _bi_enc(l)
        x_bf = x.astype(jnp.bfloat16)
        a = _mha(x_bf, x_bf, w_ref, b_ref, wi, bi, sbias, self_attn=True)
        h = _layernorm(a + x, _row(b_ref, bi + 2, D_MODEL),
                       _row(b_ref, bi + 3, D_MODEL))
        f = _ffn(h, w_ref, w2_ref, b_ref, wi + 2, _w2_enc(l), bi + 4, bi + 5)
        x = _layernorm(f + h, _row(b_ref, bi + 6, D_MODEL),
                       _row(b_ref, bi + 7, D_MODEL))
    enc_bf = x.astype(jnp.bfloat16)

    # ----- decoder stack -----
    y = trg_ref[...]              # (Lt, D) embedded + PE target
    for l in range(NUM_LAYERS):
        wi, bi = _wi_dsa(l), _bi_dsa(l)
        y_bf = y.astype(jnp.bfloat16)
        sa = _mha(y_bf, y_bf, w_ref, b_ref, wi, bi, tbias, self_attn=True)
        q = _layernorm(sa + y, _row(b_ref, bi + 2, D_MODEL),
                       _row(b_ref, bi + 3, D_MODEL))

        wi, bi = _wi_dcx(l), _bi_dcx(l)
        ca = _mha(q.astype(jnp.bfloat16), enc_bf, w_ref, b_ref, wi, bi, sbias,
                  self_attn=False)
        h = _layernorm(ca + q, _row(b_ref, bi + 2, D_MODEL),
                       _row(b_ref, bi + 3, D_MODEL))
        f = _ffn(h, w_ref, w2_ref, b_ref, wi + 2, _w2_dcx(l), bi + 4, bi + 5)
        y = _layernorm(f + h, _row(b_ref, bi + 6, D_MODEL),
                       _row(b_ref, bi + 7, D_MODEL))

    # ----- final vocab projection: single lane-dense (Lt, 128) store -----
    out_ref[...] = (jnp.dot(y.astype(jnp.bfloat16), w_ref[W_FC],
                            preferred_element_type=jnp.float32)
                    + _row(b_ref, B_FC))


# --------------------------- parameter construction -------------------------
def _sinusoidal_pe(max_len, d_model):
    pos = jnp.arange(max_len, dtype=jnp.float32)[:, None]
    div = jnp.exp(jnp.arange(0, d_model, 2, dtype=jnp.float32)
                  * (-math.log(10000.0) / d_model))
    pe = jnp.zeros((max_len, d_model), jnp.float32)
    pe = pe.at[:, 0::2].set(jnp.sin(pos * div))
    pe = pe.at[:, 1::2].set(jnp.cos(pos * div))
    return pe


def init_wmt_params(key):
    """Natural (unpacked) parameters, analogous to the PyTorch state dict."""
    ks = jax.random.split(key, 9)
    L = NUM_LAYERS

    def dense(k, shape, scale=0.02):
        return jax.random.normal(k, shape, jnp.float32) * scale

    def attn_p(k):
        kq, kk, kv, ko, kb = jax.random.split(k, 5)
        bq, bk, bv, bo = jax.random.split(kb, 4)
        return {"wq": dense(kq, (L, D_MODEL, D_MODEL)),
                "wk": dense(kk, (L, D_MODEL, D_MODEL)),
                "wv": dense(kv, (L, D_MODEL, D_MODEL)),
                "wo": dense(ko, (L, D_MODEL, D_MODEL)),
                "bq": dense(bq, (L, D_MODEL)),
                "bk": dense(bk, (L, D_MODEL)),
                "bv": dense(bv, (L, D_MODEL)),
                "bo": dense(bo, (L, D_MODEL))}

    def ffn_p(k):
        k1, k2, kb1, kb2 = jax.random.split(k, 4)
        return {"w1": dense(k1, (L, D_MODEL, FF_DIM)),
                "b1": dense(kb1, (L, FF_DIM)),
                "w2": dense(k2, (L, FF_DIM, D_MODEL)),
                "b2": dense(kb2, (L, D_MODEL))}

    def ln_p():
        return {"g": jnp.ones((L, D_MODEL), jnp.float32),
                "b": jnp.zeros((L, D_MODEL), jnp.float32)}

    enc = {"attn": attn_p(ks[2]), "ffn": ffn_p(ks[3]),
           "ln1": ln_p(), "ln2": ln_p()}
    dec_sa = {"attn": attn_p(ks[4]), "ln": ln_p()}
    dec_blk = {"attn": attn_p(ks[5]), "ffn": ffn_p(ks[6]),
               "ln1": ln_p(), "ln2": ln_p()}

    return {"en_emb": dense(ks[0], (EN_SIZE, D_MODEL)),
            "de_emb": dense(ks[1], (DE_SIZE, D_MODEL)),
            "pe": _sinusoidal_pe(MAX_LEN, D_MODEL),
            "enc": enc, "dec_sa": dec_sa, "dec_blk": dec_blk,
            "fc_w": dense(ks[7], (D_MODEL, DE_SIZE)),
            "fc_b": dense(ks[8], (DE_SIZE,))}


def pack_wmt_params(p):
    """One-time layout plumbing: pack parameters into 3 lane-dense slabs."""
    def pad_cols(w):   # (R, C) -> (R, 128)
        return jnp.pad(w, ((0, 0), (0, LANE - w.shape[-1])))

    def pad_row(v):    # (C,) -> (128,)
        return jnp.pad(v, (0, LANE - v.shape[-1]))

    wrows = [None] * NW
    w2rows = [None] * NW2
    brows = [None] * NB

    def pack_attn(a, l, wi, bi):
        # ATTN_SCALE folded into the Q columns and Q bias here (compile-time).
        wqkv = jnp.concatenate(
            [a["wq"][l] * ATTN_SCALE, a["wk"][l], a["wv"][l]], axis=1)  # (D,3D)
        wrows[wi] = pad_cols(wqkv)
        wrows[wi + 1] = pad_cols(a["wo"][l])
        brows[bi] = pad_row(jnp.concatenate(
            [a["bq"][l] * ATTN_SCALE, a["bk"][l], a["bv"][l]]))
        brows[bi + 1] = pad_row(a["bo"][l])

    def pack_ffn(f, l, w1_i, w2_i, b1_i, b2_i):
        wrows[w1_i] = f["w1"][l]              # (D, 128) already full lane width
        w2rows[w2_i] = f["w2"][l]             # (128, D)
        brows[b1_i] = f["b1"][l]              # (128,)
        brows[b2_i] = pad_row(f["b2"][l])

    def pack_ln(ln, l, gi, bi_):
        brows[gi] = pad_row(ln["g"][l])
        brows[bi_] = pad_row(ln["b"][l])

    enc, dsa, dcx = p["enc"], p["dec_sa"], p["dec_blk"]
    for l in range(NUM_LAYERS):
        wi, bi = _wi_enc(l), _bi_enc(l)
        pack_attn(enc["attn"], l, wi, bi)
        pack_ln(enc["ln1"], l, bi + 2, bi + 3)
        pack_ffn(enc["ffn"], l, wi + 2, _w2_enc(l), bi + 4, bi + 5)
        pack_ln(enc["ln2"], l, bi + 6, bi + 7)

        wi, bi = _wi_dsa(l), _bi_dsa(l)
        pack_attn(dsa["attn"], l, wi, bi)
        pack_ln(dsa["ln"], l, bi + 2, bi + 3)

        wi, bi = _wi_dcx(l), _bi_dcx(l)
        pack_attn(dcx["attn"], l, wi, bi)
        pack_ln(dcx["ln1"], l, bi + 2, bi + 3)
        pack_ffn(dcx["ffn"], l, wi + 2, _w2_dcx(l), bi + 4, bi + 5)
        pack_ln(dcx["ln2"], l, bi + 6, bi + 7)

    wrows[W_FC] = pad_cols(p["fc_w"])
    brows[B_FC] = pad_row(p["fc_b"])

    return {"en_emb": p["en_emb"], "de_emb": p["de_emb"], "pe": p["pe"],
            "wslab": jnp.stack(wrows).astype(jnp.bfloat16),     # (17, 32, 128)
            "w2slab": jnp.stack(w2rows).astype(jnp.bfloat16),   # (4, 128, 32)
            "bslab": jnp.stack(brows).astype(jnp.float32)}      # (41, 128)


# ------------------------------ model forward -------------------------------
def wmt_forward(packed, src, trg, src_mask, trg_mask):
    B, Ls = src.shape
    _, Lt = trg.shape
    pe = packed["pe"]

    # embeddings + positional encoding: plain XLA ops fused into the gather.
    # dropout = identity (eval-mode forward).
    src_e = jnp.take(packed["en_emb"], src, axis=0) + pe[None, :Ls, :]
    trg_e = jnp.take(packed["de_emb"], trg, axis=0) + pe[None, :Lt, :]

    # additive attention biases (0 keep / -1e20 masked); no per-head broadcast.
    src_bias = jnp.where(src_mask.reshape(B, 1, Ls) != 0, 0.0, NEG_INF
                         ).astype(jnp.float32)
    trg_bias = jnp.where(trg_mask.reshape(B, Lt, Lt) != 0, 0.0, NEG_INF
                         ).astype(jnp.float32)

    wslab, w2slab, bslab = packed["wslab"], packed["w2slab"], packed["bslab"]

    def batch_spec(arr):
        # one batch element per grid step; batch dim squeezed out of the ref.
        return pl.BlockSpec((None,) + tuple(arr.shape[1:]),
                            lambda b, _n=arr.ndim: (b,) + (0,) * (_n - 1))

    def rep_spec(arr):
        # whole slab resident in VMEM; constant index map -> single DMA.
        # (When scaling up: add pipeline_mode=pl.Buffered(1) to halve weight VMEM.)
        return pl.BlockSpec(tuple(arr.shape), lambda b, _n=arr.ndim: (0,) * _n)

    out = pl.pallas_call(
        _wmt_kernel,
        out_shape=jax.ShapeDtypeStruct((B, Lt, LANE), jnp.float32),
        grid=(B,),     # "parallel" over batch -> both v7x TensorCores busy at B=2
        in_specs=[batch_spec(src_e), batch_spec(trg_e),
                  batch_spec(src_bias), batch_spec(trg_bias),
                  rep_spec(wslab), rep_spec(w2slab), rep_spec(bslab)],
        out_specs=pl.BlockSpec((None, Lt, LANE), lambda b: (b, 0, 0)),
        compiler_params=pltpu.CompilerParams(
            dimension_semantics=("parallel",),
            vmem_limit_bytes=32 * 1024 * 1024),
    )(src_e, trg_e, src_bias, trg_bias, wslab, w2slab, bslab)

    return out[:, :, :DE_SIZE]                    # drop the lane padding


# TODO(synk): the autoregressive `predict` greedy-decode loop is not ported;
# only the training-time `forward` semantics are implemented here.


# ----------------------------------- main ------------------------------------
if __name__ == "__main__":
    key = jax.random.PRNGKey(0)
    kp, ks, kt = jax.random.split(key, 3)

    B, SRC_LEN, TRG_LEN = 2, 12, 8

    params = init_wmt_params(kp)
    packed = pack_wmt_params(params)      # one-time packing, outside the fwd jit

    src = jax.random.randint(ks, (B, SRC_LEN), 0, EN_SIZE, dtype=jnp.int32)
    trg = jax.random.randint(kt, (B, TRG_LEN), 0, DE_SIZE, dtype=jnp.int32)

    # src padding mask: (B, 1, 1, SRC_LEN); second example has 3 padded keys
    src_lens = jnp.array([SRC_LEN, SRC_LEN - 3])
    src_mask = (jnp.arange(SRC_LEN)[None, :] < src_lens[:, None]
                ).astype(jnp.float32).reshape(B, 1, 1, SRC_LEN)

    # causal target mask: (B, 1, TRG_LEN, TRG_LEN)
    trg_mask = jnp.broadcast_to(
        jnp.tril(jnp.ones((TRG_LEN, TRG_LEN), jnp.float32))[None, None],
        (B, 1, TRG_LEN, TRG_LEN))

    fwd = jax.jit(wmt_forward)
    out = fwd(packed, src, trg, src_mask, trg_mask)
    jax.block_until_ready(out)

    assert out.shape == (B, TRG_LEN, DE_SIZE), out.shape
    assert bool(jnp.all(jnp.isfinite(out)))
    print("KERNEL_OK")
</pallas_src>

<mosaic_0001>
module attributes {stable_mosaic.version = 11 : i64} {
  func.func @_wmt_kernel(%arg0: i32, %arg1: memref<1x12x32xf32, #tpu.memory_space<vmem>>, %arg2: memref<1x8x32xf32, #tpu.memory_space<vmem>>, %arg3: memref<1x1x12xf32, #tpu.memory_space<vmem>>, %arg4: memref<1x8x8xf32, #tpu.memory_space<vmem>>, %arg5: memref<17x32x128xbf16, #tpu.memory_space<vmem>>, %arg6: memref<4x128x32xbf16, #tpu.memory_space<vmem>>, %arg7: memref<41x128xf32, #tpu.memory_space<vmem>>, %arg8: memref<1x8x128xf32, #tpu.memory_space<vmem>>) attributes {dimension_semantics = [#tpu.dimension_semantics<parallel>], iteration_bounds = array<i64: 2>, scalar_prefetch = 0 : i64, scratch_operands = 0 : i64, tpu.core_type = #tpu.core_type<tc>, window_params = [{transform_indices = @transform_0, window_bounds = array<i64: 1, 12, 32>}, {transform_indices = @transform_1, window_bounds = array<i64: 1, 8, 32>}, {transform_indices = @transform_2, window_bounds = array<i64: 1, 1, 12>}, {transform_indices = @transform_3, window_bounds = array<i64: 1, 8, 8>}, {pipeline_mode = #tpu.pipeline_mode<synchronous>, transform_indices = @transform_4, window_bounds = array<i64: 17, 32, 128>}, {pipeline_mode = #tpu.pipeline_mode<synchronous>, transform_indices = @transform_5, window_bounds = array<i64: 4, 128, 32>}, {pipeline_mode = #tpu.pipeline_mode<synchronous>, transform_indices = @transform_6, window_bounds = array<i64: 41, 128>}, {transform_indices = @transform_7, window_bounds = array<i64: 1, 8, 128>}]} {
    %c0 = arith.constant 0 : index
    %c0_0 = arith.constant 0 : index
    %c0_1 = arith.constant 0 : index
    %0 = vector.load %arg3[%c0, %c0_0, %c0_1] : memref<1x1x12xf32, #tpu.memory_space<vmem>>, vector<1x1x12xf32>
    %1 = vector.shape_cast %0 : vector<1x1x12xf32> to vector<1x12xf32>
    %c0_2 = arith.constant 0 : index
    %c0_3 = arith.constant 0 : index
    %c0_4 = arith.constant 0 : index
    %2 = vector.load %arg4[%c0_2, %c0_3, %c0_4] : memref<1x8x8xf32, #tpu.memory_space<vmem>>, vector<1x8x8xf32>
    %3 = vector.shape_cast %2 : vector<1x8x8xf32> to vector<8x8xf32>
    %c0_5 = arith.constant 0 : index
    %c0_6 = arith.constant 0 : index
    %c0_7 = arith.constant 0 : index
    %4 = vector.load %arg1[%c0_5, %c0_6, %c0_7] : memref<1x12x32xf32, #tpu.memory_space<vmem>>, vector<1x12x32xf32>
    %5 = vector.shape_cast %4 : vector<1x12x32xf32> to vector<12x32xf32>
    %6 = arith.truncf %5 : vector<12x32xf32> to vector<12x32xbf16>
    %c0_8 = arith.constant 0 : index
    %c0_9 = arith.constant 0 : index
    %7 = vector.load %arg7[%c0_8, %c0_9] : memref<41x128xf32, #tpu.memory_space<vmem>>, vector<1x128xf32>
    %c0_10 = arith.constant 0 : index
    %c0_11 = arith.constant 0 : index
    %c0_12 = arith.constant 0 : index
    %8 = vector.load %arg5[%c0_10, %c0_11, %c0_12] : memref<17x32x128xbf16, #tpu.memory_space<vmem>>, vector<1x32x128xbf16>
    %9 = vector.shape_cast %8 : vector<1x32x128xbf16> to vector<32x128xbf16>
    %cst = arith.constant dense<0.000000e+00> : vector<12x128xf32>
    %10 = tpu.matmul %6, %9, %cst {dimension_numbers = #tpu.dot_dimension_numbers<[1], [0], [0], [1], [0, 0, 1, 1], [], []>} : vector<12x32xbf16>, vector<32x128xbf16>, vector<12x128xf32> -> vector<12x128xf32>
    %11 = vector.broadcast %7 : vector<1x128xf32> to vector<12x128xf32>
    %12 = arith.addf %10, %11 : vector<12x128xf32>
    %13 = arith.truncf %12 : vector<12x128xf32> to vector<12x128xbf16>
    %14 = vector.shape_cast %1 : vector<1x12xf32> to vector<1x12xf32>
    %15 = vector.broadcast %14 : vector<1x12xf32> to vector<12x12xf32>
    %16 = vector.extract_strided_slice %13 {offsets = [0, 0], sizes = [12, 8], strides = [1, 1]} : vector<12x128xbf16> to vector<12x8xbf16>
    %17 = vector.extract_strided_slice %13 {offsets = [0, 32], sizes = [12, 8], strides = [1, 1]} : vector<12x128xbf16> to vector<12x8xbf16>
    %18 = vector.extract_strided_slice %13 {offsets = [0, 64], sizes = [12, 8], strides = [1, 1]} : vector<12x128xbf16> to vector<12x8xbf16>
    %cst_13 = arith.constant dense<0.000000e+00> : vector<12x12xf32>
    %19 = tpu.matmul %16, %17, %cst_13 {dimension_numbers = #tpu.dot_dimension_numbers<[1], [1], [0], [0], [0, 0, 1, 0], [], []>} : vector<12x8xbf16>, vector<12x8xbf16>, vector<12x12xf32> -> vector<12x12xf32>
    %20 = arith.addf %19, %15 : vector<12x12xf32>
    %cst_14 = arith.constant dense<0xFF800000> : vector<12xf32>
    %21 = vector.multi_reduction <maximumf>, %20, %cst_14 [1] : vector<12x12xf32> to vector<12xf32>
    %22 = vector.shape_cast %21 : vector<12xf32> to vector<12x1xf32>
    %23 = vector.broadcast %22 : vector<12x1xf32> to vector<12x12xf32>
    %24 = arith.subf %20, %23 : vector<12x12xf32>
    %25 = math.exp %24 : vector<12x12xf32>
    %cst_15 = arith.constant dense<0.000000e+00> : vector<12xf32>
    %26 = vector.multi_reduction <add>, %25, %cst_15 [1] : vector<12x12xf32> to vector<12xf32>
    %27 = vector.shape_cast %26 : vector<12xf32> to vector<12x1xf32>
    %28 = tpu.reciprocal %27 {approx = true} : vector<12x1xf32> -> vector<12x1xf32>
    %29 = vector.broadcast %28 : vector<12x1xf32> to vector<12x12xf32>
    %30 = arith.mulf %25, %29 : vector<12x12xf32>
    %31 = arith.truncf %30 : vector<12x12xf32> to vector<12x12xbf16>
    %cst_16 = arith.constant dense<0.000000e+00> : vector<12x8xf32>
    %32 = tpu.matmul %31, %18, %cst_16 {dimension_numbers = #tpu.dot_dimension_numbers<[1], [0], [0], [1], [0, 0, 1, 1], [], []>} : vector<12x12xbf16>, vector<12x8xbf16>, vector<12x8xf32> -> vector<12x8xf32>
    %33 = vector.extract_strided_slice %13 {offsets = [0, 8], sizes = [12, 8], strides = [1, 1]} : vector<12x128xbf16> to vector<12x8xbf16>
    %34 = vector.extract_strided_slice %13 {offsets = [0, 40], sizes = [12, 8], strides = [1, 1]} : vector<12x128xbf16> to vector<12x8xbf16>
    %35 = vector.extract_strided_slice %13 {offsets = [0, 72], sizes = [12, 8], strides = [1, 1]} : vector<12x128xbf16> to vector<12x8xbf16>
    %cst_17 = arith.constant dense<0.000000e+00> : vector<12x12xf32>
    %36 = tpu.matmul %33, %34, %cst_17 {dimension_numbers = #tpu.dot_dimension_numbers<[1], [1], [0], [0], [0, 0, 1, 0], [], []>} : vector<12x8xbf16>, vector<12x8xbf16>, vector<12x12xf32> -> vector<12x12xf32>
    %37 = arith.addf %36, %15 : vector<12x12xf32>
    %cst_18 = arith.constant dense<0xFF800000> : vector<12xf32>
    %38 = vector.multi_reduction <maximumf>, %37, %cst_18 [1] : vector<12x12xf32> to vector<12xf32>
    %39 = vector.shape_cast %38 : vector<12xf32> to vector<12x1xf32>
    %40 = vector.broadcast %39 : vector<12x1xf32> to vector<12x12xf32>
    %41 = arith.subf %37, %40 : vector<12x12xf32>
    %42 = math.exp %41 : vector<12x12xf32>
    %cst_19 = arith.constant dense<0.000000e+00> : vector<12xf32>
    %43 = vector.multi_reduction <add>, %42, %cst_19 [1] : vector<12x12xf32> to vector<12xf32>
    %44 = vector.shape_cast %43 : vector<12xf32> to vector<12x1xf32>
    %45 = tpu.reciprocal %44 {approx = true} : vector<12x1xf32> -> vector<12x1xf32>
    %46 = vector.broadcast %45 : vector<12x1xf32> to vector<12x12xf32>
    %47 = arith.mulf %42, %46 : vector<12x12xf32>
    %48 = arith.truncf %47 : vector<12x12xf32> to vector<12x12xbf16>
    %cst_20 = arith.constant dense<0.000000e+00> : vector<12x8xf32>
    %49 = tpu.matmul %48, %35, %cst_20 {dimension_numbers = #tpu.dot_dimension_numbers<[1], [0], [0], [1], [0, 0, 1, 1], [], []>} : vector<12x12xbf16>, vector<12x8xbf16>, vector<12x8xf32> -> vector<12x8xf32>
    %50 = vector.extract_strided_slice %13 {offsets = [0, 16], sizes = [12, 8], strides = [1, 1]} : vector<12x128xbf16> to vector<12x8xbf16>
    %51 = vector.extract_strided_slice %13 {offsets = [0, 48], sizes = [12, 8], strides = [1, 1]} : vector<12x128xbf16> to vector<12x8xbf16>
    %52 = vector.extract_strided_slice %13 {offsets = [0, 80], sizes = [12, 8], strides = [1, 1]} : vector<12x128xbf16> to vector<12x8xbf16>
    %cst_21 = arith.constant dense<0.000000e+00> : vector<12x12xf32>
    %53 = tpu.matmul %50, %51, %cst_21 {dimension_numbers = #tpu.dot_dimension_numbers<[1], [1], [0], [0], [0, 0, 1, 0], [], []>} : vector<12x8xbf16>, vector<12x8xbf16>, vector<12x12xf32> -> vector<12x12xf32>
    %54 = arith.addf %53, %15 : vector<12x12xf32>
    %cst_22 = arith.constant dense<0xFF800000> : vector<12xf32>
    %55 = vector.multi_reduction <maximumf>, %54, %cst_22 [1] : vector<12x12xf32> to vector<12xf32>
    %56 = vector.shape_cast %55 : vector<12xf32> to vector<12x1xf32>
    %57 = vector.broadcast %56 : vector<12x1xf32> to vector<12x12xf32>
    %58 = arith.subf %54, %57 : vector<12x12xf32>
    %59 = math.exp %58 : vector<12x12xf32>
    %cst_23 = arith.constant dense<0.000000e+00> : vector<12xf32>
    %60 = vector.multi_reduction <add>, %59, %cst_23 [1] : vector<12x12xf32> to vector<12xf32>
    %61 = vector.shape_cast %60 : vector<12xf32> to vector<12x1xf32>
    %62 = tpu.reciprocal %61 {approx = true} : vector<12x1xf32> -> vector<12x1xf32>
    %63 = vector.broadcast %62 : vector<12x1xf32> to vector<12x12xf32>
    %64 = arith.mulf %59, %63 : vector<12x12xf32>
    %65 = arith.truncf %64 : vector<12x12xf32> to vector<12x12xbf16>
    %cst_24 = arith.constant dense<0.000000e+00> : vector<12x8xf32>
    %66 = tpu.matmul %65, %52, %cst_24 {dimension_numbers = #tpu.dot_dimension_numbers<[1], [0], [0], [1], [0, 0, 1, 1], [], []>} : vector<12x12xbf16>, vector<12x8xbf16>, vector<12x8xf32> -> vector<12x8xf32>
    %67 = vector.extract_strided_slice %13 {offsets = [0, 24], sizes = [12, 8], strides = [1, 1]} : vector<12x128xbf16> to vector<12x8xbf16>
    %68 = vector.extract_strided_slice %13 {offsets = [0, 56], sizes = [12, 8], strides = [1, 1]} : vector<12x128xbf16> to vector<12x8xbf16>
    %69 = vector.extract_strided_slice %13 {offsets = [0, 88], sizes = [12, 8], strides = [1, 1]} : vector<12x128xbf16> to vector<12x8xbf16>
    %cst_25 = arith.constant dense<0.000000e+00> : vector<12x12xf32>
    %70 = tpu.matmul %67, %68, %cst_25 {dimension_numbers = #tpu.dot_dimension_numbers<[1], [1], [0], [0], [0, 0, 1, 0], [], []>} : vector<12x8xbf16>, vector<12x8xbf16>, vector<12x12xf32> -> vector<12x12xf32>
    %71 = arith.addf %70, %15 : vector<12x12xf32>
    %cst_26 = arith.constant dense<0xFF800000> : vector<12xf32>
    %72 = vector.multi_reduction <maximumf>, %71, %cst_26 [1] : vector<12x12xf32> to vector<12xf32>
    %73 = vector.shape_cast %72 : vector<12xf32> to vector<12x1xf32>
    %74 = vector.broadcast %73 : vector<12x1xf32> to vector<12x12xf32>
    %75 = arith.subf %71, %74 : vector<12x12xf32>
    %76 = math.exp %75 : vector<12x12xf32>
    %cst_27 = arith.constant dense<0.000000e+00> : vector<12xf32>
    %77 = vector.multi_reduction <add>, %76, %cst_27 [1] : vector<12x12xf32> to vector<12xf32>
    %78 = vector.shape_cast %77 : vector<12xf32> to vector<12x1xf32>
    %79 = tpu.reciprocal %78 {approx = true} : vector<12x1xf32> -> vector<12x1xf32>
    %80 = vector.broadcast %79 : vector<12x1xf32> to vector<12x12xf32>
    %81 = arith.mulf %76, %80 : vector<12x12xf32>
    %82 = arith.truncf %81 : vector<12x12xf32> to vector<12x12xbf16>
    %cst_28 = arith.constant dense<0.000000e+00> : vector<12x8xf32>
    %83 = tpu.matmul %82, %69, %cst_28 {dimension_numbers = #tpu.dot_dimension_numbers<[1], [0], [0], [1], [0, 0, 1, 1], [], []>} : vector<12x12xbf16>, vector<12x8xbf16>, vector<12x8xf32> -> vector<12x8xf32>
    %84 = tpu.concatenate %32, %49, %66, %83 in 1 : vector<12x8xf32>, vector<12x8xf32>, vector<12x8xf32>, vector<12x8xf32> -> vector<12x32xf32>
    %85 = arith.truncf %84 : vector<12x32xf32> to vector<12x32xbf16>
    %c1 = arith.constant 1 : index
    %c0_29 = arith.constant 0 : index
    %c0_30 = arith.constant 0 : index
    %86 = vector.load %arg5[%c1, %c0_29, %c0_30] : memref<17x32x128xbf16, #tpu.memory_space<vmem>>, vector<1x32x128xbf16>
    %87 = vector.shape_cast %86 : vector<1x32x128xbf16> to vector<32x128xbf16>
    %88 = vector.extract_strided_slice %87 {offsets = [0, 0], sizes = [32, 32], strides = [1, 1]} : vector<32x128xbf16> to vector<32x32xbf16>
    %cst_31 = arith.constant dense<0.000000e+00> : vector<12x32xf32>
    %89 = tpu.matmul %85, %88, %cst_31 {dimension_numbers = #tpu.dot_dimension_numbers<[1], [0], [0], [1], [0, 0, 1, 1], [], []>} : vector<12x32xbf16>, vector<32x32xbf16>, vector<12x32xf32> -> vector<12x32xf32>
    %c1_32 = arith.constant 1 : index
    %c0_33 = arith.constant 0 : index
    %90 = vector.load %arg7[%c1_32, %c0_33] : memref<41x128xf32, #tpu.memory_space<vmem>>, vector<1x128xf32>
    %91 = vector.extract_strided_slice %90 {offsets = [0, 0], sizes = [1, 32], strides = [1, 1]} : vector<1x128xf32> to vector<1x32xf32>
    %92 = vector.broadcast %91 : vector<1x32xf32> to vector<12x32xf32>
    %93 = arith.addf %89, %92 : vector<12x32xf32>
    %94 = arith.addf %93, %5 : vector<12x32xf32>
    %c2 = arith.constant 2 : index
    %c0_34 = arith.constant 0 : index
    %95 = vector.load %arg7[%c2, %c0_34] : memref<41x128xf32, #tpu.memory_space<vmem>>, vector<1x128xf32>
    %96 = vector.extract_strided_slice %95 {offsets = [0, 0], sizes = [1, 32], strides = [1, 1]} : vector<1x128xf32> to vector<1x32xf32>
    %c3 = arith.constant 3 : index
    %c0_35 = arith.constant 0 : index
    %97 = vector.load %arg7[%c3, %c0_35] : memref<41x128xf32, #tpu.memory_space<vmem>>, vector<1x128xf32>
    %98 = vector.extract_strided_slice %97 {offsets = [0, 0], sizes = [1, 32], strides = [1, 1]} : vector<1x128xf32> to vector<1x32xf32>
    %cst_36 = arith.constant dense<0.000000e+00> : vector<12xf32>
    %99 = vector.multi_reduction <add>, %94, %cst_36 [1] : vector<12x32xf32> to vector<12xf32>
    %100 = vector.shape_cast %99 : vector<12xf32> to vector<12x1xf32>
    %cst_37 = arith.constant 3.200000e+01 : f32
    %101 = vector.broadcast %cst_37 : f32 to vector<12x1xf32>
    %102 = arith.divf %100, %101 : vector<12x1xf32>
    %103 = vector.broadcast %102 : vector<12x1xf32> to vector<12x32xf32>
    %104 = arith.subf %94, %103 : vector<12x32xf32>
    %105 = arith.mulf %104, %104 : vector<12x32xf32>
    %cst_38 = arith.constant dense<0.000000e+00> : vector<12xf32>
    %106 = vector.multi_reduction <add>, %105, %cst_38 [1] : vector<12x32xf32> to vector<12xf32>
    %107 = vector.shape_cast %106 : vector<12xf32> to vector<12x1xf32>
    %cst_39 = arith.constant 3.200000e+01 : f32
    %108 = vector.broadcast %cst_39 : f32 to vector<12x1xf32>
    %109 = arith.divf %107, %108 : vector<12x1xf32>
    %110 = vector.broadcast %102 : vector<12x1xf32> to vector<12x32xf32>
    %111 = arith.subf %94, %110 : vector<12x32xf32>
    %cst_40 = arith.constant 9.99999974E-6 : f32
    %112 = vector.broadcast %cst_40 : f32 to vector<12x1xf32>
    %113 = arith.addf %109, %112 : vector<12x1xf32>
    %114 = math.rsqrt %113 : vector<12x1xf32>
    %115 = vector.broadcast %114 : vector<12x1xf32> to vector<12x32xf32>
    %116 = arith.mulf %111, %115 : vector<12x32xf32>
    %117 = vector.broadcast %96 : vector<1x32xf32> to vector<12x32xf32>
    %118 = arith.mulf %116, %117 : vector<12x32xf32>
    %119 = vector.broadcast %98 : vector<1x32xf32> to vector<12x32xf32>
    %120 = arith.addf %118, %119 : vector<12x32xf32>
    %121 = arith.truncf %120 : vector<12x32xf32> to vector<12x32xbf16>
    %c2_41 = arith.constant 2 : index
    %c0_42 = arith.constant 0 : index
    %c0_43 = arith.constant 0 : index
    %122 = vector.load %arg5[%c2_41, %c0_42, %c0_43] : memref<17x32x128xbf16, #tpu.memory_space<vmem>>, vector<1x32x128xbf16>
    %123 = vector.shape_cast %122 : vector<1x32x128xbf16> to vector<32x128xbf16>
    %cst_44 = arith.constant dense<0.000000e+00> : vector<12x128xf32>
    %124 = tpu.matmul %121, %123, %cst_44 {dimension_numbers = #tpu.dot_dimension_numbers<[1], [0], [0], [1], [0, 0, 1, 1], [], []>} : vector<12x32xbf16>, vector<32x128xbf16>, vector<12x128xf32> -> vector<12x128xf32>
    %c4 = arith.constant 4 : index
    %c0_45 = arith.constant 0 : index
    %125 = vector.load %arg7[%c4, %c0_45] : memref<41x128xf32, #tpu.memory_space<vmem>>, vector<1x128xf32>
    %126 = vector.broadcast %125 : vector<1x128xf32> to vector<12x128xf32>
    %127 = arith.addf %124, %126 : vector<12x128xf32>
    %cst_46 = arith.constant 0.000000e+00 : f32
    %128 = vector.broadcast %cst_46 : f32 to vector<12x128xf32>
    %129 = arith.maximumf %127, %128 : vector<12x128xf32>
    %130 = arith.truncf %129 : vector<12x128xf32> to vector<12x128xbf16>
    %c0_47 = arith.constant 0 : index
    %c0_48 = arith.constant 0 : index
    %c0_49 = arith.constant 0 : index
    %131 = vector.load %arg6[%c0_47, %c0_48, %c0_49] : memref<4x128x32xbf16, #tpu.memory_space<vmem>>, vector<1x128x32xbf16>
    %132 = vector.shape_cast %131 : vector<1x128x32xbf16> to vector<128x32xbf16>
    %cst_50 = arith.constant dense<0.000000e+00> : vector<12x32xf32>
    %133 = tpu.matmul %130, %132, %cst_50 {dimension_numbers = #tpu.dot_dimension_numbers<[1], [0], [0], [1], [0, 0, 1, 1], [], []>} : vector<12x128xbf16>, vector<128x32xbf16>, vector<12x32xf32> -> vector<12x32xf32>
    %c5 = arith.constant 5 : index
    %c0_51 = arith.constant 0 : index
    %134 = vector.load %arg7[%c5, %c0_51] : memref<41x128xf32, #tpu.memory_space<vmem>>, vector<1x128xf32>
    %135 = vector.extract_strided_slice %134 {offsets = [0, 0], sizes = [1, 32], strides = [1, 1]} : vector<1x128xf32> to vector<1x32xf32>
    %136 = vector.broadcast %135 : vector<1x32xf32> to vector<12x32xf32>
    %137 = arith.addf %133, %136 : vector<12x32xf32>
    %138 = arith.addf %137, %120 : vector<12x32xf32>
    %c6 = arith.constant 6 : index
    %c0_52 = arith.constant 0 : index
    %139 = vector.load %arg7[%c6, %c0_52] : memref<41x128xf32, #tpu.memory_space<vmem>>, vector<1x128xf32>
    %140 = vector.extract_strided_slice %139 {offsets = [0, 0], sizes = [1, 32], strides = [1, 1]} : vector<1x128xf32> to vector<1x32xf32>
    %c7 = arith.constant 7 : index
    %c0_53 = arith.constant 0 : index
    %141 = vector.load %arg7[%c7, %c0_53] : memref<41x128xf32, #tpu.memory_space<vmem>>, vector<1x128xf32>
    %142 = vector.extract_strided_slice %141 {offsets = [0, 0], sizes = [1, 32], strides = [1, 1]} : vector<1x128xf32> to vector<1x32xf32>
    %cst_54 = arith.constant dense<0.000000e+00> : vector<12xf32>
    %143 = vector.multi_reduction <add>, %138, %cst_54 [1] : vector<12x32xf32> to vector<12xf32>
    %144 = vector.shape_cast %143 : vector<12xf32> to vector<12x1xf32>
    %cst_55 = arith.constant 3.200000e+01 : f32
    %145 = vector.broadcast %cst_55 : f32 to vector<12x1xf32>
    %146 = arith.divf %144, %145 : vector<12x1xf32>
    %147 = vector.broadcast %146 : vector<12x1xf32> to vector<12x32xf32>
    %148 = arith.subf %138, %147 : vector<12x32xf32>
    %149 = arith.mulf %148, %148 : vector<12x32xf32>
    %cst_56 = arith.constant dense<0.000000e+00> : vector<12xf32>
    %150 = vector.multi_reduction <add>, %149, %cst_56 [1] : vector<12x32xf32> to vector<12xf32>
    %151 = vector.shape_cast %150 : vector<12xf32> to vector<12x1xf32>
    %cst_57 = arith.constant 3.200000e+01 : f32
    %152 = vector.broadcast %cst_57 : f32 to vector<12x1xf32>
    %153 = arith.divf %151, %152 : vector<12x1xf32>
    %154 = vector.broadcast %146 : vector<12x1xf32> to vector<12x32xf32>
    %155 = arith.subf %138, %154 : vector<12x32xf32>
    %cst_58 = arith.constant 9.99999974E-6 : f32
    %156 = vector.broadcast %cst_58 : f32 to vector<12x1xf32>
    %157 = arith.addf %153, %156 : vector<12x1xf32>
    %158 = math.rsqrt %157 : vector<12x1xf32>
    %159 = vector.broadcast %158 : vector<12x1xf32> to vector<12x32xf32>
    %160 = arith.mulf %155, %159 : vector<12x32xf32>
    %161 = vector.broadcast %140 : vector<1x32xf32> to vector<12x32xf32>
    %162 = arith.mulf %160, %161 : vector<12x32xf32>
    %163 = vector.broadcast %142 : vector<1x32xf32> to vector<12x32xf32>
    %164 = arith.addf %162, %163 : vector<12x32xf32>
    %165 = arith.truncf %164 : vector<12x32xf32> to vector<12x32xbf16>
    %c8 = arith.constant 8 : index
    %c0_59 = arith.constant 0 : index
    %166 = vector.load %arg7[%c8, %c0_59] : memref<41x128xf32, #tpu.memory_space<vmem>>, vector<1x128xf32>
    %c3_60 = arith.constant 3 : index
    %c0_61 = arith.constant 0 : index
    %c0_62 = arith.constant 0 : index
    %167 = vector.load %arg5[%c3_60, %c0_61, %c0_62] : memref<17x32x128xbf16, #tpu.memory_space<vmem>>, vector<1x32x128xbf16>
    %168 = vector.shape_cast %167 : vector<1x32x128xbf16> to vector<32x128xbf16>
    %cst_63 = arith.constant dense<0.000000e+00> : vector<12x128xf32>
    %169 = tpu.matmul %165, %168, %cst_63 {dimension_numbers = #tpu.dot_dimension_numbers<[1], [0], [0], [1], [0, 0, 1, 1], [], []>} : vector<12x32xbf16>, vector<32x128xbf16>, vector<12x128xf32> -> vector<12x128xf32>
    %170 = vector.broadcast %166 : vector<1x128xf32> to vector<12x128xf32>
    %171 = arith.addf %169, %170 : vector<12x128xf32>
    %172 = arith.truncf %171 : vector<12x128xf32> to vector<12x128xbf16>
    %173 = vector.shape_cast %1 : vector<1x12xf32> to vector<1x12xf32>
    %174 = vector.broadcast %173 : vector<1x12xf32> to vector<12x12xf32>
    %175 = vector.extract_strided_slice %172 {offsets = [0, 0], sizes = [12, 8], strides = [1, 1]} : vector<12x128xbf16> to vector<12x8xbf16>
    %176 = vector.extract_strided_slice %172 {offsets = [0, 32], sizes = [12, 8], strides = [1, 1]} : vector<12x128xbf16> to vector<12x8xbf16>
    %177 = vector.extract_strided_slice %172 {offsets = [0, 64], sizes = [12, 8], strides = [1, 1]} : vector<12x128xbf16> to vector<12x8xbf16>
    %cst_64 = arith.constant dense<0.000000e+00> : vector<12x12xf32>
    %178 = tpu.matmul %175, %176, %cst_64 {dimension_numbers = #tpu.dot_dimension_numbers<[1], [1], [0], [0], [0, 0, 1, 0], [], []>} : vector<12x8xbf16>, vector<12x8xbf16>, vector<12x12xf32> -> vector<12x12xf32>
    %179 = arith.addf %178, %174 : vector<12x12xf32>
    %cst_65 = arith.constant dense<0xFF800000> : vector<12xf32>
    %180 = vector.multi_reduction <maximumf>, %179, %cst_65 [1] : vector<12x12xf32> to vector<12xf32>
    %181 = vector.shape_cast %180 : vector<12xf32> to vector<12x1xf32>
    %182 = vector.broadcast %181 : vector<12x1xf32> to vector<12x12xf32>
    %183 = arith.subf %179, %182 : vector<12x12xf32>
    %184 = math.exp %183 : vector<12x12xf32>
    %cst_66 = arith.constant dense<0.000000e+00> : vector<12xf32>
    %185 = vector.multi_reduction <add>, %184, %cst_66 [1] : vector<12x12xf32> to vector<12xf32>
    %186 = vector.shape_cast %185 : vector<12xf32> to vector<12x1xf32>
    %187 = tpu.reciprocal %186 {approx = true} : vector<12x1xf32> -> vector<12x1xf32>
    %188 = vector.broadcast %187 : vector<12x1xf32> to vector<12x12xf32>
    %189 = arith.mulf %184, %188 : vector<12x12xf32>
    %190 = arith.truncf %189 : vector<12x12xf32> to vector<12x12xbf16>
    %cst_67 = arith.constant dense<0.000000e+00> : vector<12x8xf32>
    %191 = tpu.matmul %190, %177, %cst_67 {dimension_numbers = #tpu.dot_dimension_numbers<[1], [0], [0], [1], [0, 0, 1, 1], [], []>} : vector<12x12xbf16>, vector<12x8xbf16>, vector<12x8xf32> -> vector<12x8xf32>
    %192 = vector.extract_strided_slice %172 {offsets = [0, 8], sizes = [12, 8], strides = [1, 1]} : vector<12x128xbf16> to vector<12x8xbf16>
    %193 = vector.extract_strided_slice %172 {offsets = [0, 40], sizes = [12, 8], strides = [1, 1]} : vector<12x128xbf16> to vector<12x8xbf16>
    %194 = vector.extract_strided_slice %172 {offsets = [0, 72], sizes = [12, 8], strides = [1, 1]} : vector<12x128xbf16> to vector<12x8xbf16>
    %cst_68 = arith.constant dense<0.000000e+00> : vector<12x12xf32>
    %195 = tpu.matmul %192, %193, %cst_68 {dimension_numbers = #tpu.dot_dimension_numbers<[1], [1], [0], [0], [0, 0, 1, 0], [], []>} : vector<12x8xbf16>, vector<12x8xbf16>, vector<12x12xf32> -> vector<12x12xf32>
    %196 = arith.addf %195, %174 : vector<12x12xf32>
    %cst_69 = arith.constant dense<0xFF800000> : vector<12xf32>
    %197 = vector.multi_reduction <maximumf>, %196, %cst_69 [1] : vector<12x12xf32> to vector<12xf32>
    %198 = vector.shape_cast %197 : vector<12xf32> to vector<12x1xf32>
    %199 = vector.broadcast %198 : vector<12x1xf32> to vector<12x12xf32>
    %200 = arith.subf %196, %199 : vector<12x12xf32>
    %201 = math.exp %200 : vector<12x12xf32>
    %cst_70 = arith.constant dense<0.000000e+00> : vector<12xf32>
    %202 = vector.multi_reduction <add>, %201, %cst_70 [1] : vector<12x12xf32> to vector<12xf32>
    %203 = vector.shape_cast %202 : vector<12xf32> to vector<12x1xf32>
    %204 = tpu.reciprocal %203 {approx = true} : vector<12x1xf32> -> vector<12x1xf32>
    %205 = vector.broadcast %204 : vector<12x1xf32> to vector<12x12xf32>
    %206 = arith.mulf %201, %205 : vector<12x12xf32>
    %207 = arith.truncf %206 : vector<12x12xf32> to vector<12x12xbf16>
    %cst_71 = arith.constant dense<0.000000e+00> : vector<12x8xf32>
    %208 = tpu.matmul %207, %194, %cst_71 {dimension_numbers = #tpu.dot_dimension_numbers<[1], [0], [0], [1], [0, 0, 1, 1], [], []>} : vector<12x12xbf16>, vector<12x8xbf16>, vector<12x8xf32> -> vector<12x8xf32>
    %209 = vector.extract_strided_slice %172 {offsets = [0, 16], sizes = [12, 8], strides = [1, 1]} : vector<12x128xbf16> to vector<12x8xbf16>
    %210 = vector.extract_strided_slice %172 {offsets = [0, 48], sizes = [12, 8], strides = [1, 1]} : vector<12x128xbf16> to vector<12x8xbf16>
    %211 = vector.extract_strided_slice %172 {offsets = [0, 80], sizes = [12, 8], strides = [1, 1]} : vector<12x128xbf16> to vector<12x8xbf16>
    %cst_72 = arith.constant dense<0.000000e+00> : vector<12x12xf32>
    %212 = tpu.matmul %209, %210, %cst_72 {dimension_numbers = #tpu.dot_dimension_numbers<[1], [1], [0], [0], [0, 0, 1, 0], [], []>} : vector<12x8xbf16>, vector<12x8xbf16>, vector<12x12xf32> -> vector<12x12xf32>
    %213 = arith.addf %212, %174 : vector<12x12xf32>
    %cst_73 = arith.constant dense<0xFF800000> : vector<12xf32>
    %214 = vector.multi_reduction <maximumf>, %213, %cst_73 [1] : vector<12x12xf32> to vector<12xf32>
    %215 = vector.shape_cast %214 : vector<12xf32> to vector<12x1xf32>
    %216 = vector.broadcast %215 : vector<12x1xf32> to vector<12x12xf32>
    %217 = arith.subf %213, %216 : vector<12x12xf32>
    %218 = math.exp %217 : vector<12x12xf32>
    %cst_74 = arith.constant dense<0.000000e+00> : vector<12xf32>
    %219 = vector.multi_reduction <add>, %218, %cst_74 [1] : vector<12x12xf32> to vector<12xf32>
    %220 = vector.shape_cast %219 : vector<12xf32> to vector<12x1xf32>
    %221 = tpu.reciprocal %220 {approx = true} : vector<12x1xf32> -> vector<12x1xf32>
    %222 = vector.broadcast %221 : vector<12x1xf32> to vector<12x12xf32>
    %223 = arith.mulf %218, %222 : vector<12x12xf32>
    %224 = arith.truncf %223 : vector<12x12xf32> to vector<12x12xbf16>
    %cst_75 = arith.constant dense<0.000000e+00> : vector<12x8xf32>
    %225 = tpu.matmul %224, %211, %cst_75 {dimension_numbers = #tpu.dot_dimension_numbers<[1], [0], [0], [1], [0, 0, 1, 1], [], []>} : vector<12x12xbf16>, vector<12x8xbf16>, vector<12x8xf32> -> vector<12x8xf32>
    %226 = vector.extract_strided_slice %172 {offsets = [0, 24], sizes = [12, 8], strides = [1, 1]} : vector<12x128xbf16> to vector<12x8xbf16>
    %227 = vector.extract_strided_slice %172 {offsets = [0, 56], sizes = [12, 8], strides = [1, 1]} : vector<12x128xbf16> to vector<12x8xbf16>
    %228 = vector.extract_strided_slice %172 {offsets = [0, 88], sizes = [12, 8], strides = [1, 1]} : vector<12x128xbf16> to vector<12x8xbf16>
    %cst_76 = arith.constant dense<0.000000e+00> : vector<12x12xf32>
    %229 = tpu.matmul %226, %227, %cst_76 {dimension_numbers = #tpu.dot_dimension_numbers<[1], [1], [0], [0], [0, 0, 1, 0], [], []>} : vector<12x8xbf16>, vector<12x8xbf16>, vector<12x12xf32> -> vector<12x12xf32>
    %230 = arith.addf %229, %174 : vector<12x12xf32>
    %cst_77 = arith.constant dense<0xFF800000> : vector<12xf32>
    %231 = vector.multi_reduction <maximumf>, %230, %cst_77 [1] : vector<12x12xf32> to vector<12xf32>
    %232 = vector.shape_cast %231 : vector<12xf32> to vector<12x1xf32>
    %233 = vector.broadcast %232 : vector<12x1xf32> to vector<12x12xf32>
    %234 = arith.subf %230, %233 : vector<12x12xf32>
    %235 = math.exp %234 : vector<12x12xf32>
    %cst_78 = arith.constant dense<0.000000e+00> : vector<12xf32>
    %236 = vector.multi_reduction <add>, %235, %cst_78 [1] : vector<12x12xf32> to vector<12xf32>
    %237 = vector.shape_cast %236 : vector<12xf32> to vector<12x1xf32>
    %238 = tpu.reciprocal %237 {approx = true} : vector<12x1xf32> -> vector<12x1xf32>
    %239 = vector.broadcast %238 : vector<12x1xf32> to vector<12x12xf32>
    %240 = arith.mulf %235, %239 : vector<12x12xf32>
    %241 = arith.truncf %240 : vector<12x12xf32> to vector<12x12xbf16>
    %cst_79 = arith.constant dense<0.000000e+00> : vector<12x8xf32>
    %242 = tpu.matmul %241, %228, %cst_79 {dimension_numbers = #tpu.dot_dimension_numbers<[1], [0], [0], [1], [0, 0, 1, 1], [], []>} : vector<12x12xbf16>, vector<12x8xbf16>, vector<12x8xf32> -> vector<12x8xf32>
    %243 = tpu.concatenate %191, %208, %225, %242 in 1 : vector<12x8xf32>, vector<12x8xf32>, vector<12x8xf32>, vector<12x8xf32> -> vector<12x32xf32>
    %244 = arith.truncf %243 : vector<12x32xf32> to vector<12x32xbf16>
    %c4_80 = arith.constant 4 : index
    %c0_81 = arith.constant 0 : index
    %c0_82 = arith.constant 0 : index
    %245 = vector.load %arg5[%c4_80, %c0_81, %c0_82] : memref<17x32x128xbf16, #tpu.memory_space<vmem>>, vector<1x32x128xbf16>
    %246 = vector.shape_cast %245 : vector<1x32x128xbf16> to vector<32x128xbf16>
    %247 = vector.extract_strided_slice %246 {offsets = [0, 0], sizes = [32, 32], strides = [1, 1]} : vector<32x128xbf16> to vector<32x32xbf16>
    %cst_83 = arith.constant dense<0.000000e+00> : vector<12x32xf32>
    %248 = tpu.matmul %244, %247, %cst_83 {dimension_numbers = #tpu.dot_dimension_numbers<[1], [0], [0], [1], [0, 0, 1, 1], [], []>} : vector<12x32xbf16>, vector<32x32xbf16>, vector<12x32xf32> -> vector<12x32xf32>
    %c9 = arith.constant 9 : index
    %c0_84 = arith.constant 0 : index
    %249 = vector.load %arg7[%c9, %c0_84] : memref<41x128xf32, #tpu.memory_space<vmem>>, vector<1x128xf32>
    %250 = vector.extract_strided_slice %249 {offsets = [0, 0], sizes = [1, 32], strides = [1, 1]} : vector<1x128xf32> to vector<1x32xf32>
    %251 = vector.broadcast %250 : vector<1x32xf32> to vector<12x32xf32>
    %252 = arith.addf %248, %251 : vector<12x32xf32>
    %253 = arith.addf %252, %164 : vector<12x32xf32>
    %c10 = arith.constant 10 : index
    %c0_85 = arith.constant 0 : index
    %254 = vector.load %arg7[%c10, %c0_85] : memref<41x128xf32, #tpu.memory_space<vmem>>, vector<1x128xf32>
    %255 = vector.extract_strided_slice %254 {offsets = [0, 0], sizes = [1, 32], strides = [1, 1]} : vector<1x128xf32> to vector<1x32xf32>
    %c11 = arith.constant 11 : index
    %c0_86 = arith.constant 0 : index
    %256 = vector.load %arg7[%c11, %c0_86] : memref<41x128xf32, #tpu.memory_space<vmem>>, vector<1x128xf32>
    %257 = vector.extract_strided_slice %256 {offsets = [0, 0], sizes = [1, 32], strides = [1, 1]} : vector<1x128xf32> to vector<1x32xf32>
    %cst_87 = arith.constant dense<0.000000e+00> : vector<12xf32>
    %258 = vector.multi_reduction <add>, %253, %cst_87 [1] : vector<12x32xf32> to vector<12xf32>
    %259 = vector.shape_cast %258 : vector<12xf32> to vector<12x1xf32>
    %cst_88 = arith.constant 3.200000e+01 : f32
    %260 = vector.broadcast %cst_88 : f32 to vector<12x1xf32>
    %261 = arith.divf %259, %260 : vector<12x1xf32>
    %262 = vector.broadcast %261 : vector<12x1xf32> to vector<12x32xf32>
    %263 = arith.subf %253, %262 : vector<12x32xf32>
    %264 = arith.mulf %263, %263 : vector<12x32xf32>
    %cst_89 = arith.constant dense<0.000000e+00> : vector<12xf32>
    %265 = vector.multi_reduction <add>, %264, %cst_89 [1] : vector<12x32xf32> to vector<12xf32>
    %266 = vector.shape_cast %265 : vector<12xf32> to vector<12x1xf32>
    %cst_90 = arith.constant 3.200000e+01 : f32
    %267 = vector.broadcast %cst_90 : f32 to vector<12x1xf32>
    %268 = arith.divf %266, %267 : vector<12x1xf32>
    %269 = vector.broadcast %261 : vector<12x1xf32> to vector<12x32xf32>
    %270 = arith.subf %253, %269 : vector<12x32xf32>
    %cst_91 = arith.constant 9.99999974E-6 : f32
    %271 = vector.broadcast %cst_91 : f32 to vector<12x1xf32>
    %272 = arith.addf %268, %271 : vector<12x1xf32>
    %273 = math.rsqrt %272 : vector<12x1xf32>
    %274 = vector.broadcast %273 : vector<12x1xf32> to vector<12x32xf32>
    %275 = arith.mulf %270, %274 : vector<12x32xf32>
    %276 = vector.broadcast %255 : vector<1x32xf32> to vector<12x32xf32>
    %277 = arith.mulf %275, %276 : vector<12x32xf32>
    %278 = vector.broadcast %257 : vector<1x32xf32> to vector<12x32xf32>
    %279 = arith.addf %277, %278 : vector<12x32xf32>
    %280 = arith.truncf %279 : vector<12x32xf32> to vector<12x32xbf16>
    %c5_92 = arith.constant 5 : index
    %c0_93 = arith.constant 0 : index
    %c0_94 = arith.constant 0 : index
    %281 = vector.load %arg5[%c5_92, %c0_93, %c0_94] : memref<17x32x128xbf16, #tpu.memory_space<vmem>>, vector<1x32x128xbf16>
    %282 = vector.shape_cast %281 : vector<1x32x128xbf16> to vector<32x128xbf16>
    %cst_95 = arith.constant dense<0.000000e+00> : vector<12x128xf32>
    %283 = tpu.matmul %280, %282, %cst_95 {dimension_numbers = #tpu.dot_dimension_numbers<[1], [0], [0], [1], [0, 0, 1, 1], [], []>} : vector<12x32xbf16>, vector<32x128xbf16>, vector<12x128xf32> -> vector<12x128xf32>
    %c12 = arith.constant 12 : index
    %c0_96 = arith.constant 0 : index
    %284 = vector.load %arg7[%c12, %c0_96] : memref<41x128xf32, #tpu.memory_space<vmem>>, vector<1x128xf32>
    %285 = vector.broadcast %284 : vector<1x128xf32> to vector<12x128xf32>
    %286 = arith.addf %283, %285 : vector<12x128xf32>
    %cst_97 = arith.constant 0.000000e+00 : f32
    %287 = vector.broadcast %cst_97 : f32 to vector<12x128xf32>
    %288 = arith.maximumf %286, %287 : vector<12x128xf32>
    %289 = arith.truncf %288 : vector<12x128xf32> to vector<12x128xbf16>
    %c1_98 = arith.constant 1 : index
    %c0_99 = arith.constant 0 : index
    %c0_100 = arith.constant 0 : index
    %290 = vector.load %arg6[%c1_98, %c0_99, %c0_100] : memref<4x128x32xbf16, #tpu.memory_space<vmem>>, vector<1x128x32xbf16>
    %291 = vector.shape_cast %290 : vector<1x128x32xbf16> to vector<128x32xbf16>
    %cst_101 = arith.constant dense<0.000000e+00> : vector<12x32xf32>
    %292 = tpu.matmul %289, %291, %cst_101 {dimension_numbers = #tpu.dot_dimension_numbers<[1], [0], [0], [1], [0, 0, 1, 1], [], []>} : vector<12x128xbf16>, vector<128x32xbf16>, vector<12x32xf32> -> vector<12x32xf32>
    %c13 = arith.constant 13 : index
    %c0_102 = arith.constant 0 : index
    %293 = vector.load %arg7[%c13, %c0_102] : memref<41x128xf32, #tpu.memory_space<vmem>>, vector<1x128xf32>
    %294 = vector.extract_strided_slice %293 {offsets = [0, 0], sizes = [1, 32], strides = [1, 1]} : vector<1x128xf32> to vector<1x32xf32>
    %295 = vector.broadcast %294 : vector<1x32xf32> to vector<12x32xf32>
    %296 = arith.addf %292, %295 : vector<12x32xf32>
    %297 = arith.addf %296, %279 : vector<12x32xf32>
    %c14 = arith.constant 14 : index
    %c0_103 = arith.constant 0 : index
    %298 = vector.load %arg7[%c14, %c0_103] : memref<41x128xf32, #tpu.memory_space<vmem>>, vector<1x128xf32>
    %299 = vector.extract_strided_slice %298 {offsets = [0, 0], sizes = [1, 32], strides = [1, 1]} : vector<1x128xf32> to vector<1x32xf32>
    %c15 = arith.constant 15 : index
    %c0_104 = arith.constant 0 : index
    %300 = vector.load %arg7[%c15, %c0_104] : memref<41x128xf32, #tpu.memory_space<vmem>>, vector<1x128xf32>
    %301 = vector.extract_strided_slice %300 {offsets = [0, 0], sizes = [1, 32], strides = [1, 1]} : vector<1x128xf32> to vector<1x32xf32>
    %cst_105 = arith.constant dense<0.000000e+00> : vector<12xf32>
    %302 = vector.multi_reduction <add>, %297, %cst_105 [1] : vector<12x32xf32> to vector<12xf32>
    %303 = vector.shape_cast %302 : vector<12xf32> to vector<12x1xf32>
    %cst_106 = arith.constant 3.200000e+01 : f32
    %304 = vector.broadcast %cst_106 : f32 to vector<12x1xf32>
    %305 = arith.divf %303, %304 : vector<12x1xf32>
    %306 = vector.broadcast %305 : vector<12x1xf32> to vector<12x32xf32>
    %307 = arith.subf %297, %306 : vector<12x32xf32>
    %308 = arith.mulf %307, %307 : vector<12x32xf32>
    %cst_107 = arith.constant dense<0.000000e+00> : vector<12xf32>
    %309 = vector.multi_reduction <add>, %308, %cst_107 [1] : vector<12x32xf32> to vector<12xf32>
    %310 = vector.shape_cast %309 : vector<12xf32> to vector<12x1xf32>
    %cst_108 = arith.constant 3.200000e+01 : f32
    %311 = vector.broadcast %cst_108 : f32 to vector<12x1xf32>
    %312 = arith.divf %310, %311 : vector<12x1xf32>
    %313 = vector.broadcast %305 : vector<12x1xf32> to vector<12x32xf32>
    %314 = arith.subf %297, %313 : vector<12x32xf32>
    %cst_109 = arith.constant 9.99999974E-6 : f32
    %315 = vector.broadcast %cst_109 : f32 to vector<12x1xf32>
    %316 = arith.addf %312, %315 : vector<12x1xf32>
    %317 = math.rsqrt %316 : vector<12x1xf32>
    %318 = vector.broadcast %317 : vector<12x1xf32> to vector<12x32xf32>
    %319 = arith.mulf %314, %318 : vector<12x32xf32>
    %320 = vector.broadcast %299 : vector<1x32xf32> to vector<12x32xf32>
    %321 = arith.mulf %319, %320 : vector<12x32xf32>
    %322 = vector.broadcast %301 : vector<1x32xf32> to vector<12x32xf32>
    %323 = arith.addf %321, %322 : vector<12x32xf32>
    %324 = arith.truncf %323 : vector<12x32xf32> to vector<12x32xbf16>
    %c0_110 = arith.constant 0 : index
    %c0_111 = arith.constant 0 : index
    %c0_112 = arith.constant 0 : index
    %325 = vector.load %arg2[%c0_110, %c0_111, %c0_112] : memref<1x8x32xf32, #tpu.memory_space<vmem>>, vector<1x8x32xf32>
    %326 = vector.shape_cast %325 : vector<1x8x32xf32> to vector<8x32xf32>
    %327 = arith.truncf %326 : vector<8x32xf32> to vector<8x32xbf16>
    %c16 = arith.constant 16 : index
    %c0_113 = arith.constant 0 : index
    %328 = vector.load %arg7[%c16, %c0_113] : memref<41x128xf32, #tpu.memory_space<vmem>>, vector<1x128xf32>
    %c6_114 = arith.constant 6 : index
    %c0_115 = arith.constant 0 : index
    %c0_116 = arith.constant 0 : index
    %329 = vector.load %arg5[%c6_114, %c0_115, %c0_116] : memref<17x32x128xbf16, #tpu.memory_space<vmem>>, vector<1x32x128xbf16>
    %330 = vector.shape_cast %329 : vector<1x32x128xbf16> to vector<32x128xbf16>
    %cst_117 = arith.constant dense<0.000000e+00> : vector<8x128xf32>
    %331 = tpu.matmul %327, %330, %cst_117 {dimension_numbers = #tpu.dot_dimension_numbers<[1], [0], [0], [1], [0, 0, 1, 1], [], []>} : vector<8x32xbf16>, vector<32x128xbf16>, vector<8x128xf32> -> vector<8x128xf32>
    %332 = vector.broadcast %328 : vector<1x128xf32> to vector<8x128xf32>
    %333 = arith.addf %331, %332 : vector<8x128xf32>
    %334 = arith.truncf %333 : vector<8x128xf32> to vector<8x128xbf16>
    %335 = vector.extract_strided_slice %334 {offsets = [0, 0], sizes = [8, 8], strides = [1, 1]} : vector<8x128xbf16> to vector<8x8xbf16>
    %336 = vector.extract_strided_slice %334 {offsets = [0, 32], sizes = [8, 8], strides = [1, 1]} : vector<8x128xbf16> to vector<8x8xbf16>
    %337 = vector.extract_strided_slice %334 {offsets = [0, 64], sizes = [8, 8], strides = [1, 1]} : vector<8x128xbf16> to vector<8x8xbf16>
    %cst_118 = arith.constant dense<0.000000e+00> : vector<8x8xf32>
    %338 = tpu.matmul %335, %336, %cst_118 {dimension_numbers = #tpu.dot_dimension_numbers<[1], [1], [0], [0], [0, 0, 1, 0], [], []>} : vector<8x8xbf16>, vector<8x8xbf16>, vector<8x8xf32> -> vector<8x8xf32>
    %339 = arith.addf %338, %3 : vector<8x8xf32>
    %cst_119 = arith.constant dense<0xFF800000> : vector<8xf32>
    %340 = vector.multi_reduction <maximumf>, %339, %cst_119 [1] : vector<8x8xf32> to vector<8xf32>
    %341 = vector.shape_cast %340 : vector<8xf32> to vector<8x1xf32>
    %342 = vector.broadcast %341 : vector<8x1xf32> to vector<8x8xf32>
    %343 = arith.subf %339, %342 : vector<8x8xf32>
    %344 = math.exp %343 : vector<8x8xf32>
    %cst_120 = arith.constant dense<0.000000e+00> : vector<8xf32>
    %345 = vector.multi_reduction <add>, %344, %cst_120 [1] : vector<8x8xf32> to vector<8xf32>
    %346 = vector.shape_cast %345 : vector<8xf32> to vector<8x1xf32>
    %347 = tpu.reciprocal %346 {approx = true} : vector<8x1xf32> -> vector<8x1xf32>
    %348 = vector.broadcast %347 : vector<8x1xf32> to vector<8x8xf32>
    %349 = arith.mulf %344, %348 : vector<8x8xf32>
    %350 = arith.truncf %349 : vector<8x8xf32> to vector<8x8xbf16>
    %cst_121 = arith.constant dense<0.000000e+00> : vector<8x8xf32>
    %351 = tpu.matmul %350, %337, %cst_121 {dimension_numbers = #tpu.dot_dimension_numbers<[1], [0], [0], [1], [0, 0, 1, 1], [], []>} : vector<8x8xbf16>, vector<8x8xbf16>, vector<8x8xf32> -> vector<8x8xf32>
    %352 = vector.extract_strided_slice %334 {offsets = [0, 8], sizes = [8, 8], strides = [1, 1]} : vector<8x128xbf16> to vector<8x8xbf16>
    %353 = vector.extract_strided_slice %334 {offsets = [0, 40], sizes = [8, 8], strides = [1, 1]} : vector<8x128xbf16> to vector<8x8xbf16>
    %354 = vector.extract_strided_slice %334 {offsets = [0, 72], sizes = [8, 8], strides = [1, 1]} : vector<8x128xbf16> to vector<8x8xbf16>
    %cst_122 = arith.constant dense<0.000000e+00> : vector<8x8xf32>
    %355 = tpu.matmul %352, %353, %cst_122 {dimension_numbers = #tpu.dot_dimension_numbers<[1], [1], [0], [0], [0, 0, 1, 0], [], []>} : vector<8x8xbf16>, vector<8x8xbf16>, vector<8x8xf32> -> vector<8x8xf32>
    %356 = arith.addf %355, %3 : vector<8x8xf32>
    %cst_123 = arith.constant dense<0xFF800000> : vector<8xf32>
    %357 = vector.multi_reduction <maximumf>, %356, %cst_123 [1] : vector<8x8xf32> to vector<8xf32>
    %358 = vector.shape_cast %357 : vector<8xf32> to vector<8x1xf32>
    %359 = vector.broadcast %358 : vector<8x1xf32> to vector<8x8xf32>
    %360 = arith.subf %356, %359 : vector<8x8xf32>
    %361 = math.exp %360 : vector<8x8xf32>
    %cst_124 = arith.constant dense<0.000000e+00> : vector<8xf32>
    %362 = vector.multi_reduction <add>, %361, %cst_124 [1] : vector<8x8xf32> to vector<8xf32>
    %363 = vector.shape_cast %362 : vector<8xf32> to vector<8x1xf32>
    %364 = tpu.reciprocal %363 {approx = true} : vector<8x1xf32> -> vector<8x1xf32>
    %365 = vector.broadcast %364 : vector<8x1xf32> to vector<8x8xf32>
    %366 = arith.mulf %361, %365 : vector<8x8xf32>
    %367 = arith.truncf %366 : vector<8x8xf32> to vector<8x8xbf16>
    %cst_125 = arith.constant dense<0.000000e+00> : vector<8x8xf32>
    %368 = tpu.matmul %367, %354, %cst_125 {dimension_numbers = #tpu.dot_dimension_numbers<[1], [0], [0], [1], [0, 0, 1, 1], [], []>} : vector<8x8xbf16>, vector<8x8xbf16>, vector<8x8xf32> -> vector<8x8xf32>
    %369 = vector.extract_strided_slice %334 {offsets = [0, 16], sizes = [8, 8], strides = [1, 1]} : vector<8x128xbf16> to vector<8x8xbf16>
    %370 = vector.extract_strided_slice %334 {offsets = [0, 48], sizes = [8, 8], strides = [1, 1]} : vector<8x128xbf16> to vector<8x8xbf16>
    %371 = vector.extract_strided_slice %334 {offsets = [0, 80], sizes = [8, 8], strides = [1, 1]} : vector<8x128xbf16> to vector<8x8xbf16>
    %cst_126 = arith.constant dense<0.000000e+00> : vector<8x8xf32>
    %372 = tpu.matmul %369, %370, %cst_126 {dimension_numbers = #tpu.dot_dimension_numbers<[1], [1], [0], [0], [0, 0, 1, 0], [], []>} : vector<8x8xbf16>, vector<8x8xbf16>, vector<8x8xf32> -> vector<8x8xf32>
    %373 = arith.addf %372, %3 : vector<8x8xf32>
    %cst_127 = arith.constant dense<0xFF800000> : vector<8xf32>
    %374 = vector.multi_reduction <maximumf>, %373, %cst_127 [1] : vector<8x8xf32> to vector<8xf32>
    %375 = vector.shape_cast %374 : vector<8xf32> to vector<8x1xf32>
    %376 = vector.broadcast %375 : vector<8x1xf32> to vector<8x8xf32>
    %377 = arith.subf %373, %376 : vector<8x8xf32>
    %378 = math.exp %377 : vector<8x8xf32>
    %cst_128 = arith.constant dense<0.000000e+00> : vector<8xf32>
    %379 = vector.multi_reduction <add>, %378, %cst_128 [1] : vector<8x8xf32> to vector<8xf32>
    %380 = vector.shape_cast %379 : vector<8xf32> to vector<8x1xf32>
    %381 = tpu.reciprocal %380 {approx = true} : vector<8x1xf32> -> vector<8x1xf32>
    %382 = vector.broadcast %381 : vector<8x1xf32> to vector<8x8xf32>
    %383 = arith.mulf %378, %382 : vector<8x8xf32>
    %384 = arith.truncf %383 : vector<8x8xf32> to vector<8x8xbf16>
    %cst_129 = arith.constant dense<0.000000e+00> : vector<8x8xf32>
    %385 = tpu.matmul %384, %371, %cst_129 {dimension_numbers = #tpu.dot_dimension_numbers<[1], [0], [0], [1], [0, 0, 1, 1], [], []>} : vector<8x8xbf16>, vector<8x8xbf16>, vector<8x8xf32> -> vector<8x8xf32>
    %386 = vector.extract_strided_slice %334 {offsets = [0, 24], sizes = [8, 8], strides = [1, 1]} : vector<8x128xbf16> to vector<8x8xbf16>
    %387 = vector.extract_strided_slice %334 {offsets = [0, 56], sizes = [8, 8], strides = [1, 1]} : vector<8x128xbf16> to vector<8x8xbf16>
    %388 = vector.extract_strided_slice %334 {offsets = [0, 88], sizes = [8, 8], strides = [1, 1]} : vector<8x128xbf16> to vector<8x8xbf16>
    %cst_130 = arith.constant dense<0.000000e+00> : vector<8x8xf32>
    %389 = tpu.matmul %386, %387, %cst_130 {dimension_numbers = #tpu.dot_dimension_numbers<[1], [1], [0], [0], [0, 0, 1, 0], [], []>} : vector<8x8xbf16>, vector<8x8xbf16>, vector<8x8xf32> -> vector<8x8xf32>
    %390 = arith.addf %389, %3 : vector<8x8xf32>
    %cst_131 = arith.constant dense<0xFF800000> : vector<8xf32>
    %391 = vector.multi_reduction <maximumf>, %390, %cst_131 [1] : vector<8x8xf32> to vector<8xf32>
    %392 = vector.shape_cast %391 : vector<8xf32> to vector<8x1xf32>
    %393 = vector.broadcast %392 : vector<8x1xf32> to vector<8x8xf32>
    %394 = arith.subf %390, %393 : vector<8x8xf32>
    %395 = math.exp %394 : vector<8x8xf32>
    %cst_132 = arith.constant dense<0.000000e+00> : vector<8xf32>
    %396 = vector.multi_reduction <add>, %395, %cst_132 [1] : vector<8x8xf32> to vector<8xf32>
    %397 = vector.shape_cast %396 : vector<8xf32> to vector<8x1xf32>
    %398 = tpu.reciprocal %397 {approx = true} : vector<8x1xf32> -> vector<8x1xf32>
    %399 = vector.broadcast %398 : vector<8x1xf32> to vector<8x8xf32>
    %400 = arith.mulf %395, %399 : vector<8x8xf32>
    %401 = arith.truncf %400 : vector<8x8xf32> to vector<8x8xbf16>
    %cst_133 = arith.constant dense<0.000000e+00> : vector<8x8xf32>
    %402 = tpu.matmul %401, %388, %cst_133 {dimension_numbers = #tpu.dot_dimension_numbers<[1], [0], [0], [1], [0, 0, 1, 1], [], []>} : vector<8x8xbf16>, vector<8x8xbf16>, vector<8x8xf32> -> vector<8x8xf32>
    %403 = tpu.concatenate %351, %368, %385, %402 in 1 : vector<8x8xf32>, vector<8x8xf32>, vector<8x8xf32>, vector<8x8xf32> -> vector<8x32xf32>
    %404 = arith.truncf %403 : vector<8x32xf32> to vector<8x32xbf16>
    %c7_134 = arith.constant 7 : index
    %c0_135 = arith.constant 0 : index
    %c0_136 = arith.constant 0 : index
    %405 = vector.load %arg5[%c7_134, %c0_135, %c0_136] : memref<17x32x128xbf16, #tpu.memory_space<vmem>>, vector<1x32x128xbf16>
    %406 = vector.shape_cast %405 : vector<1x32x128xbf16> to vector<32x128xbf16>
    %407 = vector.extract_strided_slice %406 {offsets = [0, 0], sizes = [32, 32], strides = [1, 1]} : vector<32x128xbf16> to vector<32x32xbf16>
    %cst_137 = arith.constant dense<0.000000e+00> : vector<8x32xf32>
    %408 = tpu.matmul %404, %407, %cst_137 {dimension_numbers = #tpu.dot_dimension_numbers<[1], [0], [0], [1], [0, 0, 1, 1], [], []>} : vector<8x32xbf16>, vector<32x32xbf16>, vector<8x32xf32> -> vector<8x32xf32>
    %c17 = arith.constant 17 : index
    %c0_138 = arith.constant 0 : index
    %409 = vector.load %arg7[%c17, %c0_138] : memref<41x128xf32, #tpu.memory_space<vmem>>, vector<1x128xf32>
    %410 = vector.extract_strided_slice %409 {offsets = [0, 0], sizes = [1, 32], strides = [1, 1]} : vector<1x128xf32> to vector<1x32xf32>
    %411 = vector.broadcast %410 : vector<1x32xf32> to vector<8x32xf32>
    %412 = arith.addf %408, %411 : vector<8x32xf32>
    %413 = arith.addf %412, %326 : vector<8x32xf32>
    %c18 = arith.constant 18 : index
    %c0_139 = arith.constant 0 : index
    %414 = vector.load %arg7[%c18, %c0_139] : memref<41x128xf32, #tpu.memory_space<vmem>>, vector<1x128xf32>
    %415 = vector.extract_strided_slice %414 {offsets = [0, 0], sizes = [1, 32], strides = [1, 1]} : vector<1x128xf32> to vector<1x32xf32>
    %c19 = arith.constant 19 : index
    %c0_140 = arith.constant 0 : index
    %416 = vector.load %arg7[%c19, %c0_140] : memref<41x128xf32, #tpu.memory_space<vmem>>, vector<1x128xf32>
    %417 = vector.extract_strided_slice %416 {offsets = [0, 0], sizes = [1, 32], strides = [1, 1]} : vector<1x128xf32> to vector<1x32xf32>
    %cst_141 = arith.constant dense<0.000000e+00> : vector<8xf32>
    %418 = vector.multi_reduction <add>, %413, %cst_141 [1] : vector<8x32xf32> to vector<8xf32>
    %419 = vector.shape_cast %418 : vector<8xf32> to vector<8x1xf32>
    %cst_142 = arith.constant 3.200000e+01 : f32
    %420 = vector.broadcast %cst_142 : f32 to vector<8x1xf32>
    %421 = arith.divf %419, %420 : vector<8x1xf32>
    %422 = vector.broadcast %421 : vector<8x1xf32> to vector<8x32xf32>
    %423 = arith.subf %413, %422 : vector<8x32xf32>
    %424 = arith.mulf %423, %423 : vector<8x32xf32>
    %cst_143 = arith.constant dense<0.000000e+00> : vector<8xf32>
    %425 = vector.multi_reduction <add>, %424, %cst_143 [1] : vector<8x32xf32> to vector<8xf32>
    %426 = vector.shape_cast %425 : vector<8xf32> to vector<8x1xf32>
    %cst_144 = arith.constant 3.200000e+01 : f32
    %427 = vector.broadcast %cst_144 : f32 to vector<8x1xf32>
    %428 = arith.divf %426, %427 : vector<8x1xf32>
    %429 = vector.broadcast %421 : vector<8x1xf32> to vector<8x32xf32>
    %430 = arith.subf %413, %429 : vector<8x32xf32>
    %cst_145 = arith.constant 9.99999974E-6 : f32
    %431 = vector.broadcast %cst_145 : f32 to vector<8x1xf32>
    %432 = arith.addf %428, %431 : vector<8x1xf32>
    %433 = math.rsqrt %432 : vector<8x1xf32>
    %434 = vector.broadcast %433 : vector<8x1xf32> to vector<8x32xf32>
    %435 = arith.mulf %430, %434 : vector<8x32xf32>
    %436 = vector.broadcast %415 : vector<1x32xf32> to vector<8x32xf32>
    %437 = arith.mulf %435, %436 : vector<8x32xf32>
    %438 = vector.broadcast %417 : vector<1x32xf32> to vector<8x32xf32>
    %439 = arith.addf %437, %438 : vector<8x32xf32>
    %440 = arith.truncf %439 : vector<8x32xf32> to vector<8x32xbf16>
    %c24 = arith.constant 24 : index
    %c0_146 = arith.constant 0 : index
    %441 = vector.load %arg7[%c24, %c0_146] : memref<41x128xf32, #tpu.memory_space<vmem>>, vector<1x128xf32>
    %c10_147 = arith.constant 10 : index
    %c0_148 = arith.constant 0 : index
    %c0_149 = arith.constant 0 : index
    %442 = vector.load %arg5[%c10_147, %c0_148, %c0_149] : memref<17x32x128xbf16, #tpu.memory_space<vmem>>, vector<1x32x128xbf16>
    %443 = vector.shape_cast %442 : vector<1x32x128xbf16> to vector<32x128xbf16>
    %cst_150 = arith.constant dense<0.000000e+00> : vector<8x128xf32>
    %444 = tpu.matmul %440, %443, %cst_150 {dimension_numbers = #tpu.dot_dimension_numbers<[1], [0], [0], [1], [0, 0, 1, 1], [], []>} : vector<8x32xbf16>, vector<32x128xbf16>, vector<8x128xf32> -> vector<8x128xf32>
    %445 = vector.broadcast %441 : vector<1x128xf32> to vector<8x128xf32>
    %446 = arith.addf %444, %445 : vector<8x128xf32>
    %447 = arith.truncf %446 : vector<8x128xf32> to vector<8x128xbf16>
    %c10_151 = arith.constant 10 : index
    %c0_152 = arith.constant 0 : index
    %c0_153 = arith.constant 0 : index
    %448 = vector.load %arg5[%c10_151, %c0_152, %c0_153] : memref<17x32x128xbf16, #tpu.memory_space<vmem>>, vector<1x32x128xbf16>
    %449 = vector.shape_cast %448 : vector<1x32x128xbf16> to vector<32x128xbf16>
    %cst_154 = arith.constant dense<0.000000e+00> : vector<12x128xf32>
    %450 = tpu.matmul %324, %449, %cst_154 {dimension_numbers = #tpu.dot_dimension_numbers<[1], [0], [0], [1], [0, 0, 1, 1], [], []>} : vector<12x32xbf16>, vector<32x128xbf16>, vector<12x128xf32> -> vector<12x128xf32>
    %451 = vector.broadcast %441 : vector<1x128xf32> to vector<12x128xf32>
    %452 = arith.addf %450, %451 : vector<12x128xf32>
    %453 = arith.truncf %452 : vector<12x128xf32> to vector<12x128xbf16>
    %454 = vector.shape_cast %1 : vector<1x12xf32> to vector<1x12xf32>
    %455 = vector.broadcast %454 : vector<1x12xf32> to vector<8x12xf32>
    %456 = vector.extract_strided_slice %447 {offsets = [0, 0], sizes = [8, 8], strides = [1, 1]} : vector<8x128xbf16> to vector<8x8xbf16>
    %457 = vector.extract_strided_slice %453 {offsets = [0, 32], sizes = [12, 8], strides = [1, 1]} : vector<12x128xbf16> to vector<12x8xbf16>
    %458 = vector.extract_strided_slice %453 {offsets = [0, 64], sizes = [12, 8], strides = [1, 1]} : vector<12x128xbf16> to vector<12x8xbf16>
    %cst_155 = arith.constant dense<0.000000e+00> : vector<8x12xf32>
    %459 = tpu.matmul %456, %457, %cst_155 {dimension_numbers = #tpu.dot_dimension_numbers<[1], [1], [0], [0], [0, 0, 1, 0], [], []>} : vector<8x8xbf16>, vector<12x8xbf16>, vector<8x12xf32> -> vector<8x12xf32>
    %460 = arith.addf %459, %455 : vector<8x12xf32>
    %cst_156 = arith.constant dense<0xFF800000> : vector<8xf32>
    %461 = vector.multi_reduction <maximumf>, %460, %cst_156 [1] : vector<8x12xf32> to vector<8xf32>
    %462 = vector.shape_cast %461 : vector<8xf32> to vector<8x1xf32>
    %463 = vector.broadcast %462 : vector<8x1xf32> to vector<8x12xf32>
    %464 = arith.subf %460, %463 : vector<8x12xf32>
    %465 = math.exp %464 : vector<8x12xf32>
    %cst_157 = arith.constant dense<0.000000e+00> : vector<8xf32>
    %466 = vector.multi_reduction <add>, %465, %cst_157 [1] : vector<8x12xf32> to vector<8xf32>
    %467 = vector.shape_cast %466 : vector<8xf32> to vector<8x1xf32>
    %468 = tpu.reciprocal %467 {approx = true} : vector<8x1xf32> -> vector<8x1xf32>
    %469 = vector.broadcast %468 : vector<8x1xf32> to vector<8x12xf32>
    %470 = arith.mulf %465, %469 : vector<8x12xf32>
    %471 = arith.truncf %470 : vector<8x12xf32> to vector<8x12xbf16>
    %cst_158 = arith.constant dense<0.000000e+00> : vector<8x8xf32>
    %472 = tpu.matmul %471, %458, %cst_158 {dimension_numbers = #tpu.dot_dimension_numbers<[1], [0], [0], [1], [0, 0, 1, 1], [], []>} : vector<8x12xbf16>, vector<12x8xbf16>, vector<8x8xf32> -> vector<8x8xf32>
    %473 = vector.extract_strided_slice %447 {offsets = [0, 8], sizes = [8, 8], strides = [1, 1]} : vector<8x128xbf16> to vector<8x8xbf16>
    %474 = vector.extract_strided_slice %453 {offsets = [0, 40], sizes = [12, 8], strides = [1, 1]} : vector<12x128xbf16> to vector<12x8xbf16>
    %475 = vector.extract_strided_slice %453 {offsets = [0, 72], sizes = [12, 8], strides = [1, 1]} : vector<12x128xbf16> to vector<12x8xbf16>
    %cst_159 = arith.constant dense<0.000000e+00> : vector<8x12xf32>
    %476 = tpu.matmul %473, %474, %cst_159 {dimension_numbers = #tpu.dot_dimension_numbers<[1], [1], [0], [0], [0, 0, 1, 0], [], []>} : vector<8x8xbf16>, vector<12x8xbf16>, vector<8x12xf32> -> vector<8x12xf32>
    %477 = arith.addf %476, %455 : vector<8x12xf32>
    %cst_160 = arith.constant dense<0xFF800000> : vector<8xf32>
    %478 = vector.multi_reduction <maximumf>, %477, %cst_160 [1] : vector<8x12xf32> to vector<8xf32>
    %479 = vector.shape_cast %478 : vector<8xf32> to vector<8x1xf32>
    %480 = vector.broadcast %479 : vector<8x1xf32> to vector<8x12xf32>
    %481 = arith.subf %477, %480 : vector<8x12xf32>
    %482 = math.exp %481 : vector<8x12xf32>
    %cst_161 = arith.constant dense<0.000000e+00> : vector<8xf32>
    %483 = vector.multi_reduction <add>, %482, %cst_161 [1] : vector<8x12xf32> to vector<8xf32>
    %484 = vector.shape_cast %483 : vector<8xf32> to vector<8x1xf32>
    %485 = tpu.reciprocal %484 {approx = true} : vector<8x1xf32> -> vector<8x1xf32>
    %486 = vector.broadcast %485 : vector<8x1xf32> to vector<8x12xf32>
    %487 = arith.mulf %482, %486 : vector<8x12xf32>
    %488 = arith.truncf %487 : vector<8x12xf32> to vector<8x12xbf16>
    %cst_162 = arith.constant dense<0.000000e+00> : vector<8x8xf32>
    %489 = tpu.matmul %488, %475, %cst_162 {dimension_numbers = #tpu.dot_dimension_numbers<[1], [0], [0], [1], [0, 0, 1, 1], [], []>} : vector<8x12xbf16>, vector<12x8xbf16>, vector<8x8xf32> -> vector<8x8xf32>
    %490 = vector.extract_strided_slice %447 {offsets = [0, 16], sizes = [8, 8], strides = [1, 1]} : vector<8x128xbf16> to vector<8x8xbf16>
    %491 = vector.extract_strided_slice %453 {offsets = [0, 48], sizes = [12, 8], strides = [1, 1]} : vector<12x128xbf16> to vector<12x8xbf16>
    %492 = vector.extract_strided_slice %453 {offsets = [0, 80], sizes = [12, 8], strides = [1, 1]} : vector<12x128xbf16> to vector<12x8xbf16>
    %cst_163 = arith.constant dense<0.000000e+00> : vector<8x12xf32>
    %493 = tpu.matmul %490, %491, %cst_163 {dimension_numbers = #tpu.dot_dimension_numbers<[1], [1], [0], [0], [0, 0, 1, 0], [], []>} : vector<8x8xbf16>, vector<12x8xbf16>, vector<8x12xf32> -> vector<8x12xf32>
    %494 = arith.addf %493, %455 : vector<8x12xf32>
    %cst_164 = arith.constant dense<0xFF800000> : vector<8xf32>
    %495 = vector.multi_reduction <maximumf>, %494, %cst_164 [1] : vector<8x12xf32> to vector<8xf32>
    %496 = vector.shape_cast %495 : vector<8xf32> to vector<8x1xf32>
    %497 = vector.broadcast %496 : vector<8x1xf32> to vector<8x12xf32>
    %498 = arith.subf %494, %497 : vector<8x12xf32>
    %499 = math.exp %498 : vector<8x12xf32>
    %cst_165 = arith.constant dense<0.000000e+00> : vector<8xf32>
    %500 = vector.multi_reduction <add>, %499, %cst_165 [1] : vector<8x12xf32> to vector<8xf32>
    %501 = vector.shape_cast %500 : vector<8xf32> to vector<8x1xf32>
    %502 = tpu.reciprocal %501 {approx = true} : vector<8x1xf32> -> vector<8x1xf32>
    %503 = vector.broadcast %502 : vector<8x1xf32> to vector<8x12xf32>
    %504 = arith.mulf %499, %503 : vector<8x12xf32>
    %505 = arith.truncf %504 : vector<8x12xf32> to vector<8x12xbf16>
    %cst_166 = arith.constant dense<0.000000e+00> : vector<8x8xf32>
    %506 = tpu.matmul %505, %492, %cst_166 {dimension_numbers = #tpu.dot_dimension_numbers<[1], [0], [0], [1], [0, 0, 1, 1], [], []>} : vector<8x12xbf16>, vector<12x8xbf16>, vector<8x8xf32> -> vector<8x8xf32>
    %507 = vector.extract_strided_slice %447 {offsets = [0, 24], sizes = [8, 8], strides = [1, 1]} : vector<8x128xbf16> to vector<8x8xbf16>
    %508 = vector.extract_strided_slice %453 {offsets = [0, 56], sizes = [12, 8], strides = [1, 1]} : vector<12x128xbf16> to vector<12x8xbf16>
    %509 = vector.extract_strided_slice %453 {offsets = [0, 88], sizes = [12, 8], strides = [1, 1]} : vector<12x128xbf16> to vector<12x8xbf16>
    %cst_167 = arith.constant dense<0.000000e+00> : vector<8x12xf32>
    %510 = tpu.matmul %507, %508, %cst_167 {dimension_numbers = #tpu.dot_dimension_numbers<[1], [1], [0], [0], [0, 0, 1, 0], [], []>} : vector<8x8xbf16>, vector<12x8xbf16>, vector<8x12xf32> -> vector<8x12xf32>
    %511 = arith.addf %510, %455 : vector<8x12xf32>
    %cst_168 = arith.constant dense<0xFF800000> : vector<8xf32>
    %512 = vector.multi_reduction <maximumf>, %511, %cst_168 [1] : vector<8x12xf32> to vector<8xf32>
    %513 = vector.shape_cast %512 : vector<8xf32> to vector<8x1xf32>
    %514 = vector.broadcast %513 : vector<8x1xf32> to vector<8x12xf32>
    %515 = arith.subf %511, %514 : vector<8x12xf32>
    %516 = math.exp %515 : vector<8x12xf32>
    %cst_169 = arith.constant dense<0.000000e+00> : vector<8xf32>
    %517 = vector.multi_reduction <add>, %516, %cst_169 [1] : vector<8x12xf32> to vector<8xf32>
    %518 = vector.shape_cast %517 : vector<8xf32> to vector<8x1xf32>
    %519 = tpu.reciprocal %518 {approx = true} : vector<8x1xf32> -> vector<8x1xf32>
    %520 = vector.broadcast %519 : vector<8x1xf32> to vector<8x12xf32>
    %521 = arith.mulf %516, %520 : vector<8x12xf32>
    %522 = arith.truncf %521 : vector<8x12xf32> to vector<8x12xbf16>
    %cst_170 = arith.constant dense<0.000000e+00> : vector<8x8xf32>
    %523 = tpu.matmul %522, %509, %cst_170 {dimension_numbers = #tpu.dot_dimension_numbers<[1], [0], [0], [1], [0, 0, 1, 1], [], []>} : vector<8x12xbf16>, vector<12x8xbf16>, vector<8x8xf32> -> vector<8x8xf32>
    %524 = tpu.concatenate %472, %489, %506, %523 in 1 : vector<8x8xf32>, vector<8x8xf32>, vector<8x8xf32>, vector<8x8xf32> -> vector<8x32xf32>
    %525 = arith.truncf %524 : vector<8x32xf32> to vector<8x32xbf16>
    %c11_171 = arith.constant 11 : index
    %c0_172 = arith.constant 0 : index
    %c0_173 = arith.constant 0 : index
    %526 = vector.load %arg5[%c11_171, %c0_172, %c0_173] : memref<17x32x128xbf16, #tpu.memory_space<vmem>>, vector<1x32x128xbf16>
    %527 = vector.shape_cast %526 : vector<1x32x128xbf16> to vector<32x128xbf16>
    %528 = vector.extract_strided_slice %527 {offsets = [0, 0], sizes = [32, 32], strides = [1, 1]} : vector<32x128xbf16> to vector<32x32xbf16>
    %cst_174 = arith.constant dense<0.000000e+00> : vector<8x32xf32>
    %529 = tpu.matmul %525, %528, %cst_174 {dimension_numbers = #tpu.dot_dimension_numbers<[1], [0], [0], [1], [0, 0, 1, 1], [], []>} : vector<8x32xbf16>, vector<32x32xbf16>, vector<8x32xf32> -> vector<8x32xf32>
    %c25 = arith.constant 25 : index
    %c0_175 = arith.constant 0 : index
    %530 = vector.load %arg7[%c25, %c0_175] : memref<41x128xf32, #tpu.memory_space<vmem>>, vector<1x128xf32>
    %531 = vector.extract_strided_slice %530 {offsets = [0, 0], sizes = [1, 32], strides = [1, 1]} : vector<1x128xf32> to vector<1x32xf32>
    %532 = vector.broadcast %531 : vector<1x32xf32> to vector<8x32xf32>
    %533 = arith.addf %529, %532 : vector<8x32xf32>
    %534 = arith.addf %533, %439 : vector<8x32xf32>
    %c26 = arith.constant 26 : index
    %c0_176 = arith.constant 0 : index
    %535 = vector.load %arg7[%c26, %c0_176] : memref<41x128xf32, #tpu.memory_space<vmem>>, vector<1x128xf32>
    %536 = vector.extract_strided_slice %535 {offsets = [0, 0], sizes = [1, 32], strides = [1, 1]} : vector<1x128xf32> to vector<1x32xf32>
    %c27 = arith.constant 27 : index
    %c0_177 = arith.constant 0 : index
    %537 = vector.load %arg7[%c27, %c0_177] : memref<41x128xf32, #tpu.memory_space<vmem>>, vector<1x128xf32>
    %538 = vector.extract_strided_slice %537 {offsets = [0, 0], sizes = [1, 32], strides = [1, 1]} : vector<1x128xf32> to vector<1x32xf32>
    %cst_178 = arith.constant dense<0.000000e+00> : vector<8xf32>
    %539 = vector.multi_reduction <add>, %534, %cst_178 [1] : vector<8x32xf32> to vector<8xf32>
    %540 = vector.shape_cast %539 : vector<8xf32> to vector<8x1xf32>
    %cst_179 = arith.constant 3.200000e+01 : f32
    %541 = vector.broadcast %cst_179 : f32 to vector<8x1xf32>
    %542 = arith.divf %540, %541 : vector<8x1xf32>
    %543 = vector.broadcast %542 : vector<8x1xf32> to vector<8x32xf32>
    %544 = arith.subf %534, %543 : vector<8x32xf32>
    %545 = arith.mulf %544, %544 : vector<8x32xf32>
    %cst_180 = arith.constant dense<0.000000e+00> : vector<8xf32>
    %546 = vector.multi_reduction <add>, %545, %cst_180 [1] : vector<8x32xf32> to vector<8xf32>
    %547 = vector.shape_cast %546 : vector<8xf32> to vector<8x1xf32>
    %cst_181 = arith.constant 3.200000e+01 : f32
    %548 = vector.broadcast %cst_181 : f32 to vector<8x1xf32>
    %549 = arith.divf %547, %548 : vector<8x1xf32>
    %550 = vector.broadcast %542 : vector<8x1xf32> to vector<8x32xf32>
    %551 = arith.subf %534, %550 : vector<8x32xf32>
    %cst_182 = arith.constant 9.99999974E-6 : f32
    %552 = vector.broadcast %cst_182 : f32 to vector<8x1xf32>
    %553 = arith.addf %549, %552 : vector<8x1xf32>
    %554 = math.rsqrt %553 : vector<8x1xf32>
    %555 = vector.broadcast %554 : vector<8x1xf32> to vector<8x32xf32>
    %556 = arith.mulf %551, %555 : vector<8x32xf32>
    %557 = vector.broadcast %536 : vector<1x32xf32> to vector<8x32xf32>
    %558 = arith.mulf %556, %557 : vector<8x32xf32>
    %559 = vector.broadcast %538 : vector<1x32xf32> to vector<8x32xf32>
    %560 = arith.addf %558, %559 : vector<8x32xf32>
    %561 = arith.truncf %560 : vector<8x32xf32> to vector<8x32xbf16>
    %c12_183 = arith.constant 12 : index
    %c0_184 = arith.constant 0 : index
    %c0_185 = arith.constant 0 : index
    %562 = vector.load %arg5[%c12_183, %c0_184, %c0_185] : memref<17x32x128xbf16, #tpu.memory_space<vmem>>, vector<1x32x128xbf16>
    %563 = vector.shape_cast %562 : vector<1x32x128xbf16> to vector<32x128xbf16>
    %cst_186 = arith.constant dense<0.000000e+00> : vector<8x128xf32>
    %564 = tpu.matmul %561, %563, %cst_186 {dimension_numbers = #tpu.dot_dimension_numbers<[1], [0], [0], [1], [0, 0, 1, 1], [], []>} : vector<8x32xbf16>, vector<32x128xbf16>, vector<8x128xf32> -> vector<8x128xf32>
    %c28 = arith.constant 28 : index
    %c0_187 = arith.constant 0 : index
    %565 = vector.load %arg7[%c28, %c0_187] : memref<41x128xf32, #tpu.memory_space<vmem>>, vector<1x128xf32>
    %566 = vector.broadcast %565 : vector<1x128xf32> to vector<8x128xf32>
    %567 = arith.addf %564, %566 : vector<8x128xf32>
    %cst_188 = arith.constant 0.000000e+00 : f32
    %568 = vector.broadcast %cst_188 : f32 to vector<8x128xf32>
    %569 = arith.maximumf %567, %568 : vector<8x128xf32>
    %570 = arith.truncf %569 : vector<8x128xf32> to vector<8x128xbf16>
    %c2_189 = arith.constant 2 : index
    %c0_190 = arith.constant 0 : index
    %c0_191 = arith.constant 0 : index
    %571 = vector.load %arg6[%c2_189, %c0_190, %c0_191] : memref<4x128x32xbf16, #tpu.memory_space<vmem>>, vector<1x128x32xbf16>
    %572 = vector.shape_cast %571 : vector<1x128x32xbf16> to vector<128x32xbf16>
    %cst_192 = arith.constant dense<0.000000e+00> : vector<8x32xf32>
    %573 = tpu.matmul %570, %572, %cst_192 {dimension_numbers = #tpu.dot_dimension_numbers<[1], [0], [0], [1], [0, 0, 1, 1], [], []>} : vector<8x128xbf16>, vector<128x32xbf16>, vector<8x32xf32> -> vector<8x32xf32>
    %c29 = arith.constant 29 : index
    %c0_193 = arith.constant 0 : index
    %574 = vector.load %arg7[%c29, %c0_193] : memref<41x128xf32, #tpu.memory_space<vmem>>, vector<1x128xf32>
    %575 = vector.extract_strided_slice %574 {offsets = [0, 0], sizes = [1, 32], strides = [1, 1]} : vector<1x128xf32> to vector<1x32xf32>
    %576 = vector.broadcast %575 : vector<1x32xf32> to vector<8x32xf32>
    %577 = arith.addf %573, %576 : vector<8x32xf32>
    %578 = arith.addf %577, %560 : vector<8x32xf32>
    %c30 = arith.constant 30 : index
    %c0_194 = arith.constant 0 : index
    %579 = vector.load %arg7[%c30, %c0_194] : memref<41x128xf32, #tpu.memory_space<vmem>>, vector<1x128xf32>
    %580 = vector.extract_strided_slice %579 {offsets = [0, 0], sizes = [1, 32], strides = [1, 1]} : vector<1x128xf32> to vector<1x32xf32>
    %c31 = arith.constant 31 : index
    %c0_195 = arith.constant 0 : index
    %581 = vector.load %arg7[%c31, %c0_195] : memref<41x128xf32, #tpu.memory_space<vmem>>, vector<1x128xf32>
    %582 = vector.extract_strided_slice %581 {offsets = [0, 0], sizes = [1, 32], strides = [1, 1]} : vector<1x128xf32> to vector<1x32xf32>
    %cst_196 = arith.constant dense<0.000000e+00> : vector<8xf32>
    %583 = vector.multi_reduction <add>, %578, %cst_196 [1] : vector<8x32xf32> to vector<8xf32>
    %584 = vector.shape_cast %583 : vector<8xf32> to vector<8x1xf32>
    %cst_197 = arith.constant 3.200000e+01 : f32
    %585 = vector.broadcast %cst_197 : f32 to vector<8x1xf32>
    %586 = arith.divf %584, %585 : vector<8x1xf32>
    %587 = vector.broadcast %586 : vector<8x1xf32> to vector<8x32xf32>
    %588 = arith.subf %578, %587 : vector<8x32xf32>
    %589 = arith.mulf %588, %588 : vector<8x32xf32>
    %cst_198 = arith.constant dense<0.000000e+00> : vector<8xf32>
    %590 = vector.multi_reduction <add>, %589, %cst_198 [1] : vector<8x32xf32> to vector<8xf32>
    %591 = vector.shape_cast %590 : vector<8xf32> to vector<8x1xf32>
    %cst_199 = arith.constant 3.200000e+01 : f32
    %592 = vector.broadcast %cst_199 : f32 to vector<8x1xf32>
    %593 = arith.divf %591, %592 : vector<8x1xf32>
    %594 = vector.broadcast %586 : vector<8x1xf32> to vector<8x32xf32>
    %595 = arith.subf %578, %594 : vector<8x32xf32>
    %cst_200 = arith.constant 9.99999974E-6 : f32
    %596 = vector.broadcast %cst_200 : f32 to vector<8x1xf32>
    %597 = arith.addf %593, %596 : vector<8x1xf32>
    %598 = math.rsqrt %597 : vector<8x1xf32>
    %599 = vector.broadcast %598 : vector<8x1xf32> to vector<8x32xf32>
    %600 = arith.mulf %595, %599 : vector<8x32xf32>
    %601 = vector.broadcast %580 : vector<1x32xf32> to vector<8x32xf32>
    %602 = arith.mulf %600, %601 : vector<8x32xf32>
    %603 = vector.broadcast %582 : vector<1x32xf32> to vector<8x32xf32>
    %604 = arith.addf %602, %603 : vector<8x32xf32>
    %605 = arith.truncf %604 : vector<8x32xf32> to vector<8x32xbf16>
    %c20 = arith.constant 20 : index
    %c0_201 = arith.constant 0 : index
    %606 = vector.load %arg7[%c20, %c0_201] : memref<41x128xf32, #tpu.memory_space<vmem>>, vector<1x128xf32>
    %c8_202 = arith.constant 8 : index
    %c0_203 = arith.constant 0 : index
    %c0_204 = arith.constant 0 : index
    %607 = vector.load %arg5[%c8_202, %c0_203, %c0_204] : memref<17x32x128xbf16, #tpu.memory_space<vmem>>, vector<1x32x128xbf16>
    %608 = vector.shape_cast %607 : vector<1x32x128xbf16> to vector<32x128xbf16>
    %cst_205 = arith.constant dense<0.000000e+00> : vector<8x128xf32>
    %609 = tpu.matmul %605, %608, %cst_205 {dimension_numbers = #tpu.dot_dimension_numbers<[1], [0], [0], [1], [0, 0, 1, 1], [], []>} : vector<8x32xbf16>, vector<32x128xbf16>, vector<8x128xf32> -> vector<8x128xf32>
    %610 = vector.broadcast %606 : vector<1x128xf32> to vector<8x128xf32>
    %611 = arith.addf %609, %610 : vector<8x128xf32>
    %612 = arith.truncf %611 : vector<8x128xf32> to vector<8x128xbf16>
    %613 = vector.extract_strided_slice %612 {offsets = [0, 0], sizes = [8, 8], strides = [1, 1]} : vector<8x128xbf16> to vector<8x8xbf16>
    %614 = vector.extract_strided_slice %612 {offsets = [0, 32], sizes = [8, 8], strides = [1, 1]} : vector<8x128xbf16> to vector<8x8xbf16>
    %615 = vector.extract_strided_slice %612 {offsets = [0, 64], sizes = [8, 8], strides = [1, 1]} : vector<8x128xbf16> to vector<8x8xbf16>
    %cst_206 = arith.constant dense<0.000000e+00> : vector<8x8xf32>
    %616 = tpu.matmul %613, %614, %cst_206 {dimension_numbers = #tpu.dot_dimension_numbers<[1], [1], [0], [0], [0, 0, 1, 0], [], []>} : vector<8x8xbf16>, vector<8x8xbf16>, vector<8x8xf32> -> vector<8x8xf32>
    %617 = arith.addf %616, %3 : vector<8x8xf32>
    %cst_207 = arith.constant dense<0xFF800000> : vector<8xf32>
    %618 = vector.multi_reduction <maximumf>, %617, %cst_207 [1] : vector<8x8xf32> to vector<8xf32>
    %619 = vector.shape_cast %618 : vector<8xf32> to vector<8x1xf32>
    %620 = vector.broadcast %619 : vector<8x1xf32> to vector<8x8xf32>
    %621 = arith.subf %617, %620 : vector<8x8xf32>
    %622 = math.exp %621 : vector<8x8xf32>
    %cst_208 = arith.constant dense<0.000000e+00> : vector<8xf32>
    %623 = vector.multi_reduction <add>, %622, %cst_208 [1] : vector<8x8xf32> to vector<8xf32>
    %624 = vector.shape_cast %623 : vector<8xf32> to vector<8x1xf32>
    %625 = tpu.reciprocal %624 {approx = true} : vector<8x1xf32> -> vector<8x1xf32>
    %626 = vector.broadcast %625 : vector<8x1xf32> to vector<8x8xf32>
    %627 = arith.mulf %622, %626 : vector<8x8xf32>
    %628 = arith.truncf %627 : vector<8x8xf32> to vector<8x8xbf16>
    %cst_209 = arith.constant dense<0.000000e+00> : vector<8x8xf32>
    %629 = tpu.matmul %628, %615, %cst_209 {dimension_numbers = #tpu.dot_dimension_numbers<[1], [0], [0], [1], [0, 0, 1, 1], [], []>} : vector<8x8xbf16>, vector<8x8xbf16>, vector<8x8xf32> -> vector<8x8xf32>
    %630 = vector.extract_strided_slice %612 {offsets = [0, 8], sizes = [8, 8], strides = [1, 1]} : vector<8x128xbf16> to vector<8x8xbf16>
    %631 = vector.extract_strided_slice %612 {offsets = [0, 40], sizes = [8, 8], strides = [1, 1]} : vector<8x128xbf16> to vector<8x8xbf16>
    %632 = vector.extract_strided_slice %612 {offsets = [0, 72], sizes = [8, 8], strides = [1, 1]} : vector<8x128xbf16> to vector<8x8xbf16>
    %cst_210 = arith.constant dense<0.000000e+00> : vector<8x8xf32>
    %633 = tpu.matmul %630, %631, %cst_210 {dimension_numbers = #tpu.dot_dimension_numbers<[1], [1], [0], [0], [0, 0, 1, 0], [], []>} : vector<8x8xbf16>, vector<8x8xbf16>, vector<8x8xf32> -> vector<8x8xf32>
    %634 = arith.addf %633, %3 : vector<8x8xf32>
    %cst_211 = arith.constant dense<0xFF800000> : vector<8xf32>
    %635 = vector.multi_reduction <maximumf>, %634, %cst_211 [1] : vector<8x8xf32> to vector<8xf32>
    %636 = vector.shape_cast %635 : vector<8xf32> to vector<8x1xf32>
    %637 = vector.broadcast %636 : vector<8x1xf32> to vector<8x8xf32>
    %638 = arith.subf %634, %637 : vector<8x8xf32>
    %639 = math.exp %638 : vector<8x8xf32>
    %cst_212 = arith.constant dense<0.000000e+00> : vector<8xf32>
    %640 = vector.multi_reduction <add>, %639, %cst_212 [1] : vector<8x8xf32> to vector<8xf32>
    %641 = vector.shape_cast %640 : vector<8xf32> to vector<8x1xf32>
    %642 = tpu.reciprocal %641 {approx = true} : vector<8x1xf32> -> vector<8x1xf32>
    %643 = vector.broadcast %642 : vector<8x1xf32> to vector<8x8xf32>
    %644 = arith.mulf %639, %643 : vector<8x8xf32>
    %645 = arith.truncf %644 : vector<8x8xf32> to vector<8x8xbf16>
    %cst_213 = arith.constant dense<0.000000e+00> : vector<8x8xf32>
    %646 = tpu.matmul %645, %632, %cst_213 {dimension_numbers = #tpu.dot_dimension_numbers<[1], [0], [0], [1], [0, 0, 1, 1], [], []>} : vector<8x8xbf16>, vector<8x8xbf16>, vector<8x8xf32> -> vector<8x8xf32>
    %647 = vector.extract_strided_slice %612 {offsets = [0, 16], sizes = [8, 8], strides = [1, 1]} : vector<8x128xbf16> to vector<8x8xbf16>
    %648 = vector.extract_strided_slice %612 {offsets = [0, 48], sizes = [8, 8], strides = [1, 1]} : vector<8x128xbf16> to vector<8x8xbf16>
    %649 = vector.extract_strided_slice %612 {offsets = [0, 80], sizes = [8, 8], strides = [1, 1]} : vector<8x128xbf16> to vector<8x8xbf16>
    %cst_214 = arith.constant dense<0.000000e+00> : vector<8x8xf32>
    %650 = tpu.matmul %647, %648, %cst_214 {dimension_numbers = #tpu.dot_dimension_numbers<[1], [1], [0], [0], [0, 0, 1, 0], [], []>} : vector<8x8xbf16>, vector<8x8xbf16>, vector<8x8xf32> -> vector<8x8xf32>
    %651 = arith.addf %650, %3 : vector<8x8xf32>
    %cst_215 = arith.constant dense<0xFF800000> : vector<8xf32>
    %652 = vector.multi_reduction <maximumf>, %651, %cst_215 [1] : vector<8x8xf32> to vector<8xf32>
    %653 = vector.shape_cast %652 : vector<8xf32> to vector<8x1xf32>
    %654 = vector.broadcast %653 : vector<8x1xf32> to vector<8x8xf32>
    %655 = arith.subf %651, %654 : vector<8x8xf32>
    %656 = math.exp %655 : vector<8x8xf32>
    %cst_216 = arith.constant dense<0.000000e+00> : vector<8xf32>
    %657 = vector.multi_reduction <add>, %656, %cst_216 [1] : vector<8x8xf32> to vector<8xf32>
    %658 = vector.shape_cast %657 : vector<8xf32> to vector<8x1xf32>
    %659 = tpu.reciprocal %658 {approx = true} : vector<8x1xf32> -> vector<8x1xf32>
    %660 = vector.broadcast %659 : vector<8x1xf32> to vector<8x8xf32>
    %661 = arith.mulf %656, %660 : vector<8x8xf32>
    %662 = arith.truncf %661 : vector<8x8xf32> to vector<8x8xbf16>
    %cst_217 = arith.constant dense<0.000000e+00> : vector<8x8xf32>
    %663 = tpu.matmul %662, %649, %cst_217 {dimension_numbers = #tpu.dot_dimension_numbers<[1], [0], [0], [1], [0, 0, 1, 1], [], []>} : vector<8x8xbf16>, vector<8x8xbf16>, vector<8x8xf32> -> vector<8x8xf32>
    %664 = vector.extract_strided_slice %612 {offsets = [0, 24], sizes = [8, 8], strides = [1, 1]} : vector<8x128xbf16> to vector<8x8xbf16>
    %665 = vector.extract_strided_slice %612 {offsets = [0, 56], sizes = [8, 8], strides = [1, 1]} : vector<8x128xbf16> to vector<8x8xbf16>
    %666 = vector.extract_strided_slice %612 {offsets = [0, 88], sizes = [8, 8], strides = [1, 1]} : vector<8x128xbf16> to vector<8x8xbf16>
    %cst_218 = arith.constant dense<0.000000e+00> : vector<8x8xf32>
    %667 = tpu.matmul %664, %665, %cst_218 {dimension_numbers = #tpu.dot_dimension_numbers<[1], [1], [0], [0], [0, 0, 1, 0], [], []>} : vector<8x8xbf16>, vector<8x8xbf16>, vector<8x8xf32> -> vector<8x8xf32>
    %668 = arith.addf %667, %3 : vector<8x8xf32>
    %cst_219 = arith.constant dense<0xFF800000> : vector<8xf32>
    %669 = vector.multi_reduction <maximumf>, %668, %cst_219 [1] : vector<8x8xf32> to vector<8xf32>
    %670 = vector.shape_cast %669 : vector<8xf32> to vector<8x1xf32>
    %671 = vector.broadcast %670 : vector<8x1xf32> to vector<8x8xf32>
    %672 = arith.subf %668, %671 : vector<8x8xf32>
    %673 = math.exp %672 : vector<8x8xf32>
    %cst_220 = arith.constant dense<0.000000e+00> : vector<8xf32>
    %674 = vector.multi_reduction <add>, %673, %cst_220 [1] : vector<8x8xf32> to vector<8xf32>
    %675 = vector.shape_cast %674 : vector<8xf32> to vector<8x1xf32>
    %676 = tpu.reciprocal %675 {approx = true} : vector<8x1xf32> -> vector<8x1xf32>
    %677 = vector.broadcast %676 : vector<8x1xf32> to vector<8x8xf32>
    %678 = arith.mulf %673, %677 : vector<8x8xf32>
    %679 = arith.truncf %678 : vector<8x8xf32> to vector<8x8xbf16>
    %cst_221 = arith.constant dense<0.000000e+00> : vector<8x8xf32>
    %680 = tpu.matmul %679, %666, %cst_221 {dimension_numbers = #tpu.dot_dimension_numbers<[1], [0], [0], [1], [0, 0, 1, 1], [], []>} : vector<8x8xbf16>, vector<8x8xbf16>, vector<8x8xf32> -> vector<8x8xf32>
    %681 = tpu.concatenate %629, %646, %663, %680 in 1 : vector<8x8xf32>, vector<8x8xf32>, vector<8x8xf32>, vector<8x8xf32> -> vector<8x32xf32>
    %682 = arith.truncf %681 : vector<8x32xf32> to vector<8x32xbf16>
    %c9_222 = arith.constant 9 : index
    %c0_223 = arith.constant 0 : index
    %c0_224 = arith.constant 0 : index
    %683 = vector.load %arg5[%c9_222, %c0_223, %c0_224] : memref<17x32x128xbf16, #tpu.memory_space<vmem>>, vector<1x32x128xbf16>
    %684 = vector.shape_cast %683 : vector<1x32x128xbf16> to vector<32x128xbf16>
    %685 = vector.extract_strided_slice %684 {offsets = [0, 0], sizes = [32, 32], strides = [1, 1]} : vector<32x128xbf16> to vector<32x32xbf16>
    %cst_225 = arith.constant dense<0.000000e+00> : vector<8x32xf32>
    %686 = tpu.matmul %682, %685, %cst_225 {dimension_numbers = #tpu.dot_dimension_numbers<[1], [0], [0], [1], [0, 0, 1, 1], [], []>} : vector<8x32xbf16>, vector<32x32xbf16>, vector<8x32xf32> -> vector<8x32xf32>
    %c21 = arith.constant 21 : index
    %c0_226 = arith.constant 0 : index
    %687 = vector.load %arg7[%c21, %c0_226] : memref<41x128xf32, #tpu.memory_space<vmem>>, vector<1x128xf32>
    %688 = vector.extract_strided_slice %687 {offsets = [0, 0], sizes = [1, 32], strides = [1, 1]} : vector<1x128xf32> to vector<1x32xf32>
    %689 = vector.broadcast %688 : vector<1x32xf32> to vector<8x32xf32>
    %690 = arith.addf %686, %689 : vector<8x32xf32>
    %691 = arith.addf %690, %604 : vector<8x32xf32>
    %c22 = arith.constant 22 : index
    %c0_227 = arith.constant 0 : index
    %692 = vector.load %arg7[%c22, %c0_227] : memref<41x128xf32, #tpu.memory_space<vmem>>, vector<1x128xf32>
    %693 = vector.extract_strided_slice %692 {offsets = [0, 0], sizes = [1, 32], strides = [1, 1]} : vector<1x128xf32> to vector<1x32xf32>
    %c23 = arith.constant 23 : index
    %c0_228 = arith.constant 0 : index
    %694 = vector.load %arg7[%c23, %c0_228] : memref<41x128xf32, #tpu.memory_space<vmem>>, vector<1x128xf32>
    %695 = vector.extract_strided_slice %694 {offsets = [0, 0], sizes = [1, 32], strides = [1, 1]} : vector<1x128xf32> to vector<1x32xf32>
    %cst_229 = arith.constant dense<0.000000e+00> : vector<8xf32>
    %696 = vector.multi_reduction <add>, %691, %cst_229 [1] : vector<8x32xf32> to vector<8xf32>
    %697 = vector.shape_cast %696 : vector<8xf32> to vector<8x1xf32>
    %cst_230 = arith.constant 3.200000e+01 : f32
    %698 = vector.broadcast %cst_230 : f32 to vector<8x1xf32>
    %699 = arith.divf %697, %698 : vector<8x1xf32>
    %700 = vector.broadcast %699 : vector<8x1xf32> to vector<8x32xf32>
    %701 = arith.subf %691, %700 : vector<8x32xf32>
    %702 = arith.mulf %701, %701 : vector<8x32xf32>
    %cst_231 = arith.constant dense<0.000000e+00> : vector<8xf32>
    %703 = vector.multi_reduction <add>, %702, %cst_231 [1] : vector<8x32xf32> to vector<8xf32>
    %704 = vector.shape_cast %703 : vector<8xf32> to vector<8x1xf32>
    %cst_232 = arith.constant 3.200000e+01 : f32
    %705 = vector.broadcast %cst_232 : f32 to vector<8x1xf32>
    %706 = arith.divf %704, %705 : vector<8x1xf32>
    %707 = vector.broadcast %699 : vector<8x1xf32> to vector<8x32xf32>
    %708 = arith.subf %691, %707 : vector<8x32xf32>
    %cst_233 = arith.constant 9.99999974E-6 : f32
    %709 = vector.broadcast %cst_233 : f32 to vector<8x1xf32>
    %710 = arith.addf %706, %709 : vector<8x1xf32>
    %711 = math.rsqrt %710 : vector<8x1xf32>
    %712 = vector.broadcast %711 : vector<8x1xf32> to vector<8x32xf32>
    %713 = arith.mulf %708, %712 : vector<8x32xf32>
    %714 = vector.broadcast %693 : vector<1x32xf32> to vector<8x32xf32>
    %715 = arith.mulf %713, %714 : vector<8x32xf32>
    %716 = vector.broadcast %695 : vector<1x32xf32> to vector<8x32xf32>
    %717 = arith.addf %715, %716 : vector<8x32xf32>
    %718 = arith.truncf %717 : vector<8x32xf32> to vector<8x32xbf16>
    %c32 = arith.constant 32 : index
    %c0_234 = arith.constant 0 : index
    %719 = vector.load %arg7[%c32, %c0_234] : memref<41x128xf32, #tpu.memory_space<vmem>>, vector<1x128xf32>
    %c13_235 = arith.constant 13 : index
    %c0_236 = arith.constant 0 : index
    %c0_237 = arith.constant 0 : index
    %720 = vector.load %arg5[%c13_235, %c0_236, %c0_237] : memref<17x32x128xbf16, #tpu.memory_space<vmem>>, vector<1x32x128xbf16>
    %721 = vector.shape_cast %720 : vector<1x32x128xbf16> to vector<32x128xbf16>
    %cst_238 = arith.constant dense<0.000000e+00> : vector<8x128xf32>
    %722 = tpu.matmul %718, %721, %cst_238 {dimension_numbers = #tpu.dot_dimension_numbers<[1], [0], [0], [1], [0, 0, 1, 1], [], []>} : vector<8x32xbf16>, vector<32x128xbf16>, vector<8x128xf32> -> vector<8x128xf32>
    %723 = vector.broadcast %719 : vector<1x128xf32> to vector<8x128xf32>
    %724 = arith.addf %722, %723 : vector<8x128xf32>
    %725 = arith.truncf %724 : vector<8x128xf32> to vector<8x128xbf16>
    %c13_239 = arith.constant 13 : index
    %c0_240 = arith.constant 0 : index
    %c0_241 = arith.constant 0 : index
    %726 = vector.load %arg5[%c13_239, %c0_240, %c0_241] : memref<17x32x128xbf16, #tpu.memory_space<vmem>>, vector<1x32x128xbf16>
    %727 = vector.shape_cast %726 : vector<1x32x128xbf16> to vector<32x128xbf16>
    %cst_242 = arith.constant dense<0.000000e+00> : vector<12x128xf32>
    %728 = tpu.matmul %324, %727, %cst_242 {dimension_numbers = #tpu.dot_dimension_numbers<[1], [0], [0], [1], [0, 0, 1, 1], [], []>} : vector<12x32xbf16>, vector<32x128xbf16>, vector<12x128xf32> -> vector<12x128xf32>
    %729 = vector.broadcast %719 : vector<1x128xf32> to vector<12x128xf32>
    %730 = arith.addf %728, %729 : vector<12x128xf32>
    %731 = arith.truncf %730 : vector<12x128xf32> to vector<12x128xbf16>
    %732 = vector.shape_cast %1 : vector<1x12xf32> to vector<1x12xf32>
    %733 = vector.broadcast %732 : vector<1x12xf32> to vector<8x12xf32>
    %734 = vector.extract_strided_slice %725 {offsets = [0, 0], sizes = [8, 8], strides = [1, 1]} : vector<8x128xbf16> to vector<8x8xbf16>
    %735 = vector.extract_strided_slice %731 {offsets = [0, 32], sizes = [12, 8], strides = [1, 1]} : vector<12x128xbf16> to vector<12x8xbf16>
    %736 = vector.extract_strided_slice %731 {offsets = [0, 64], sizes = [12, 8], strides = [1, 1]} : vector<12x128xbf16> to vector<12x8xbf16>
    %cst_243 = arith.constant dense<0.000000e+00> : vector<8x12xf32>
    %737 = tpu.matmul %734, %735, %cst_243 {dimension_numbers = #tpu.dot_dimension_numbers<[1], [1], [0], [0], [0, 0, 1, 0], [], []>} : vector<8x8xbf16>, vector<12x8xbf16>, vector<8x12xf32> -> vector<8x12xf32>
    %738 = arith.addf %737, %733 : vector<8x12xf32>
    %cst_244 = arith.constant dense<0xFF800000> : vector<8xf32>
    %739 = vector.multi_reduction <maximumf>, %738, %cst_244 [1] : vector<8x12xf32> to vector<8xf32>
    %740 = vector.shape_cast %739 : vector<8xf32> to vector<8x1xf32>
    %741 = vector.broadcast %740 : vector<8x1xf32> to vector<8x12xf32>
    %742 = arith.subf %738, %741 : vector<8x12xf32>
    %743 = math.exp %742 : vector<8x12xf32>
    %cst_245 = arith.constant dense<0.000000e+00> : vector<8xf32>
    %744 = vector.multi_reduction <add>, %743, %cst_245 [1] : vector<8x12xf32> to vector<8xf32>
    %745 = vector.shape_cast %744 : vector<8xf32> to vector<8x1xf32>
    %746 = tpu.reciprocal %745 {approx = true} : vector<8x1xf32> -> vector<8x1xf32>
    %747 = vector.broadcast %746 : vector<8x1xf32> to vector<8x12xf32>
    %748 = arith.mulf %743, %747 : vector<8x12xf32>
    %749 = arith.truncf %748 : vector<8x12xf32> to vector<8x12xbf16>
    %cst_246 = arith.constant dense<0.000000e+00> : vector<8x8xf32>
    %750 = tpu.matmul %749, %736, %cst_246 {dimension_numbers = #tpu.dot_dimension_numbers<[1], [0], [0], [1], [0, 0, 1, 1], [], []>} : vector<8x12xbf16>, vector<12x8xbf16>, vector<8x8xf32> -> vector<8x8xf32>
    %751 = vector.extract_strided_slice %725 {offsets = [0, 8], sizes = [8, 8], strides = [1, 1]} : vector<8x128xbf16> to vector<8x8xbf16>
    %752 = vector.extract_strided_slice %731 {offsets = [0, 40], sizes = [12, 8], strides = [1, 1]} : vector<12x128xbf16> to vector<12x8xbf16>
    %753 = vector.extract_strided_slice %731 {offsets = [0, 72], sizes = [12, 8], strides = [1, 1]} : vector<12x128xbf16> to vector<12x8xbf16>
    %cst_247 = arith.constant dense<0.000000e+00> : vector<8x12xf32>
    %754 = tpu.matmul %751, %752, %cst_247 {dimension_numbers = #tpu.dot_dimension_numbers<[1], [1], [0], [0], [0, 0, 1, 0], [], []>} : vector<8x8xbf16>, vector<12x8xbf16>, vector<8x12xf32> -> vector<8x12xf32>
    %755 = arith.addf %754, %733 : vector<8x12xf32>
    %cst_248 = arith.constant dense<0xFF800000> : vector<8xf32>
    %756 = vector.multi_reduction <maximumf>, %755, %cst_248 [1] : vector<8x12xf32> to vector<8xf32>
    %757 = vector.shape_cast %756 : vector<8xf32> to vector<8x1xf32>
    %758 = vector.broadcast %757 : vector<8x1xf32> to vector<8x12xf32>
    %759 = arith.subf %755, %758 : vector<8x12xf32>
    %760 = math.exp %759 : vector<8x12xf32>
    %cst_249 = arith.constant dense<0.000000e+00> : vector<8xf32>
    %761 = vector.multi_reduction <add>, %760, %cst_249 [1] : vector<8x12xf32> to vector<8xf32>
    %762 = vector.shape_cast %761 : vector<8xf32> to vector<8x1xf32>
    %763 = tpu.reciprocal %762 {approx = true} : vector<8x1xf32> -> vector<8x1xf32>
    %764 = vector.broadcast %763 : vector<8x1xf32> to vector<8x12xf32>
    %765 = arith.mulf %760, %764 : vector<8x12xf32>
    %766 = arith.truncf %765 : vector<8x12xf32> to vector<8x12xbf16>
    %cst_250 = arith.constant dense<0.000000e+00> : vector<8x8xf32>
    %767 = tpu.matmul %766, %753, %cst_250 {dimension_numbers = #tpu.dot_dimension_numbers<[1], [0], [0], [1], [0, 0, 1, 1], [], []>} : vector<8x12xbf16>, vector<12x8xbf16>, vector<8x8xf32> -> vector<8x8xf32>
    %768 = vector.extract_strided_slice %725 {offsets = [0, 16], sizes = [8, 8], strides = [1, 1]} : vector<8x128xbf16> to vector<8x8xbf16>
    %769 = vector.extract_strided_slice %731 {offsets = [0, 48], sizes = [12, 8], strides = [1, 1]} : vector<12x128xbf16> to vector<12x8xbf16>
    %770 = vector.extract_strided_slice %731 {offsets = [0, 80], sizes = [12, 8], strides = [1, 1]} : vector<12x128xbf16> to vector<12x8xbf16>
    %cst_251 = arith.constant dense<0.000000e+00> : vector<8x12xf32>
    %771 = tpu.matmul %768, %769, %cst_251 {dimension_numbers = #tpu.dot_dimension_numbers<[1], [1], [0], [0], [0, 0, 1, 0], [], []>} : vector<8x8xbf16>, vector<12x8xbf16>, vector<8x12xf32> -> vector<8x12xf32>
    %772 = arith.addf %771, %733 : vector<8x12xf32>
    %cst_252 = arith.constant dense<0xFF800000> : vector<8xf32>
    %773 = vector.multi_reduction <maximumf>, %772, %cst_252 [1] : vector<8x12xf32> to vector<8xf32>
    %774 = vector.shape_cast %773 : vector<8xf32> to vector<8x1xf32>
    %775 = vector.broadcast %774 : vector<8x1xf32> to vector<8x12xf32>
    %776 = arith.subf %772, %775 : vector<8x12xf32>
    %777 = math.exp %776 : vector<8x12xf32>
    %cst_253 = arith.constant dense<0.000000e+00> : vector<8xf32>
    %778 = vector.multi_reduction <add>, %777, %cst_253 [1] : vector<8x12xf32> to vector<8xf32>
    %779 = vector.shape_cast %778 : vector<8xf32> to vector<8x1xf32>
    %780 = tpu.reciprocal %779 {approx = true} : vector<8x1xf32> -> vector<8x1xf32>
    %781 = vector.broadcast %780 : vector<8x1xf32> to vector<8x12xf32>
    %782 = arith.mulf %777, %781 : vector<8x12xf32>
    %783 = arith.truncf %782 : vector<8x12xf32> to vector<8x12xbf16>
    %cst_254 = arith.constant dense<0.000000e+00> : vector<8x8xf32>
    %784 = tpu.matmul %783, %770, %cst_254 {dimension_numbers = #tpu.dot_dimension_numbers<[1], [0], [0], [1], [0, 0, 1, 1], [], []>} : vector<8x12xbf16>, vector<12x8xbf16>, vector<8x8xf32> -> vector<8x8xf32>
    %785 = vector.extract_strided_slice %725 {offsets = [0, 24], sizes = [8, 8], strides = [1, 1]} : vector<8x128xbf16> to vector<8x8xbf16>
    %786 = vector.extract_strided_slice %731 {offsets = [0, 56], sizes = [12, 8], strides = [1, 1]} : vector<12x128xbf16> to vector<12x8xbf16>
    %787 = vector.extract_strided_slice %731 {offsets = [0, 88], sizes = [12, 8], strides = [1, 1]} : vector<12x128xbf16> to vector<12x8xbf16>
    %cst_255 = arith.constant dense<0.000000e+00> : vector<8x12xf32>
    %788 = tpu.matmul %785, %786, %cst_255 {dimension_numbers = #tpu.dot_dimension_numbers<[1], [1], [0], [0], [0, 0, 1, 0], [], []>} : vector<8x8xbf16>, vector<12x8xbf16>, vector<8x12xf32> -> vector<8x12xf32>
    %789 = arith.addf %788, %733 : vector<8x12xf32>
    %cst_256 = arith.constant dense<0xFF800000> : vector<8xf32>
    %790 = vector.multi_reduction <maximumf>, %789, %cst_256 [1] : vector<8x12xf32> to vector<8xf32>
    %791 = vector.shape_cast %790 : vector<8xf32> to vector<8x1xf32>
    %792 = vector.broadcast %791 : vector<8x1xf32> to vector<8x12xf32>
    %793 = arith.subf %789, %792 : vector<8x12xf32>
    %794 = math.exp %793 : vector<8x12xf32>
    %cst_257 = arith.constant dense<0.000000e+00> : vector<8xf32>
    %795 = vector.multi_reduction <add>, %794, %cst_257 [1] : vector<8x12xf32> to vector<8xf32>
    %796 = vector.shape_cast %795 : vector<8xf32> to vector<8x1xf32>
    %797 = tpu.reciprocal %796 {approx = true} : vector<8x1xf32> -> vector<8x1xf32>
    %798 = vector.broadcast %797 : vector<8x1xf32> to vector<8x12xf32>
    %799 = arith.mulf %794, %798 : vector<8x12xf32>
    %800 = arith.truncf %799 : vector<8x12xf32> to vector<8x12xbf16>
    %cst_258 = arith.constant dense<0.000000e+00> : vector<8x8xf32>
    %801 = tpu.matmul %800, %787, %cst_258 {dimension_numbers = #tpu.dot_dimension_numbers<[1], [0], [0], [1], [0, 0, 1, 1], [], []>} : vector<8x12xbf16>, vector<12x8xbf16>, vector<8x8xf32> -> vector<8x8xf32>
    %802 = tpu.concatenate %750, %767, %784, %801 in 1 : vector<8x8xf32>, vector<8x8xf32>, vector<8x8xf32>, vector<8x8xf32> -> vector<8x32xf32>
    %803 = arith.truncf %802 : vector<8x32xf32> to vector<8x32xbf16>
    %c14_259 = arith.constant 14 : index
    %c0_260 = arith.constant 0 : index
    %c0_261 = arith.constant 0 : index
    %804 = vector.load %arg5[%c14_259, %c0_260, %c0_261] : memref<17x32x128xbf16, #tpu.memory_space<vmem>>, vector<1x32x128xbf16>
    %805 = vector.shape_cast %804 : vector<1x32x128xbf16> to vector<32x128xbf16>
    %806 = vector.extract_strided_slice %805 {offsets = [0, 0], sizes = [32, 32], strides = [1, 1]} : vector<32x128xbf16> to vector<32x32xbf16>
    %cst_262 = arith.constant dense<0.000000e+00> : vector<8x32xf32>
    %807 = tpu.matmul %803, %806, %cst_262 {dimension_numbers = #tpu.dot_dimension_numbers<[1], [0], [0], [1], [0, 0, 1, 1], [], []>} : vector<8x32xbf16>, vector<32x32xbf16>, vector<8x32xf32> -> vector<8x32xf32>
    %c33 = arith.constant 33 : index
    %c0_263 = arith.constant 0 : index
    %808 = vector.load %arg7[%c33, %c0_263] : memref<41x128xf32, #tpu.memory_space<vmem>>, vector<1x128xf32>
    %809 = vector.extract_strided_slice %808 {offsets = [0, 0], sizes = [1, 32], strides = [1, 1]} : vector<1x128xf32> to vector<1x32xf32>
    %810 = vector.broadcast %809 : vector<1x32xf32> to vector<8x32xf32>
    %811 = arith.addf %807, %810 : vector<8x32xf32>
    %812 = arith.addf %811, %717 : vector<8x32xf32>
    %c34 = arith.constant 34 : index
    %c0_264 = arith.constant 0 : index
    %813 = vector.load %arg7[%c34, %c0_264] : memref<41x128xf32, #tpu.memory_space<vmem>>, vector<1x128xf32>
    %814 = vector.extract_strided_slice %813 {offsets = [0, 0], sizes = [1, 32], strides = [1, 1]} : vector<1x128xf32> to vector<1x32xf32>
    %c35 = arith.constant 35 : index
    %c0_265 = arith.constant 0 : index
    %815 = vector.load %arg7[%c35, %c0_265] : memref<41x128xf32, #tpu.memory_space<vmem>>, vector<1x128xf32>
    %816 = vector.extract_strided_slice %815 {offsets = [0, 0], sizes = [1, 32], strides = [1, 1]} : vector<1x128xf32> to vector<1x32xf32>
    %cst_266 = arith.constant dense<0.000000e+00> : vector<8xf32>
    %817 = vector.multi_reduction <add>, %812, %cst_266 [1] : vector<8x32xf32> to vector<8xf32>
    %818 = vector.shape_cast %817 : vector<8xf32> to vector<8x1xf32>
    %cst_267 = arith.constant 3.200000e+01 : f32
    %819 = vector.broadcast %cst_267 : f32 to vector<8x1xf32>
    %820 = arith.divf %818, %819 : vector<8x1xf32>
    %821 = vector.broadcast %820 : vector<8x1xf32> to vector<8x32xf32>
    %822 = arith.subf %812, %821 : vector<8x32xf32>
    %823 = arith.mulf %822, %822 : vector<8x32xf32>
    %cst_268 = arith.constant dense<0.000000e+00> : vector<8xf32>
    %824 = vector.multi_reduction <add>, %823, %cst_268 [1] : vector<8x32xf32> to vector<8xf32>
    %825 = vector.shape_cast %824 : vector<8xf32> to vector<8x1xf32>
    %cst_269 = arith.constant 3.200000e+01 : f32
    %826 = vector.broadcast %cst_269 : f32 to vector<8x1xf32>
    %827 = arith.divf %825, %826 : vector<8x1xf32>
    %828 = vector.broadcast %820 : vector<8x1xf32> to vector<8x32xf32>
    %829 = arith.subf %812, %828 : vector<8x32xf32>
    %cst_270 = arith.constant 9.99999974E-6 : f32
    %830 = vector.broadcast %cst_270 : f32 to vector<8x1xf32>
    %831 = arith.addf %827, %830 : vector<8x1xf32>
    %832 = math.rsqrt %831 : vector<8x1xf32>
    %833 = vector.broadcast %832 : vector<8x1xf32> to vector<8x32xf32>
    %834 = arith.mulf %829, %833 : vector<8x32xf32>
    %835 = vector.broadcast %814 : vector<1x32xf32> to vector<8x32xf32>
    %836 = arith.mulf %834, %835 : vector<8x32xf32>
    %837 = vector.broadcast %816 : vector<1x32xf32> to vector<8x32xf32>
    %838 = arith.addf %836, %837 : vector<8x32xf32>
    %839 = arith.truncf %838 : vector<8x32xf32> to vector<8x32xbf16>
    %c15_271 = arith.constant 15 : index
    %c0_272 = arith.constant 0 : index
    %c0_273 = arith.constant 0 : index
    %840 = vector.load %arg5[%c15_271, %c0_272, %c0_273] : memref<17x32x128xbf16, #tpu.memory_space<vmem>>, vector<1x32x128xbf16>
    %841 = vector.shape_cast %840 : vector<1x32x128xbf16> to vector<32x128xbf16>
    %cst_274 = arith.constant dense<0.000000e+00> : vector<8x128xf32>
    %842 = tpu.matmul %839, %841, %cst_274 {dimension_numbers = #tpu.dot_dimension_numbers<[1], [0], [0], [1], [0, 0, 1, 1], [], []>} : vector<8x32xbf16>, vector<32x128xbf16>, vector<8x128xf32> -> vector<8x128xf32>
    %c36 = arith.constant 36 : index
    %c0_275 = arith.constant 0 : index
    %843 = vector.load %arg7[%c36, %c0_275] : memref<41x128xf32, #tpu.memory_space<vmem>>, vector<1x128xf32>
    %844 = vector.broadcast %843 : vector<1x128xf32> to vector<8x128xf32>
    %845 = arith.addf %842, %844 : vector<8x128xf32>
    %cst_276 = arith.constant 0.000000e+00 : f32
    %846 = vector.broadcast %cst_276 : f32 to vector<8x128xf32>
    %847 = arith.maximumf %845, %846 : vector<8x128xf32>
    %848 = arith.truncf %847 : vector<8x128xf32> to vector<8x128xbf16>
    %c3_277 = arith.constant 3 : index
    %c0_278 = arith.constant 0 : index
    %c0_279 = arith.constant 0 : index
    %849 = vector.load %arg6[%c3_277, %c0_278, %c0_279] : memref<4x128x32xbf16, #tpu.memory_space<vmem>>, vector<1x128x32xbf16>
    %850 = vector.shape_cast %849 : vector<1x128x32xbf16> to vector<128x32xbf16>
    %cst_280 = arith.constant dense<0.000000e+00> : vector<8x32xf32>
    %851 = tpu.matmul %848, %850, %cst_280 {dimension_numbers = #tpu.dot_dimension_numbers<[1], [0], [0], [1], [0, 0, 1, 1], [], []>} : vector<8x128xbf16>, vector<128x32xbf16>, vector<8x32xf32> -> vector<8x32xf32>
    %c37 = arith.constant 37 : index
    %c0_281 = arith.constant 0 : index
    %852 = vector.load %arg7[%c37, %c0_281] : memref<41x128xf32, #tpu.memory_space<vmem>>, vector<1x128xf32>
    %853 = vector.extract_strided_slice %852 {offsets = [0, 0], sizes = [1, 32], strides = [1, 1]} : vector<1x128xf32> to vector<1x32xf32>
    %854 = vector.broadcast %853 : vector<1x32xf32> to vector<8x32xf32>
    %855 = arith.addf %851, %854 : vector<8x32xf32>
    %856 = arith.addf %855, %838 : vector<8x32xf32>
    %c38 = arith.constant 38 : index
    %c0_282 = arith.constant 0 : index
    %857 = vector.load %arg7[%c38, %c0_282] : memref<41x128xf32, #tpu.memory_space<vmem>>, vector<1x128xf32>
    %858 = vector.extract_strided_slice %857 {offsets = [0, 0], sizes = [1, 32], strides = [1, 1]} : vector<1x128xf32> to vector<1x32xf32>
    %c39 = arith.constant 39 : index
    %c0_283 = arith.constant 0 : index
    %859 = vector.load %arg7[%c39, %c0_283] : memref<41x128xf32, #tpu.memory_space<vmem>>, vector<1x128xf32>
    %860 = vector.extract_strided_slice %859 {offsets = [0, 0], sizes = [1, 32], strides = [1, 1]} : vector<1x128xf32> to vector<1x32xf32>
    %cst_284 = arith.constant dense<0.000000e+00> : vector<8xf32>
    %861 = vector.multi_reduction <add>, %856, %cst_284 [1] : vector<8x32xf32> to vector<8xf32>
    %862 = vector.shape_cast %861 : vector<8xf32> to vector<8x1xf32>
    %cst_285 = arith.constant 3.200000e+01 : f32
    %863 = vector.broadcast %cst_285 : f32 to vector<8x1xf32>
    %864 = arith.divf %862, %863 : vector<8x1xf32>
    %865 = vector.broadcast %864 : vector<8x1xf32> to vector<8x32xf32>
    %866 = arith.subf %856, %865 : vector<8x32xf32>
    %867 = arith.mulf %866, %866 : vector<8x32xf32>
    %cst_286 = arith.constant dense<0.000000e+00> : vector<8xf32>
    %868 = vector.multi_reduction <add>, %867, %cst_286 [1] : vector<8x32xf32> to vector<8xf32>
    %869 = vector.shape_cast %868 : vector<8xf32> to vector<8x1xf32>
    %cst_287 = arith.constant 3.200000e+01 : f32
    %870 = vector.broadcast %cst_287 : f32 to vector<8x1xf32>
    %871 = arith.divf %869, %870 : vector<8x1xf32>
    %872 = vector.broadcast %864 : vector<8x1xf32> to vector<8x32xf32>
    %873 = arith.subf %856, %872 : vector<8x32xf32>
    %cst_288 = arith.constant 9.99999974E-6 : f32
    %874 = vector.broadcast %cst_288 : f32 to vector<8x1xf32>
    %875 = arith.addf %871, %874 : vector<8x1xf32>
    %876 = math.rsqrt %875 : vector<8x1xf32>
    %877 = vector.broadcast %876 : vector<8x1xf32> to vector<8x32xf32>
    %878 = arith.mulf %873, %877 : vector<8x32xf32>
    %879 = vector.broadcast %858 : vector<1x32xf32> to vector<8x32xf32>
    %880 = arith.mulf %878, %879 : vector<8x32xf32>
    %881 = vector.broadcast %860 : vector<1x32xf32> to vector<8x32xf32>
    %882 = arith.addf %880, %881 : vector<8x32xf32>
    %883 = arith.truncf %882 : vector<8x32xf32> to vector<8x32xbf16>
    %c16_289 = arith.constant 16 : index
    %c0_290 = arith.constant 0 : index
    %c0_291 = arith.constant 0 : index
    %884 = vector.load %arg5[%c16_289, %c0_290, %c0_291] : memref<17x32x128xbf16, #tpu.memory_space<vmem>>, vector<1x32x128xbf16>
    %885 = vector.shape_cast %884 : vector<1x32x128xbf16> to vector<32x128xbf16>
    %cst_292 = arith.constant dense<0.000000e+00> : vector<8x128xf32>
    %886 = tpu.matmul %883, %885, %cst_292 {dimension_numbers = #tpu.dot_dimension_numbers<[1], [0], [0], [1], [0, 0, 1, 1], [], []>} : vector<8x32xbf16>, vector<32x128xbf16>, vector<8x128xf32> -> vector<8x128xf32>
    %c40 = arith.constant 40 : index
    %c0_293 = arith.constant 0 : index
    %887 = vector.load %arg7[%c40, %c0_293] : memref<41x128xf32, #tpu.memory_space<vmem>>, vector<1x128xf32>
    %888 = vector.broadcast %887 : vector<1x128xf32> to vector<8x128xf32>
    %889 = arith.addf %886, %888 : vector<8x128xf32>
    %c0_294 = arith.constant 0 : index
    %c0_295 = arith.constant 0 : index
    %c0_296 = arith.constant 0 : index
    %890 = vector.load %arg8[%c0_294, %c0_295, %c0_296] : memref<1x8x128xf32, #tpu.memory_space<vmem>>, vector<1x8x128xf32>
    %891 = vector.shape_cast %890 : vector<1x8x128xf32> to vector<8x128xf32>
    %892 = vector.shape_cast %889 : vector<8x128xf32> to vector<1x8x128xf32>
    tpu.vector_store %arg8[%c0_294, %c0_295, %c0_296], %892 {strides = array<i32>} : memref<1x8x128xf32, #tpu.memory_space<vmem>>, vector<1x8x128xf32>,
    return
  }
  func.func @transform_0(%arg0: i32) -> (i32, i32, i32) {
    %c0_i32 = arith.constant 0 : i32
    %c0_i32_0 = arith.constant 0 : i32
    %c0_i32_1 = arith.constant 0 : i32
    return %arg0, %c0_i32, %c0_i32_0 : i32, i32, i32
  }
  func.func @transform_1(%arg0: i32) -> (i32, i32, i32) {
    %c0_i32 = arith.constant 0 : i32
    %c0_i32_0 = arith.constant 0 : i32
    %c0_i32_1 = arith.constant 0 : i32
    return %arg0, %c0_i32, %c0_i32_0 : i32, i32, i32
  }
  func.func @transform_2(%arg0: i32) -> (i32, i32, i32) {
    %c0_i32 = arith.constant 0 : i32
    %c0_i32_0 = arith.constant 0 : i32
    %c0_i32_1 = arith.constant 0 : i32
    return %arg0, %c0_i32, %c0_i32_0 : i32, i32, i32
  }
  func.func @transform_3(%arg0: i32) -> (i32, i32, i32) {
    %c0_i32 = arith.constant 0 : i32
    %c0_i32_0 = arith.constant 0 : i32
    %c0_i32_1 = arith.constant 0 : i32
    return %arg0, %c0_i32, %c0_i32_0 : i32, i32, i32
  }
  func.func @transform_4(%arg0: i32) -> (i32, i32, i32) {
    %c0_i32 = arith.constant 0 : i32
    %c0_i32_0 = arith.constant 0 : i32
    %c0_i32_1 = arith.constant 0 : i32
    %c0_i32_2 = arith.constant 0 : i32
    return %c0_i32, %c0_i32_0, %c0_i32_1 : i32, i32, i32
  }
  func.func @transform_5(%arg0: i32) -> (i32, i32, i32) {
    %c0_i32 = arith.constant 0 : i32
    %c0_i32_0 = arith.constant 0 : i32
    %c0_i32_1 = arith.constant 0 : i32
    %c0_i32_2 = arith.constant 0 : i32
    return %c0_i32, %c0_i32_0, %c0_i32_1 : i32, i32, i32
  }
  func.func @transform_6(%arg0: i32) -> (i32, i32) {
    %c0_i32 = arith.constant 0 : i32
    %c0_i32_0 = arith.constant 0 : i32
    %c0_i32_1 = arith.constant 0 : i32
    return %c0_i32, %c0_i32_0 : i32, i32
  }
  func.func @transform_7(%arg0: i32) -> (i32, i32, i32) {
    %c0_i32 = arith.constant 0 : i32
    %c0_i32_0 = arith.constant 0 : i32
    %c0_i32_1 = arith.constant 0 : i32
    return %arg0, %c0_i32, %c0_i32_0 : i32, i32, i32
  }
}

</mosaic_0001>

<bundles_post_ra>
// kernel: wmt_forward.1
= control target key start
LH: loop header
LB: loop body
LE: loop exit
PB: predicated region body
PF: predicated region fallthrough
CT: control target
= control target key end

     0   :  { %s5345_s0 = inlined_call_operand.vmem [shape: f32[2,12,32], index: 0, kind: input, shape index: {}]   ;;  %s5346_s1 = inlined_call_operand.vmem [shape: f32[2,8,32], index: 1, kind: input, shape index: {}]   ;;  %s5347_s2 = inlined_call_operand.vmem [shape: f32[2,1,12], index: 2, kind: input, shape index: {}]   ;;  %s5348_s3 = inlined_call_operand.vmem [shape: f32[2,8,8], index: 3, kind: input, shape index: {}]   ;;  %s5349_s4 = inlined_call_operand.vmem [shape: bf16[17,32,128], index: 4, kind: input, shape index: {}]   ;;  %s5350_s5 = inlined_call_operand.vmem [shape: bf16[4,128,32], index: 5, kind: input, shape index: {}]   ;;  %s5351_s6 = inlined_call_operand.vmem [shape: f32[41,128], index: 6, kind: input, shape index: {}]   ;;  %s5352_s7 = inlined_call_operand.hbm [shape: f32[2,8,128], index: 7, kind: output, shape index: {}]  }
   0x1   :  { %5391 = sst [smem:[#allocation12_spill]] %s5345_s0 }
   0x2   :  { %5392 = sst [smem:[#allocation13_spill]] %s5346_s1 }
   0x3   :  { %5393 = sst [smem:[#allocation14_spill]] %s5347_s2 }
   0x4   :  { %5394 = sst [smem:[#allocation15_spill]] %s5348_s3 }
   0x5   :  { %5395 = sst [smem:[#allocation16_spill]] %s5352_s7 }
   0x6   :  { %12 = vsyncpa [#allocation3], 0 }
   0x7   :  { %14 = vsyncpa [#allocation3 + $0x1], 0  ;;  %s4357_s24 = smov 0   ;;  %s4359_s25 = smov 0  }
   0x8   :  { %s4361_s26 = smov 0   ;;  %s4363_s27 = smov 0  }
   0x9 LB: > { %5396 = sst [smem:[#allocation5_spill]] %s4288_s24  ;;  %s4378_s28 = sadd.s32 4294967295, %s4300_s27   ;;  %s4300_s27 = sphi %s4363_s27, %s5429_s27   ;;  %s4296_s26 = sphi %s4361_s26, %s5434_s26   ;;  %s4292_s25 = sphi %s4359_s25, %s5433_s25   ;;  %s4288_s24 = sphi %s4357_s24, %s5432_s24  }
   0xa   : > { %5397 = sst [smem:[#allocation6_spill]] %s4296_s26  ;;  %s3429_s29 = sadd.s32 4294967294, %s4300_s27  }
   0xb   : > { %5398 = sst [smem:[#allocation7_spill]] %s4300_s27  ;;  %s4382_s30 = sadd.s32 1, %s4300_s27  }
   0xc   : > { %5399 = sst [smem:[#allocation8_spill]] %s4382_s30  ;;  %s194_s8 = sadd.s32 1, %s4296_s26 }
   0xd   : > { %s191_s9 = ssub.s32 %s4300_s27, %s4382_s30  ;;  %p204_p0 = scmp.ne.s32.totalorder %s4296_s26, %s4292_s25 }
   0xe   : > { %p192_p1 = scmp.eq.s32.totalorder %s191_s9, 0  ;;  %p205_p2 = scmp.eq.s32.totalorder %s4378_s28, 1 }
   0xf   : > { %p210_p3 = scmp.ne.s32.totalorder %s4292_s25, %s4288_s24  ;;  %p211_p4 = scmp.eq.s32.totalorder %s3429_s29, 1 }
  0x10   : > { %s4393_s10 = scalar_select %p192_p1, %s4296_s26, %s194_s8  }
  0x11   : > { %p4395_p5 = por %p205_p2, %p204_p0  ;;  %p4399_p6 = por %p211_p4, %p210_p3 }
  0x12   : > { %5400 = sst [smem:[#allocation9_spill]] %s4393_s10  ;;  %p3432_p7 = scmp.ge.s32.totalorder %s4300_s27, 1 }
  0x13   : > { %s5401_s11 = scalar_select %p4395_p5, 1, 0 }
  0x14   : > { %s5403_s12 = scalar_select %p4399_p6, 1, 0 }
  0x15   : > { %5402 = sst [smem:[#allocation10_spill]] %s5401_s11  ;;  %p266_p8 = scmp.lt.s32.totalorder %s4300_s27, 3 }
  0x16   : > { %5404 = sst [smem:[#allocation11_spill]] %s5403_s12 }
  0x17   : > { %p267_p9 = pnand %p3432_p7, %p266_p8 }
  0x18   : > { %p309_p10 = scmp.lt.s32.totalorder (!%p267_p9), %s4378_s28, 1  ;;  %s5405_s2 = sld [smem:[#allocation14_spill]] (!%p267_p9) }
  0x19   : > { %270 = sbr.rel (%p267_p9) target bundleno = 10423 (0x28b7), region = 48  ;;  %s5406_s0 = sld [smem:[#allocation12_spill]] (!%p267_p9) }
  0x1a   : > { %s5359_s13 = smov (!%p267_p9), 104   ;;  %s5379_s14 = smov (!%p267_p9), 96  }
  0x1b   : > { %s5371_s15 = smov (!%p267_p9), 88   ;;  %s5377_s16 = smov (!%p267_p9), 80  }
  0x1c   : > { %s5375_s19 = smov (!%p267_p9), 120   ;;  %s5373_s20 = smov (!%p267_p9), 112  }
  0x1d   : > { %s5369_s22 = smov (!%p267_p9), 64   ;;  %s5353_s23 = smov (!%p267_p9), 40  }
  0x1e   : > { %v3887_v0 = vld [vmem:[%s5349_s4 + $0x8] sm:$0xff]  ;;  %v3886_v1 = vld [vmem:[%s5349_s4] sm:$0xff]  ;;  %s4413_s17 = scalar_select %p309_p10, %s4378_s28, 1  ;;  %vm349_vm0 = vcmask 261120   ;;  %vm379_vm1 = vcmask 64512   ;;  %vm400_vm2 = vcmask 97280  }
  0x1f   : > { %359 = vmatpush.bf16.msra.mxu0 %v3887_v0  ;;  %v4037_v6 = vld [vmem:[%s5351_s6] ss:$0 sm:$0xff]  ;;  %vm404_vm3 = vcmask 93184   ;;  %s5355_s8 = smov 48   ;;  %vm430_vm4 = vcmask 1045504   ;;  %s5361_s9 = smov 8  }
  0x20   : > { %s3885_s18 = sshll.u32 %s4413_s17, 4  ;;  %s4420_s21 = scalar_lea.vmem %s5405_s2, %s4413_s17  ;;  %vm681_vm5 = vcmask 130048   ;;  %vm684_vm6 = vcmask 195584   ;;  %vm731_vm7 = vcmask 257024  }
  0x21   : > { %s313_s29 = scalar_lea.vmem %s5406_s0, %s3885_s18  ;;  %s5363_s18 = smov 72   ;;  %v4461_v26 = vld [vmem:[%s4420_s21] ss:$0 sm:$0xff] }
  0x22   : > { %v4425_v2 = vld [vmem:[%s313_s29] sm:$0xff]  ;;  %v4427_v3 = vld [vmem:[%s313_s29 + $0x8] sm:$0xf]  ;;  %s5357_s29 = smov 56   ;;  %s5382_s2 = sshll.u32 %s4413_s17, 3 }
  0x23   : > { %360 = vmatpush.bf16.msra.mxu0 %v3886_v1  ;;  %v330_v4 = vpack.c.bf16 %v4427_v3, %v4425_v2  ;;  %s5416_s1 = sld [smem:[#allocation13_spill]]  ;;  %s5417_s0 = smov 16  }
  0x24   : > { %s5419_s10 = smov 96   ;;  %s5420_s30 = sshll.u32 %s4413_s17, 3 }
  0x25   : > { %s5421_s3 = sld [smem:[#allocation15_spill]]  ;;  %s5422_s17 = smov 80  }
  0x26   : > { %3446 = vmatmul.msk.bf16.vlgmr.msra.gmra.mxu0 %vm349_vm0, %v330_v4 }
  0xa3   : > { %v362_v5 = vpop.f32.mrf.mxu0 }
  0xa4   : > { %v363_v7 = vadd.f32 %v4037_v6, %v362_v5 }
  0xa6   : > { %v367_v9 = vpack.c.bf16 %v363_v7, %v363_v7 }
  0xa8   : > { %v374_v12 = vunpack.c.l.b16 %v367_v9 }
  0xab   : > { %v364_v8 = vpop.f32.mrf.mxu0 }
  0xac   : > { %v365_v10 = vadd.f32 %v4037_v6, %v364_v8 }
  0xae   : > { %v368_v11 = vpack.c.bf16 %v365_v10, %v365_v10 }
  0xb0   : > { %v375_v13 = vunpack.c.l.b16 %v368_v11 }
  0xb2   : > { %v4435_v14 = vpack.c.b16 %v375_v13, %v374_v12 }
  0xb4   : > { %586 = vrot.lane.b32.xlu2 %v4435_v14, %s5359_s13  ;;  %377 = vrot.lane.b32.xlu1 %v4435_v14, %s5379_s14  ;;  %s5410_s13 = smov 72  }
  0xb5   : > { %450 = vrot.lane.b32.xlu0 %v4435_v14, %s5371_s15  ;;  %s5413_s15 = smov 48  }
  0xbc   : > { %519 = vrot.lane.b32.xlu2 %v4435_v14, %s5377_s16  ;;  %588 = vrot.lane.b32.xlu1 %v4435_v14, %s5363_s18  ;;  %s5411_s18 = smov 104  }
  0xbd   : > { %448 = vrot.lane.b32.xlu0 %v4435_v14, %s5375_s19 }
  0xc5   : > { %517 = vrot.lane.b32.xlu0 %v4435_v14, %s5373_s20  ;;  %s5415_s20 = smov 8  }
 0x10e   : > { %v587_v15 = vpop.permute.xlu2 %586 }
 0x116   : > { %v520_v16 = vpop.permute.xlu2 %519 }
 0x117   : > { %v525_v17 = vsel %vm379_vm1, %v520_v16, 0 }
 0x118   : > { %534 = vmatpush.bf16.xpose.msrb.mxu0 %v525_v17 }
 0x126   : > { %v378_v18 = vpop.permute.xlu1 %377 }
 0x127   : > { %v451_v19 = vpop.permute.xlu0 %450  ;;  %v384_v20 = vsel %vm379_vm1, %v378_v18, 0 }
 0x128   : > { %393 = vmatpush.bf16.xpose.msra.mxu1 %v384_v20  ;;  %v456_v21 = vsel %vm379_vm1, %v451_v19, 0 }
 0x129   : > { %465 = vmatpush.bf16.xpose.msra.mxu3 %v456_v21 }
 0x12e   : > { %v589_v22 = vpop.permute.xlu1 %588 }
 0x12f   : > { %v449_v23 = vpop.permute.xlu0 %448  ;;  %3447 = vmatmul.msk.bf16.vlgmr.msra.gmra.mxu1 %vm379_vm1, %v4435_v14  ;;  %v594_v24 = vsel %vm379_vm1, %v589_v22, 0 }
 0x130   : > { %3449 = vmatmul.msk.bf16.vlgmr.msra.gmra.mxu3 %vm379_vm1, %v449_v23 }
 0x131   : > { %603 = vmatpush.bf16.xpose.msrb.mxu3 %v594_v24 }
 0x137   : > { %v518_v25 = vpop.permute.xlu0 %517 }
 0x138   : > { %3451 = vmatmul.msk.bf16.vlgmr.msrb.gmra.mxu0 %vm379_vm1, %v518_v25 }
 0x140   : > { %3453 = vmatmul.msk.bf16.vlgmr.msrb.gmra.mxu3 %vm379_vm1, %v587_v15 }
 0x1ac   : > { %v395_v27 = vpop.f32.mrf.mxu1 }
 0x1ad   : > { %v396_v28 = vadd.f32 %v4461_v26, %v395_v27 }
 0x1af   : > { %v401_v29 = vsel %vm400_vm2, %v396_v28, -inf }
 0x1b0   : > { %402 = vmax.xlane.f32.xlu0 %v401_v29 }
 0x1b3   : > { %v467_v30 = vpop.f32.mrf.mxu3 }
 0x1b4   : > { %v468_v31 = vadd.f32 %v4461_v26, %v467_v30  ;;  %v397_v32 = vpop.f32.mrf.mxu1 }
 0x1b5   : > { %v398_v33 = vadd.f32 %v4461_v26, %v397_v32  ;;  %v536_v34 = vpop.f32.mrf.mxu0 }
 0x1b6   : > { %v4468_v35 = vadd.f32 %v4461_v26, %v536_v34  ;;  %v472_v36 = vsel %vm400_vm2, %v468_v31, -inf }
 0x1b7   : > { %473 = vmax.xlane.f32.xlu1 %v472_v36  ;;  %v405_v37 = vsel %vm404_vm3, %v398_v33, -inf }
 0x1b8   : > { %406 = vmax.xlane.f32.xlu2 %v405_v37  ;;  %v541_v38 = vsel %vm400_vm2, %v4468_v35, -inf }
 0x1b9   : > { %542 = vmax.xlane.f32.xlu0 %v541_v38 }
 0x1bb   : > { %v469_v39 = vpop.f32.mrf.mxu3 }
 0x1bc   : > { %v470_v40 = vadd.f32 %v4461_v26, %v469_v39 }
 0x1bd   : > { %v538_v41 = vpop.f32.mrf.mxu0 }
 0x1be   : > { %v539_v42 = vadd.f32 %v4461_v26, %v538_v41  ;;  %v475_v43 = vsel %vm404_vm3, %v470_v40, -inf }
 0x1c0   : > { %476 = vmax.xlane.f32.xlu2 %v475_v43  ;;  %v544_v44 = vsel %vm404_vm3, %v539_v42, -inf }
 0x1c1   : > { %545 = vmax.xlane.f32.xlu1 %v544_v44 }
 0x1c3   : > { %v605_v45 = vpop.f32.mrf.mxu3 }
 0x1c4   : > { %v606_v46 = vadd.f32 %v4461_v26, %v605_v45 }
 0x1c6   : > { %v610_v47 = vsel %vm400_vm2, %v606_v46, -inf }
 0x1c9   : > { %611 = vmax.xlane.f32.xlu1 %v610_v47 }
 0x1cb   : > { %v607_v48 = vpop.f32.mrf.mxu3 }
 0x1cc   : > { %v608_v49 = vadd.f32 %v4461_v26, %v607_v48 }
 0x1ce   : > { %v613_v50 = vsel %vm404_vm3, %v608_v49, -inf }
 0x1cf   : > { %614 = vmax.xlane.f32.xlu2 %v613_v50 }
 0x223   : > { %v403_v51 = vpop.xlane.xlu0 %402 }
 0x224   : > { %v408_v52 = vsub.f32 %v396_v28, %v403_v51 }
 0x226   : > { %v410_v53 = vmul.f32 1.442695, %v408_v52 }
 0x228   : > { %4078 = vpow2.f32 %v410_v53 }
 0x22a   : > { %v474_v54 = vpop.xlane.xlu1 %473 }
 0x22b   : > { %v478_v55 = vsub.f32 %v468_v31, %v474_v54  ;;  %v407_v56 = vpop.xlane.xlu2 %406 }
 0x22c   : > { %v409_v58 = vsub.f32 %v398_v33, %v407_v56  ;;  %v543_v25 = vpop.xlane.xlu0 %542 }
 0x22d   : > { %v480_v57 = vmul.f32 1.442695, %v478_v55  ;;  %v547_v27 = vsub.f32 %v4468_v35, %v543_v25 }
 0x22e   : > { %v4482_v59 = vpop.eup %4078  ;;  %v412_v61 = vmul.f32 1.442695, %v409_v58 }
 0x22f   : > { %4080 = vpow2.f32 %v480_v57  ;;  %v414_v60 = vsel %vm400_vm2, %v4482_v59, 0.0  ;;  %v549_v28 = vmul.f32 1.442695, %v547_v27 }
 0x230   : > { %415 = vadd.xlane.f32.xlu1 %v414_v60  ;;  %4082 = vpow2.f32 %v412_v61 }
 0x233   : > { %v477_v62 = vpop.xlane.xlu2 %476 }
 0x234   : > { %v479_v63 = vsub.f32 %v470_v40, %v477_v62  ;;  %v546_v0 = vpop.xlane.xlu1 %545 }
 0x235   : > { %v4486_v1 = vpop.eup %4080  ;;  %v548_v4 = vsub.f32 %v539_v42, %v546_v0 }
 0x236   : > { %v482_v5 = vmul.f32 1.442695, %v479_v63  ;;  %v484_v6 = vsel %vm400_vm2, %v4486_v1, 0.0  ;;  %v4083_v8 = vpop.eup %4082 }
 0x237   : > { %485 = vadd.xlane.f32.xlu2 %v484_v6  ;;  %v551_v7 = vmul.f32 1.442695, %v548_v4  ;;  %v417_v12 = vsel %vm404_vm3, %v4083_v8, 0.0 }
 0x238   : > { %4084 = vpow2.f32 %v482_v5 }
 0x239   : > { %4086 = vpow2.f32 %v551_v7 }
 0x23c   : > { %v612_v9 = vpop.xlane.xlu1 %611 }
 0x23d   : > { %v616_v10 = vsub.f32 %v606_v46, %v612_v9 }
 0x23e   : > { %v4085_v11 = vpop.eup %4084 }
 0x23f   : > { %418 = vadd.xlane.f32.xlu2 %v417_v12  ;;  %v487_v13 = vsel %vm404_vm3, %v4085_v11, 0.0  ;;  %v618_v15 = vmul.f32 1.442695, %v616_v10  ;;  %v4492_v17 = vpop.eup %4086 }
 0x240   : > { %488 = vadd.xlane.f32.xlu0 %v487_v13  ;;  %v556_v19 = vsel %vm404_vm3, %v4492_v17, 0.0 }
 0x241   : > { %4088 = vpow2.f32 %v618_v15 }
 0x242   : > { %v615_v16 = vpop.xlane.xlu2 %614 }
 0x243   : > { %v617_v18 = vsub.f32 %v608_v49, %v615_v16  ;;  %v3889_v16 = vld [vmem:[%s5349_s4 + $0x18] sm:$0xff] }
 0x244   : > { %716 = vmatpush.bf16.msra.mxu0 %v3889_v16 }
 0x245   : > { %v620_v20 = vmul.f32 1.442695, %v617_v18 }
 0x247   : > { %557 = vadd.xlane.f32.xlu2 %v556_v19  ;;  %v4089_v21 = vpop.eup %4088  ;;  %4090 = vpow2.f32 %v620_v20 }
 0x248   : > { %v622_v22 = vsel %vm400_vm2, %v4089_v21, 0.0  ;;  %4092 = vpow2.f32 %v549_v28 }
 0x249   : > { %425 = vrot.lane.b32.xlu1 %v4435_v14, %s5369_s22  ;;  %s5414_s22 = smov 40  }
 0x24d   : > { %v4091_v23 = vpop.eup %4090 }
 0x24e   : > { %v625_v24 = vsel %vm404_vm3, %v4091_v23, 0.0  ;;  %v4093_v29 = vpop.eup %4092 }
 0x24f   : > { %623 = vadd.xlane.f32.xlu2 %v622_v22  ;;  %v553_v30 = vsel %vm400_vm2, %v4093_v29, 0.0 }
 0x251   : > { %633 = vrot.lane.b32.xlu1 %v4435_v14, %s5353_s23  ;;  %s5367_s23 = smov 16  }
 0x254   : > { %495 = vrot.lane.b32.xlu0 %v4435_v14, %s5357_s29  ;;  %s5408_s29 = smov 88  }
 0x257   : > { %626 = vadd.xlane.f32.xlu2 %v625_v24 }
 0x26f   : > { %564 = vrot.lane.b32.xlu2 %v4435_v14, %s5355_s8  ;;  %s5365_s8 = smov 24  }
 0x27e   : > { %554 = vadd.xlane.f32.xlu0 %v553_v30 }
 0x2a3   : > { %v416_v32 = vpop.xlane.xlu1 %415 }
 0x2a4   : > { %4094 = vrcp.f32 %v416_v32 }
 0x2aa   : > { %v486_v31 = vpop.xlane.xlu2 %485  ;;  %v4095_v34 = vpop.eup %4094 }
 0x2ab   : > { %v422_v14 = vmul.f32 %v4095_v34, %v4482_v59 }
 0x2b2   : > { %v419_v33 = vpop.xlane.xlu2 %418 }
 0x2b3   : > { %4096 = vrcp.f32 %v419_v33  ;;  %v489_v37 = vpop.xlane.xlu0 %488 }
 0x2b4   : > { %4098 = vrcp.f32 %v489_v37 }
 0x2b5   : > { %4100 = vrcp.f32 %v486_v31 }
 0x2b9   : > { %v4097_v36 = vpop.eup %4096 }
 0x2ba   : > { %v423_v35 = vmul.f32 %v4097_v36, %v4083_v8  ;;  %v558_v38 = vpop.xlane.xlu2 %557  ;;  %v4099_v42 = vpop.eup %4098  ;;  %v4038_v36 = vld [vmem:[%s5351_s6 + $0x1] ss:$0 sm:$0xff] }
 0x2bb   : > { %v426_v39 = vpop.permute.xlu1 %425  ;;  %v4101_v44 = vpop.eup %4100  ;;  %v493_v46 = vmul.f32 %v4099_v42, %v4085_v11 }
 0x2bc   : > { %v432_v40 = vsel %vm430_vm4, %v426_v39, 0  ;;  %v424_v41 = vpack.c.bf16 %v423_v35, %v422_v14  ;;  %v492_v49 = vmul.f32 %v4101_v44, %v4486_v1 }
 0x2bd   : > { %441 = vmatpush.bf16.msrb.mxu1 %v432_v40 }
 0x2be   : > { %v494_v51 = vpack.c.bf16 %v493_v46, %v492_v49 }
 0x2c0   : > { %3448 = vmatmul.msk.bf16.vlgmr.msrb.gmra.mxu1 %vm400_vm2, %v424_v41 }
 0x2c2   : > { %v624_v43 = vpop.xlane.xlu2 %623 }
 0x2c3   : > { %v634_v45 = vpop.permute.xlu1 %633 }
 0x2c4   : > { %v639_v50 = vsel %vm430_vm4, %v634_v45, 0 }
 0x2c6   : > { %v496_v47 = vpop.permute.xlu0 %495 }
 0x2c7   : > { %v501_v48 = vsel %vm430_vm4, %v496_v47, 0 }
 0x2c8   : > { %510 = vmatpush.bf16.msra.mxu2 %v501_v48 }
 0x2ca   : > { %v627_v52 = vpop.xlane.xlu2 %626 }
 0x2cb   : > { %3450 = vmatmul.msk.bf16.vlgmr.msra.gmra.mxu2 %vm400_vm2, %v494_v51  ;;  %4102 = vrcp.f32 %v627_v52 }
 0x2cc   : > { %648 = vmatpush.bf16.msrb.mxu2 %v639_v50  ;;  %4104 = vrcp.f32 %v624_v43  ;;  %v4316_v43 = vmov 32.0  }
 0x2cd   : > { %4106 = vrcp.f32 %v558_v38 }
 0x2d1   : > { %v4103_v53 = vpop.eup %4102 }
 0x2d2   : > { %v565_v54 = vpop.permute.xlu2 %564  ;;  %v4105_v56 = vpop.eup %4104  ;;  %v631_v57 = vmul.f32 %v4103_v53, %v4091_v23 }
 0x2d3   : > { %v570_v55 = vsel %vm430_vm4, %v565_v54, 0  ;;  %v630_v58 = vmul.f32 %v4105_v56, %v4089_v21  ;;  %v4107_v61 = vpop.eup %4106 }
 0x2d4   : > { %579 = vmatpush.bf16.msra.mxu1 %v570_v55  ;;  %v562_v63 = vmul.f32 %v4107_v61, %v4492_v17  ;;  %v3888_v17 = vld [vmem:[%s5349_s4 + $0x10] sm:$0xff]  ;;  %v3890_v61 = vld [vmem:[%s5349_s4 + $0x20] sm:$0xff] }
 0x2d5   : > { %v632_v59 = vpack.c.bf16 %v631_v57, %v630_v58  ;;  %717 = vmatpush.bf16.msra.mxu0 %v3888_v17  ;;  %v3891_v58 = vld [vmem:[%s5349_s4 + $0x28] sm:$0xff] }
 0x2d8   : > { %815 = vmatpush.bf16.msrb.mxu1 %v3891_v58 }
 0x2db   : > { %3454 = vmatmul.msk.bf16.vlgmr.msrb.gmra.mxu2 %vm400_vm2, %v632_v59 }
 0x2dc   : > { %816 = vmatpush.bf16.msrb.mxu1 %v3890_v61 }
 0x2f1   : > { %v555_v60 = vpop.xlane.xlu0 %554 }
 0x2f2   : > { %4108 = vrcp.f32 %v555_v60 }
 0x2f3   : > { %4110 = vrcp.f32 %v4316_v43 }
 0x2f8   : > { %v4109_v62 = vpop.eup %4108 }
 0x2f9   : > { %v561_v0 = vmul.f32 %v4109_v62, %v4093_v29  ;;  %v4111_v44 = vpop.eup %4110 }
 0x2fa   : > { %v736_v45 = vmul.f32 32.0, %v4111_v44  ;;  %vm740_vm8 = vweird.f32 %v4111_v44 }
 0x2fb   : > { %v563_v1 = vpack.c.bf16 %v562_v63, %v561_v0  ;;  %v3899_v63 = vld [vmem:[%s5350_s5 + $0x38] sm:$0xff] }
 0x2fc   : > { %v737_v46 = vsub.f32 1.0, %v736_v45  ;;  %892 = vmatpush.bf16.msra.mxu3 %v3899_v63 }
 0x2fd   : > { %3452 = vmatmul.msk.bf16.vlgmr.msra.gmra.mxu1 %vm400_vm2, %v563_v1 }
 0x2fe   : > { %v738_v47 = vmul.f32 %v4111_v44, %v737_v46 }
 0x300   : > { %v739_v48 = vadd.f32 %v4111_v44, %v738_v47 }
 0x33d   : > { %v443_v7 = vpop.f32.mrf.mxu1 }
 0x345   : > { %v445_v8 = vpop.f32.mrf.mxu1 }
 0x34e   : > { %v512_v4 = vpop.f32.mrf.mxu2 }
 0x356   : > { %v514_v5 = vpop.f32.mrf.mxu2 }
 0x357   : > { %v4006_v6 = vpack.i.bf16 %v514_v5, %v512_v4  ;;  %v3898_v4 = vld [vmem:[%s5350_s5 + $0x30] sm:$0xff] }
 0x358   : > { %893 = vmatpush.bf16.msra.mxu3 %v3898_v4  ;;  %v3900_v4 = vld [vmem:[%s5349_s4 + $0x30] sm:$0xff] }
 0x359   : > { %4007 = vrot.lane.b32.xlu1 %v4006_v6, %s5361_s9  ;;  %s5409_s9 = smov 64  }
 0x35e   : > { %v650_v10 = vpop.f32.mrf.mxu2 }
 0x366   : > { %v652_v13 = vpop.f32.mrf.mxu2 }
 0x367   : > { %v4016_v15 = vpack.i.bf16 %v652_v13, %v650_v10 }
 0x37a   : > { %v581_v9 = vpop.f32.mrf.mxu1 }
 0x382   : > { %v583_v11 = vpop.f32.mrf.mxu1 }
 0x383   : > { %v4011_v12 = vpack.i.bf16 %v583_v11, %v581_v9  ;;  %v3896_v11 = vld [vmem:[%s5350_s5 + $0x20] sm:$0xff] }
 0x385   : > { %4012 = vrot.lane.b32.xlu1 %v4011_v12, %s5367_s23  ;;  %s5412_s23 = smov 56  }
 0x38d   : > { %4017 = vrot.lane.b32.xlu1 %v4016_v15, %s5365_s8  ;;  %s5407_s8 = smov 112  }
 0x3cb   : > { %v4008_v18 = vpop.permute.xlu1 %4007 }
 0x3cc   : > { %v4010_v20 = vunpack.i.h.bf16 %v4008_v18  ;;  %v4009_v21 = vunpack.i.l.bf16 %v4008_v18 }
 0x3ce   : > { %v680_v25 = vsel %vm379_vm1, %v445_v8, %v4010_v20  ;;  %v679_v27 = vsel %vm379_vm1, %v443_v7, %v4009_v21  ;;  %v3897_v8 = vld [vmem:[%s5350_s5 + $0x28] sm:$0xff]  ;;  %v4039_v21 = vld [vmem:[%s5351_s6 + $0x2] ss:$0 sm:$0xff] }
 0x3cf   : > { %894 = vmatpush.bf16.msra.mxu3 %v3897_v8 }
 0x3d3   : > { %895 = vmatpush.bf16.msra.mxu3 %v3896_v11 }
 0x3f7   : > { %v4013_v19 = vpop.permute.xlu1 %4012 }
 0x3f8   : > { %v4015_v22 = vunpack.i.h.bf16 %v4013_v19  ;;  %v4014_v23 = vunpack.i.l.bf16 %v4013_v19 }
 0x3fa   : > { %v683_v30 = vsel %vm681_vm5, %v680_v25, %v4015_v22  ;;  %v682_v31 = vsel %vm681_vm5, %v679_v27, %v4014_v23 }
 0x3ff   : > { %v4018_v24 = vpop.permute.xlu1 %4017 }
 0x400   : > { %v4020_v28 = vunpack.i.h.bf16 %v4018_v24  ;;  %v4019_v29 = vunpack.i.l.bf16 %v4018_v24 }
 0x402   : > { %v685_v32 = vsel %vm684_vm6, %v682_v31, %v4019_v29  ;;  %v686_v33 = vsel %vm684_vm6, %v683_v30, %v4020_v28  ;;  %v4040_v28 = vld [vmem:[%s5351_s6 + $0x3] ss:$0 sm:$0xff] }
 0x403   : > { %v687_v34 = vpack.c.bf16 %v686_v33, %v685_v32  ;;  %v3895_v33 = vld [vmem:[%s5350_s5 + $0x18] sm:$0xff] }
 0x404   : > { %896 = vmatpush.bf16.msra.mxu3 %v3895_v33 }
 0x405   : > { %3467 = vmatmul.msk.bf16.vlgmr.msra.gmra.mxu0 %vm349_vm0, %v687_v34  ;;  %v3894_v34 = vld [vmem:[%s5350_s5 + $0x10] sm:$0xff] }
 0x408   : > { %897 = vmatpush.bf16.msra.mxu3 %v3894_v34  ;;  %v4045_v34 = vld [vmem:[%s5351_s6 + $0x8] ss:$0 sm:$0xff] }
 0x482   : > { %v719_v37 = vpop.f32.mrf.mxu0 }
 0x483   : > { %v720_v35 = vadd.f32 %v4038_v36, %v719_v37  ;;  %v3892_v37 = vld [vmem:[%s5350_s5] sm:$0xff] }
 0x485   : > { %v724_v38 = vadd.f32 %v720_v35, %v4425_v2  ;;  %v4542_v2 = vsel %vm740_vm8, %v4111_v44, %v739_v48  ;;  %v4042_v44 = vld [vmem:[%s5351_s6 + $0x5] ss:$0 sm:$0xff] }
 0x487   : > { %v728_v39 = vsel %vm349_vm0, %v724_v38, 0.0 }
 0x488   : > { %729 = vadd.xlane.f32.xlu2 %v728_v39 }
 0x48a   : > { %v721_v14 = vpop.f32.mrf.mxu0 }
 0x48b   : > { %v722_v40 = vadd.f32 %v4038_v36, %v721_v14  ;;  %v3893_v36 = vld [vmem:[%s5350_s5 + $0x8] sm:$0xff] }
 0x48c   : > { %898 = vmatpush.bf16.msra.mxu3 %v3893_v36 }
 0x48d   : > { %v725_v41 = vadd.f32 %v722_v40, %v4427_v3 }
 0x48f   : > { %v732_v42 = vsel %vm731_vm7, %v725_v41, 0.0 }
 0x490   : > { %733 = vadd.xlane.f32.xlu1 %v732_v42  ;;  %899 = vmatpush.bf16.msra.mxu3 %v3892_v37 }
 0x4fb   : > { %v730_v49 = vpop.xlane.xlu2 %729 }
 0x4fc   : > { %v742_v50 = vmul.f32 %v4542_v2, %v730_v49 }
 0x4fe   : > { %v744_v51 = vsub.f32 %v724_v38, %v742_v50  ;;  %v4041_v38 = vld [vmem:[%s5351_s6 + $0x4] ss:$0 sm:$0xff] }
 0x500   : > { %v746_v52 = vmul.f32 %v744_v51, %v744_v51 }
 0x502   : > { %v748_v3 = vsel %vm349_vm0, %v746_v52, 0.0 }
 0x503   : > { %v734_v53 = vpop.xlane.xlu1 %733  ;;  %749 = vadd.xlane.f32.xlu0 %v748_v3 }
 0x504   : > { %v743_v54 = vmul.f32 %v4542_v2, %v734_v53 }
 0x506   : > { %v745_v55 = vsub.f32 %v725_v41, %v743_v54 }
 0x508   : > { %v747_v56 = vmul.f32 %v745_v55, %v745_v55 }
 0x50a   : > { %v751_v57 = vsel %vm731_vm7, %v747_v56, 0.0 }
 0x50b   : > { %752 = vadd.xlane.f32.xlu0 %v751_v57 }
 0x576   : > { %v750_v59 = vpop.xlane.xlu0 %749 }
 0x577   : > { %v754_v60 = vmul.f32 %v750_v59, %v4542_v2 }
 0x579   : > { %v756_v62 = vadd.f32 1e-05, %v754_v60 }
 0x57b   : > { %4112 = vrsqrt.f32 %v756_v62  ;;  %vm764_vm10 = vweird.f32 %v756_v62 }
 0x57e   : > { %v753_v0 = vpop.xlane.xlu0 %752 }
 0x57f   : > { %v755_v1 = vmul.f32 %v753_v0, %v4542_v2 }
 0x581   : > { %v4113_v5 = vpop.eup %4112  ;;  %v757_v6 = vadd.f32 1e-05, %v755_v1 }
 0x582   : > { %v759_v7 = vmul.f32 %v4113_v5, %v756_v62  ;;  %vm765_vm9 = vweird.f32 %v4113_v5  ;;  %v3901_v62 = vld [vmem:[%s5349_s4 + $0x38] sm:$0xff] }
 0x583   : > { %4114 = vrsqrt.f32 %v757_v6  ;;  %vm766_vm11 = vmor %vm764_vm10, %vm765_vm9  ;;  %vm774_vm13 = vweird.f32 %v757_v6  ;;  %989 = vmatpush.bf16.msra.mxu2 %v3901_v62 }
 0x584   : > { %v760_v9 = vmul.f32 %v4113_v5, %v759_v7 }
 0x586   : > { %v761_v10 = vmul.f32 0.5, %v760_v9 }
 0x587   : > { %990 = vmatpush.bf16.msra.mxu2 %v3900_v4 }
 0x588   : > { %v762_v12 = vsub.f32 1.5, %v761_v10 }
 0x589   : > { %v4115_v13 = vpop.eup %4114 }
 0x58a   : > { %v763_v15 = vmul.f32 %v4113_v5, %v762_v12  ;;  %v769_v16 = vmul.f32 %v4115_v13, %v757_v6  ;;  %vm775_vm12 = vweird.f32 %v4115_v13 }
 0x58b   : > { %vm776_vm14 = vmor %vm774_vm13, %vm775_vm12 }
 0x58c   : > { %v770_v17 = vmul.f32 %v4115_v13, %v769_v16  ;;  %v767_v18 = vsel %vm766_vm11, %v4113_v5, %v763_v15 }
 0x58d   : > { %v778_v22 = vmul.f32 %v767_v18, %v744_v51 }
 0x58e   : > { %v771_v19 = vmul.f32 0.5, %v770_v17 }
 0x58f   : > { %v781_v25 = vmul.f32 %v4039_v21, %v778_v22 }
 0x590   : > { %v772_v20 = vsub.f32 1.5, %v771_v19 }
 0x591   : > { %v784_v30 = vadd.f32 %v4040_v28, %v781_v25  ;;  %v4044_v25 = vld [vmem:[%s5351_s6 + $0x7] ss:$0 sm:$0xff] }
 0x592   : > { %v773_v23 = vmul.f32 %v4115_v13, %v772_v20 }
 0x594   : > { %v777_v24 = vsel %vm776_vm14, %v4115_v13, %v773_v23  ;;  %vm1654_vm14 = vcmask 1043456  }
 0x595   : > { %v779_v27 = vmul.f32 %v777_v24, %v745_v55 }
 0x597   : > { %v782_v29 = vmul.f32 %v4039_v21, %v779_v27  ;;  %v4043_v21 = vld [vmem:[%s5351_s6 + $0x6] ss:$0 sm:$0xff] }
 0x599   : > { %v785_v31 = vadd.f32 %v4040_v28, %v782_v29 }
 0x59b   : > { %v786_v32 = vpack.c.bf16 %v785_v31, %v784_v30 }
 0x59d   : > { %3480 = vmatmul.msk.bf16.vlgmr.msrb.gmra.mxu1 %vm349_vm0, %v786_v32 }
 0x61a   : > { %v818_v35 = vpop.f32.mrf.mxu1 }
 0x61b   : > { %v819_v39 = vadd.f32 %v4041_v38, %v818_v35 }
 0x61d   : > { %v823_v41 = vmax.f32 %v819_v39, 0.0 }
 0x622   : > { %v820_v14 = vpop.f32.mrf.mxu1 }
 0x623   : > { %v821_v40 = vadd.f32 %v4041_v38, %v820_v14 }
 0x625   : > { %v824_v42 = vmax.f32 %v821_v40, 0.0 }
 0x627   : > { %v825_v43 = vpack.c.bf16 %v824_v42, %v823_v41 }
 0x629   : > { %900 = vmatmul.bf16.vlgmr.msra.gmra.mxu3 %v825_v43 }
 0x6ac   : > { %v901_v45 = vpop.f32.mrf.mxu3 }
 0x6ad   : > { %v902_v46 = vadd.f32 %v4042_v44, %v901_v45 }
 0x6af   : > { %v906_v47 = vadd.f32 %v902_v46, %v784_v30 }
 0x6b1   : > { %v910_v48 = vsel %vm349_vm0, %v906_v47, 0.0 }
 0x6b2   : > { %911 = vadd.xlane.f32.xlu0 %v910_v48 }
 0x6b4   : > { %v903_v49 = vpop.f32.mrf.mxu3 }
 0x6b5   : > { %v904_v50 = vadd.f32 %v4042_v44, %v903_v49 }
 0x6b7   : > { %v907_v51 = vadd.f32 %v904_v50, %v785_v31 }
 0x6b9   : > { %v913_v52 = vsel %vm731_vm7, %v907_v51, 0.0 }
 0x6ba   : > { %914 = vadd.xlane.f32.xlu0 %v913_v52 }
 0x725   : > { %v912_v3 = vpop.xlane.xlu0 %911 }
 0x726   : > { %v916_v53 = vmul.f32 %v912_v3, %v4542_v2 }
 0x728   : > { %v918_v54 = vsub.f32 %v906_v47, %v916_v53 }
 0x72a   : > { %v920_v55 = vmul.f32 %v918_v54, %v918_v54 }
 0x72c   : > { %v922_v56 = vsel %vm349_vm0, %v920_v55, 0.0 }
 0x72d   : > { %923 = vadd.xlane.f32.xlu0 %v922_v56  ;;  %v915_v57 = vpop.xlane.xlu0 %914 }
 0x72e   : > { %v917_v58 = vmul.f32 %v915_v57, %v4542_v2 }
 0x730   : > { %v919_v59 = vsub.f32 %v907_v51, %v917_v58 }
 0x732   : > { %v921_v60 = vmul.f32 %v919_v59, %v919_v59 }
 0x734   : > { %v925_v61 = vsel %vm731_vm7, %v921_v60, 0.0 }
 0x735   : > { %926 = vadd.xlane.f32.xlu2 %v925_v61 }
 0x7a0   : > { %v924_v63 = vpop.xlane.xlu0 %923 }
 0x7a1   : > { %v928_v0 = vmul.f32 %v924_v63, %v4542_v2 }
 0x7a3   : > { %v930_v1 = vadd.f32 1e-05, %v928_v0 }
 0x7a5   : > { %4116 = vrsqrt.f32 %v930_v1  ;;  %vm938_vm8 = vweird.f32 %v930_v1 }
 0x7a8   : > { %v927_v5 = vpop.xlane.xlu2 %926 }
 0x7a9   : > { %v929_v6 = vmul.f32 %v927_v5, %v4542_v2 }
 0x7ab   : > { %v4117_v7 = vpop.eup %4116  ;;  %v931_v8 = vadd.f32 1e-05, %v929_v6 }
 0x7ac   : > { %v933_v9 = vmul.f32 %v4117_v7, %v930_v1  ;;  %vm939_vm15 = vweird.f32 %v4117_v7 }
 0x7ad   : > { %4118 = vrsqrt.f32 %v931_v8  ;;  %vm940_vm9 = vmor %vm938_vm8, %vm939_vm15  ;;  %vm948_vm11 = vweird.f32 %v931_v8 }
 0x7ae   : > { %v934_v10 = vmul.f32 %v4117_v7, %v933_v9 }
 0x7b0   : > { %v935_v11 = vmul.f32 0.5, %v934_v10 }
 0x7b2   : > { %v936_v12 = vsub.f32 1.5, %v935_v11 }
 0x7b3   : > { %v4119_v13 = vpop.eup %4118 }
 0x7b4   : > { %v937_v15 = vmul.f32 %v4117_v7, %v936_v12  ;;  %v943_v16 = vmul.f32 %v4119_v13, %v931_v8  ;;  %vm949_vm10 = vweird.f32 %v4119_v13 }
 0x7b5   : > { %vm950_vm12 = vmor %vm948_vm11, %vm949_vm10 }
 0x7b6   : > { %v944_v17 = vmul.f32 %v4119_v13, %v943_v16  ;;  %v941_v18 = vsel %vm940_vm9, %v4117_v7, %v937_v15 }
 0x7b7   : > { %v952_v22 = vmul.f32 %v941_v18, %v918_v54 }
 0x7b8   : > { %v945_v19 = vmul.f32 0.5, %v944_v17 }
 0x7b9   : > { %v955_v27 = vmul.f32 %v4043_v21, %v952_v22 }
 0x7ba   : > { %v946_v20 = vsub.f32 1.5, %v945_v19 }
 0x7bb   : > { %v4613_v30 = vadd.f32 %v4044_v25, %v955_v27 }
 0x7bc   : > { %v947_v23 = vmul.f32 %v4119_v13, %v946_v20 }
 0x7be   : > { %v951_v24 = vsel %vm950_vm12, %v4119_v13, %v947_v23 }
 0x7bf   : > { %v953_v28 = vmul.f32 %v951_v24, %v919_v59 }
 0x7c1   : > { %v956_v29 = vmul.f32 %v4043_v21, %v953_v28 }
 0x7c3   : > { %v4615_v31 = vadd.f32 %v4044_v25, %v956_v29 }
 0x7c5   : > { %v960_v32 = vpack.c.bf16 %v4615_v31, %v4613_v30 }
 0x7c7   : > { %3525 = vmatmul.msk.bf16.vlgmr.msra.gmra.mxu2 %vm349_vm0, %v960_v32 }
 0x84a   : > { %v992_v33 = vpop.f32.mrf.mxu2 }
 0x84b   : > { %v993_v36 = vadd.f32 %v4045_v34, %v992_v33 }
 0x84d   : > { %v997_v35 = vpack.c.bf16 %v993_v36, %v993_v36 }
 0x84f   : > { %v1001_v14 = vunpack.c.l.b16 %v997_v35 }
 0x852   : > { %v994_v37 = vpop.f32.mrf.mxu2 }
 0x853   : > { %v995_v38 = vadd.f32 %v4045_v34, %v994_v37 }
 0x855   : > { %v998_v39 = vpack.c.bf16 %v995_v38, %v995_v38 }
 0x857   : > { %v1002_v40 = vunpack.c.l.b16 %v998_v39 }
 0x859   : > { %v4623_v41 = vpack.c.b16 %v1002_v40, %v1001_v14 }
 0x85b   : > { %1004 = vrot.lane.b32.xlu1 %v4623_v41, %s5379_s14  ;;  %s5418_s14 = smov 24  }
 0x863   : > { %1071 = vrot.lane.b32.xlu1 %v4623_v41, %s5375_s19 }
 0x86b   : > { %1142 = vrot.lane.b32.xlu1 %v4623_v41, %s5377_s16  ;;  %s317_s16 = scalar_lea.vmem %s5416_s1, %s5382_s2  ;;  %s5423_s1 = smov 120  }
 0x86c   : > { %s306_s2 = sand.u32 1, %s4292_s25  }
 0x873   : > { %1140 = vrot.lane.b32.xlu1 %v4623_v41, %s5407_s8 }
 0x8cd   : > { %v1005_v42 = vpop.permute.xlu1 %1004 }
 0x8ce   : > { %v1010_v43 = vsel %vm379_vm1, %v1005_v42, 0 }
 0x8cf   : > { %1019 = vmatpush.bf16.xpose.msrb.mxu0 %v1010_v43 }
 0x8d5   : > { %v1072_v3 = vpop.permute.xlu1 %1071 }
 0x8d6   : > { %3526 = vmatmul.msk.bf16.vlgmr.msrb.gmra.mxu0 %vm379_vm1, %v4623_v41 }
 0x8dd   : > { %v1143_v58 = vpop.permute.xlu1 %1142 }
 0x8de   : > { %v1148_v61 = vsel %vm379_vm1, %v1143_v58, 0 }
 0x8e5   : > { %v1141_v18 = vpop.permute.xlu1 %1140 }
 0x953   : > { %v1021_v44 = vpop.f32.mrf.mxu0 }
 0x954   : > { %v1022_v45 = vadd.f32 %v4461_v26, %v1021_v44 }
 0x956   : > { %v1026_v46 = vsel %vm400_vm2, %v1022_v45, -inf }
 0x957   : > { %1027 = vmax.xlane.f32.xlu0 %v1026_v46 }
 0x95b   : > { %v1023_v47 = vpop.f32.mrf.mxu0 }
 0x95c   : > { %v1024_v48 = vadd.f32 %v4461_v26, %v1023_v47 }
 0x95e   : > { %v1029_v49 = vsel %vm404_vm3, %v1024_v48, -inf }
 0x95f   : > { %1030 = vmax.xlane.f32.xlu2 %v1029_v49 }
 0x96b   : > { %1073 = vrot.lane.b32.xlu0 %v4623_v41, %s5408_s29 }
 0x977   : > { %1049 = vrot.lane.b32.xlu2 %v4623_v41, %s5409_s9 }
 0x9ca   : > { %v1028_v50 = vpop.xlane.xlu0 %1027 }
 0x9cb   : > { %v1032_v51 = vsub.f32 %v1022_v45, %v1028_v50 }
 0x9cd   : > { %v1034_v52 = vmul.f32 1.442695, %v1032_v51 }
 0x9cf   : > { %4120 = vpow2.f32 %v1034_v52 }
 0x9d2   : > { %v1031_v53 = vpop.xlane.xlu2 %1030 }
 0x9d3   : > { %v1033_v54 = vsub.f32 %v1024_v48, %v1031_v53 }
 0x9d5   : > { %v4121_v55 = vpop.eup %4120  ;;  %v1036_v56 = vmul.f32 1.442695, %v1033_v54 }
 0x9d6   : > { %v1038_v57 = vsel %vm400_vm2, %v4121_v55, 0.0 }
 0x9d7   : > { %4122 = vpow2.f32 %v1036_v56  ;;  %1039 = vadd.xlane.f32.xlu0 %v1038_v57 }
 0x9da   : > { %v1050_v59 = vpop.permute.xlu2 %1049 }
 0x9db   : > { %v1055_v60 = vsel %vm430_vm4, %v1050_v59, 0 }
 0x9dc   : > { %1064 = vmatpush.bf16.msra.mxu1 %v1055_v60 }
 0x9dd   : > { %v4123_v62 = vpop.eup %4122  ;;  %v1074_v63 = vpop.permute.xlu0 %1073 }
 0x9de   : > { %v1079_v0 = vsel %vm379_vm1, %v1074_v63, 0  ;;  %v1041_v1 = vsel %vm404_vm3, %v4123_v62, 0.0 }
 0x9df   : > { %1042 = vadd.xlane.f32.xlu2 %v1041_v1  ;;  %1088 = vmatpush.bf16.xpose.msrb.mxu2 %v1079_v0 }
 0x9e0   : > { %1157 = vmatpush.bf16.xpose.msrb.mxu1 %v1148_v61 }
 0x9e6   : > { %3528 = vmatmul.msk.bf16.vlgmr.msrb.gmra.mxu2 %vm379_vm1, %v1072_v3 }
 0x9eb   : > { %1211 = vrot.lane.b32.xlu0 %v4623_v41, %s5410_s13 }
 0x9f7   : > { %1209 = vrot.lane.b32.xlu2 %v4623_v41, %s5411_s18 }
 0xa4a   : > { %v1040_v4 = vpop.xlane.xlu0 %1039 }
 0xa4b   : > { %4124 = vrcp.f32 %v1040_v4 }
 0xa51   : > { %v4125_v6 = vpop.eup %4124 }
 0xa52   : > { %v1043_v5 = vpop.xlane.xlu2 %1042  ;;  %v1046_v8 = vmul.f32 %v4125_v6, %v4121_v55 }
 0xa53   : > { %4126 = vrcp.f32 %v1043_v5 }
 0xa59   : > { %v4127_v7 = vpop.eup %4126 }
 0xa5a   : > { %v1047_v9 = vmul.f32 %v4127_v7, %v4123_v62  ;;  %v1210_v13 = vpop.permute.xlu2 %1209 }
 0xa5c   : > { %v1048_v10 = vpack.c.bf16 %v1047_v9, %v1046_v8 }
 0xa5d   : > { %v1212_v11 = vpop.permute.xlu0 %1211 }
 0xa5e   : > { %v1217_v12 = vsel %vm379_vm1, %v1212_v11, 0  ;;  %3527 = vmatmul.msk.bf16.vlgmr.msra.gmra.mxu1 %vm400_vm2, %v1048_v10 }
 0xa5f   : > { %1226 = vmatpush.bf16.xpose.msra.mxu2 %v1217_v12 }
 0xa66   : > { %3532 = vmatmul.msk.bf16.vlgmr.msra.gmra.mxu2 %vm379_vm1, %v1210_v13 }
 0xa69   : > { %v1090_v15 = vpop.f32.mrf.mxu2 }
 0xa6a   : > { %v1091_v16 = vadd.f32 %v4461_v26, %v1090_v15 }
 0xa6c   : > { %v1095_v17 = vsel %vm400_vm2, %v1091_v16, -inf }
 0xa6d   : > { %1096 = vmax.xlane.f32.xlu0 %v1095_v17 }
 0xa6e   : > { %3530 = vmatmul.msk.bf16.vlgmr.msrb.gmra.mxu1 %vm379_vm1, %v1141_v18 }
 0xa71   : > { %v1092_v19 = vpop.f32.mrf.mxu2 }
 0xa72   : > { %v1093_v20 = vadd.f32 %v4461_v26, %v1092_v19 }
 0xa74   : > { %v1098_v21 = vsel %vm404_vm3, %v1093_v20, -inf }
 0xa75   : > { %1099 = vmax.xlane.f32.xlu1 %v1098_v21 }
 0xadb   : > { %v4662_v22 = vpop.f32.mrf.mxu1 }
 0xae0   : > { %v1097_v28 = vpop.xlane.xlu0 %1096 }
 0xae1   : > { %v1101_v37 = vsub.f32 %v1091_v16, %v1097_v28 }
 0xae3   : > { %v4664_v23 = vpop.f32.mrf.mxu1  ;;  %v1103_v38 = vmul.f32 1.442695, %v1101_v37  ;;  %v3915_v37 = vld [vmem:[%s5349_s4 + $0x68] sm:$0xff] }
 0xae8   : > { %v1100_v24 = vpop.xlane.xlu1 %1099 }
 0xae9   : > { %v1102_v25 = vsub.f32 %v1093_v20, %v1100_v24  ;;  %v1228_v27 = vpop.f32.mrf.mxu2 }
 0xaea   : > { %v1229_v29 = vadd.f32 %v4461_v26, %v1228_v27 }
 0xaeb   : > { %v1105_v32 = vmul.f32 1.442695, %v1102_v25  ;;  %v1159_v33 = vpop.f32.mrf.mxu1 }
 0xaec   : > { %v1160_v34 = vadd.f32 %v4461_v26, %v1159_v33  ;;  %v1233_v36 = vsel %vm400_vm2, %v1229_v29, -inf }
 0xaed   : > { %4128 = vpow2.f32 %v1105_v32  ;;  %1234 = vmax.xlane.f32.xlu1 %v1233_v36 }
 0xaee   : > { %v1164_v35 = vsel %vm400_vm2, %v1160_v34, -inf  ;;  %4130 = vpow2.f32 %v1103_v38 }
 0xaef   : > { %1165 = vmax.xlane.f32.xlu2 %v1164_v35 }
 0xaf1   : > { %v1230_v39 = vpop.f32.mrf.mxu2 }
 0xaf2   : > { %v1231_v14 = vadd.f32 %v4461_v26, %v1230_v39 }
 0xaf3   : > { %v4129_v40 = vpop.eup %4128  ;;  %v1161_v42 = vpop.f32.mrf.mxu1 }
 0xaf4   : > { %v1162_v43 = vadd.f32 %v4461_v26, %v1161_v42  ;;  %v1110_v44 = vsel %vm404_vm3, %v4129_v40, 0.0  ;;  %v1236_v46 = vsel %vm404_vm3, %v1231_v14, -inf  ;;  %v4131_v47 = vpop.eup %4130  ;;  %v4705_v42 = vld [vmem:[%s317_s16] sm:$0xff]  ;;  %s4746_s16 = scalar_lea.vmem %s5421_s3, %s5420_s30  ;;  %s3882_s30 = sshll.u32 %s4378_s28, 3 }
 0xaf5   : > { %1111 = vadd.xlane.f32.xlu1 %v1110_v44  ;;  %v1107_v48 = vsel %vm400_vm2, %v4131_v47, 0.0  ;;  %s5424_s3 = sld [smem:[#allocation16_spill]] }
 0xaf6   : > { %v1167_v45 = vsel %vm404_vm3, %v1162_v43, -inf }
 0xaf7   : > { %1168 = vmax.xlane.f32.xlu0 %v1167_v45  ;;  %1237 = vmax.xlane.f32.xlu2 %v1236_v46 }
 0xafb   : > { %s3332_s7 = scalar_lea.hbm %s5424_s3, %s3882_s30 }
 0xaff   : > { %1108 = vadd.xlane.f32.xlu0 %v1107_v48 }
 0xb0f   : > { %1118 = vrot.lane.b32.xlu2 %v4623_v41, %s5412_s23 }
 0xb60   : > { %v1235_v49 = vpop.xlane.xlu1 %1234 }
 0xb61   : > { %v1239_v50 = vsub.f32 %v1229_v29, %v1235_v49 }
 0xb62   : > { %v1166_v26 = vpop.xlane.xlu2 %1165 }
 0xb63   : > { %v1241_v51 = vmul.f32 1.442695, %v1239_v50  ;;  %v1170_v52 = vsub.f32 %v1160_v34, %v1166_v26  ;;  %v4046_v50 = vld [vmem:[%s5351_s6 + $0x10] ss:$0 sm:$0xff] }
 0xb65   : > { %4132 = vpow2.f32 %v1241_v51  ;;  %v1172_v3 = vmul.f32 1.442695, %v1170_v52 }
 0xb67   : > { %4134 = vpow2.f32 %v1172_v3 }
 0xb68   : > { %v1112_v59 = vpop.xlane.xlu1 %1111 }
 0xb6a   : > { %v1169_v53 = vpop.xlane.xlu0 %1168  ;;  %v1238_v54 = vpop.xlane.xlu2 %1237 }
 0xb6b   : > { %v4133_v55 = vpop.eup %4132  ;;  %v1240_v56 = vsub.f32 %v1231_v14, %v1238_v54  ;;  %v1171_v60 = vsub.f32 %v1162_v43, %v1169_v53  ;;  %v1576_v43 = vpack.c.bf16 %v4705_v42, %v4705_v42 }
 0xb6c   : > { %v1245_v57 = vsel %vm400_vm2, %v4133_v55, 0.0 }
 0xb6d   : > { %v1243_v58 = vmul.f32 1.442695, %v1240_v56  ;;  %1246 = vadd.xlane.f32.xlu0 %v1245_v57  ;;  %v4135_v61 = vpop.eup %4134  ;;  %v1174_v62 = vmul.f32 1.442695, %v1171_v60  ;;  %v3902_v56 = vld [vmem:[%s5349_s4 + $0x40] sm:$0xff] }
 0xb6e   : > { %v1176_v4 = vsel %vm400_vm2, %v4135_v61, 0.0 }
 0xb6f   : > { %4136 = vpow2.f32 %v1243_v58 }
 0xb70   : > { %4138 = vrcp.f32 %v1112_v59 }
 0xb72   : > { %v1109_v63 = vpop.xlane.xlu0 %1108  ;;  %v1119_v0 = vpop.permute.xlu2 %1118 }
 0xb73   : > { %4140 = vrcp.f32 %v1109_v63  ;;  %v1124_v1 = vsel %vm430_vm4, %v1119_v0, 0 }
 0xb74   : > { %1133 = vmatpush.bf16.msra.mxu0 %v1124_v1  ;;  %4142 = vpow2.f32 %v1174_v62 }
 0xb75   : > { %1177 = vadd.xlane.f32.xlu0 %v1176_v4  ;;  %v4137_v5 = vpop.eup %4136 }
 0xb76   : > { %v4139_v6 = vpop.eup %4138  ;;  %v1248_v7 = vsel %vm404_vm3, %v4137_v5, 0.0 }
 0xb77   : > { %1249 = vadd.xlane.f32.xlu1 %v1248_v7  ;;  %v1116_v9 = vmul.f32 %v4139_v6, %v4129_v40  ;;  %v3914_v40 = vld [vmem:[%s5349_s4 + $0x60] sm:$0xff] }
 0xb79   : > { %v4141_v8 = vpop.eup %4140 }
 0xb7a   : > { %v1115_v10 = vmul.f32 %v4141_v8, %v4131_v47  ;;  %v4143_v11 = vpop.eup %4142 }
 0xb7b   : > { %v1179_v13 = vsel %vm404_vm3, %v4143_v11, 0.0 }
 0xb7c   : > { %v1117_v12 = vpack.c.bf16 %v1116_v9, %v1115_v10 }
 0xb7e   : > { %3529 = vmatmul.msk.bf16.vlgmr.msra.gmra.mxu0 %vm400_vm2, %v1117_v12 }
 0xb7f   : > { %1180 = vadd.xlane.f32.xlu1 %v1179_v13 }
 0xb89   : > { %1187 = vrot.lane.b32.xlu0 %v4623_v41, %s5413_s15 }
 0xb98   : > { %1256 = vrot.lane.b32.xlu1 %v4623_v41, %s5414_s22 }
 0xbe0   : > { %v1247_v15 = vpop.xlane.xlu0 %1246 }
 0xbe8   : > { %v1178_v17 = vpop.xlane.xlu0 %1177 }
 0xbe9   : > { %4144 = vrcp.f32 %v1178_v17 }
 0xbea   : > { %v1250_v16 = vpop.xlane.xlu1 %1249 }
 0xbef   : > { %v4145_v19 = vpop.eup %4144 }
 0xbf0   : > { %v1184_v27 = vmul.f32 %v4145_v19, %v4135_v61 }
 0xbf2   : > { %v1181_v18 = vpop.xlane.xlu1 %1180 }
 0xbf3   : > { %4146 = vrcp.f32 %v1181_v18 }
 0xbf4   : > { %4148 = vrcp.f32 %v1250_v16 }
 0xbf5   : > { %4150 = vrcp.f32 %v1247_v15 }
 0xbf9   : > { %v4147_v20 = vpop.eup %4146 }
 0xbfa   : > { %v1185_v21 = vmul.f32 %v4147_v20, %v4143_v11  ;;  %v4149_v33 = vpop.eup %4148 }
 0xbfb   : > { %v1188_v24 = vpop.permute.xlu0 %1187  ;;  %v1135_v25 = vpop.f32.mrf.mxu0  ;;  %v1254_v36 = vmul.f32 %v4149_v33, %v4137_v5 }
 0xbfc   : > { %v1193_v28 = vsel %vm430_vm4, %v1188_v24, 0  ;;  %v1186_v29 = vpack.c.bf16 %v1185_v21, %v1184_v27  ;;  %v4151_v34 = vpop.eup %4150  ;;  %v4751_v21 = vld [vmem:[%s4746_s16] sm:$0xff] }
 0xbfd   : > { %1202 = vmatpush.bf16.msrb.mxu3 %v1193_v28  ;;  %v1253_v38 = vmul.f32 %v4151_v34, %v4133_v55  ;;  %v3903_v55 = vld [vmem:[%s5349_s4 + $0x48] sm:$0xff] }
 0xbfe   : > { %1337 = vmatpush.bf16.msra.mxu1 %v3903_v55 }
 0xbff   : > { %v1255_v14 = vpack.c.bf16 %v1254_v36, %v1253_v38 }
 0xc00   : > { %3531 = vmatmul.msk.bf16.vlgmr.msrb.gmra.mxu3 %vm400_vm2, %v1186_v29 }
 0xc02   : > { %1338 = vmatpush.bf16.msra.mxu1 %v3902_v56 }
 0xc03   : > { %v1137_v41 = vpop.f32.mrf.mxu0 }
 0xc04   : > { %v4021_v32 = vpack.i.bf16 %v1137_v41, %v1135_v25 }
 0xc06   : > { %4022 = vrot.lane.b32.xlu2 %v4021_v32, %s5415_s20 }
 0xc0a   : > { %v1257_v35 = vpop.permute.xlu1 %1256 }
 0xc0b   : > { %v1262_v39 = vsel %vm430_vm4, %v1257_v35, 0 }
 0xc0c   : > { %1271 = vmatpush.bf16.msrb.mxu0 %v1262_v39 }
 0xc0f   : > { %3533 = vmatmul.msk.bf16.vlgmr.msrb.gmra.mxu0 %vm400_vm2, %v1255_v14 }
 0xc10   : > { %1605 = vmatpush.bf16.msra.mxu0 %v3915_v37 }
 0xc14   : > { %1606 = vmatpush.bf16.msra.mxu0 %v3914_v40 }
 0xc1f   : > { %3620 = vmatmul.msk.bf16.vlgmr.msra.gmra.mxu0 %vm349_vm0, %v1576_v43 }
 0xc60   : > { %v4023_v57 = vpop.permute.xlu2 %4022 }
 0xc61   : > { %v4025_v61 = vunpack.i.h.bf16 %v4023_v57  ;;  %v4024_v62 = vunpack.i.l.bf16 %v4023_v57 }
 0xc63   : > { %v1303_v4 = vsel %vm379_vm1, %v4664_v23, %v4025_v61  ;;  %v1302_v5 = vsel %vm379_vm1, %v4662_v22, %v4024_v62  ;;  %v4047_v22 = vld [vmem:[%s5351_s6 + $0x9] ss:$0 sm:$0xff] }
 0xc83   : > { %v1204_v44 = vpop.f32.mrf.mxu3 }
 0xc8b   : > { %v1206_v45 = vpop.f32.mrf.mxu3 }
 0xc8c   : > { %v4026_v46 = vpack.i.bf16 %v1206_v45, %v1204_v44  ;;  %v1273_v47 = vpop.f32.mrf.mxu0  ;;  %v3905_v44 = vld [vmem:[%s5349_s4 + $0x58] sm:$0xff]  ;;  %v3904_v45 = vld [vmem:[%s5349_s4 + $0x50] sm:$0xff] }
 0xc8d   : > { %1428 = vmatpush.bf16.msra.mxu3 %v3905_v44 }
 0xc8e   : > { %4027 = vrot.lane.b32.xlu2 %v4026_v46, %s5417_s0 }
 0xc91   : > { %1429 = vmatpush.bf16.msra.mxu3 %v3904_v45 }
 0xc94   : > { %v1275_v48 = vpop.f32.mrf.mxu0 }
 0xc95   : > { %v4031_v49 = vpack.i.bf16 %v1275_v48, %v1273_v47 }
 0xc97   : > { %4032 = vrot.lane.b32.xlu0 %v4031_v49, %s5418_s14 }
 0xc9c   : > { %v1608_v26 = vpop.f32.mrf.mxu0 }
 0xc9d   : > { %v1609_v51 = vadd.f32 %v4046_v50, %v1608_v26 }
 0xc9f   : > { %v1612_v52 = vpack.c.bf16 %v1609_v51, %v1609_v51 }
 0xca1   : > { %v1614_v3 = vunpack.c.l.b16 %v1612_v52 }
 0xca3   : > { %v4715_v53 = vpack.c.b16 %v1614_v3, %v1614_v3 }
 0xca4   : > { %v1610_v54 = vpop.f32.mrf.mxu0 }
 0xca5   : > { %1616 = vrot.lane.b32.xlu2 %v4715_v53, %s5419_s10 }
 0xce8   : > { %v4028_v58 = vpop.permute.xlu2 %4027 }
 0xce9   : > { %v4030_v63 = vunpack.i.h.bf16 %v4028_v58  ;;  %v4029_v0 = vunpack.i.l.bf16 %v4028_v58 }
 0xceb   : > { %v1305_v8 = vsel %vm681_vm5, %v1303_v4, %v4030_v63  ;;  %v1304_v9 = vsel %vm681_vm5, %v1302_v5, %v4029_v0  ;;  %v4048_v5 = vld [vmem:[%s5351_s6 + $0xa] ss:$0 sm:$0xff] }
 0xcff   : > { %v1617_v59 = vpop.permute.xlu2 %1616 }
 0xd00   : > { %v1622_v60 = vsel %vm379_vm1, %v1617_v59, 0 }
 0xd01   : > { %1631 = vmatpush.bf16.xpose.msrb.mxu1 %v1622_v60 }
 0xd09   : > { %v4033_v1 = vpop.permute.xlu0 %4032 }
 0xd0a   : > { %v4035_v6 = vunpack.i.h.bf16 %v4033_v1  ;;  %v4034_v7 = vunpack.i.l.bf16 %v4033_v1 }
 0xd0c   : > { %v1307_v10 = vsel %vm684_vm6, %v1305_v8, %v4035_v6  ;;  %v1306_v11 = vsel %vm684_vm6, %v1304_v9, %v4034_v7 }
 0xd0d   : > { %v1308_v12 = vpack.c.bf16 %v1307_v10, %v1306_v11 }
 0xd0f   : > { %3546 = vmatmul.msk.bf16.vlgmr.msra.gmra.mxu1 %vm349_vm0, %v1308_v12 }
 0xd1f   : > { %3621 = vmatmul.msk.bf16.vlgmr.msrb.gmra.mxu1 %vm379_vm1, %v1612_v52 }
 0xd8c   : > { %v1340_v23 = vpop.f32.mrf.mxu1 }
 0xd8d   : > { %v1341_v13 = vadd.f32 %v4047_v22, %v1340_v23 }
 0xd8f   : > { %v1345_v15 = vadd.f32 %v1341_v13, %v4613_v30 }
 0xd91   : > { %v1349_v16 = vsel %vm349_vm0, %v1345_v15, 0.0 }
 0xd92   : > { %1350 = vadd.xlane.f32.xlu1 %v1349_v16 }
 0xd94   : > { %v1342_v17 = vpop.f32.mrf.mxu1 }
 0xd95   : > { %v1343_v18 = vadd.f32 %v4047_v22, %v1342_v17  ;;  %v4049_v22 = vld [vmem:[%s5351_s6 + $0xb] ss:$0 sm:$0xff] }
 0xd97   : > { %v1346_v19 = vadd.f32 %v1343_v18, %v4615_v31 }
 0xd99   : > { %v1352_v20 = vsel %vm731_vm7, %v1346_v19, 0.0 }
 0xd9a   : > { %1353 = vadd.xlane.f32.xlu0 %v1352_v20 }
 0xd9c   : > { %v1633_v30 = vpop.f32.mrf.mxu1 }
 0xd9d   : > { %v1634_v24 = vadd.f32 %v1633_v30, %v4751_v21  ;;  %v3913_v30 = vld [vmem:[%s5350_s5 + $0x78] sm:$0xff] }
 0xd9e   : > { %1506 = vmatpush.bf16.msrb.mxu2 %v3913_v30 }
 0xd9f   : > { %v1637_v25 = vsel %vm379_vm1, %v1634_v24, -inf }
 0xda0   : > { %1638 = vmax.xlane.f32.xlu2 %v1637_v25 }
 0xda4   : > { %v1635_v27 = vpop.f32.mrf.mxu1 }
 0xdb8   : > { %1729 = vrot.lane.b32.xlu2 %v4715_v53, %s5422_s17 }
 0xe05   : > { %v1351_v28 = vpop.xlane.xlu1 %1350 }
 0xe06   : > { %v1355_v29 = vmul.f32 %v1351_v28, %v4542_v2 }
 0xe08   : > { %v1357_v41 = vsub.f32 %v1345_v15, %v1355_v29 }
 0xe0a   : > { %v1359_v31 = vmul.f32 %v1357_v41, %v1357_v41 }
 0xe0c   : > { %v1361_v32 = vsel %vm349_vm0, %v1359_v31, 0.0  ;;  %v3911_v31 = vld [vmem:[%s5350_s5 + $0x68] sm:$0xff] }
 0xe0d   : > { %v1354_v33 = vpop.xlane.xlu0 %1353  ;;  %1362 = vadd.xlane.f32.xlu1 %v1361_v32  ;;  %v3910_v32 = vld [vmem:[%s5350_s5 + $0x60] sm:$0xff] }
 0xe0e   : > { %v1356_v34 = vmul.f32 %v1354_v33, %v4542_v2  ;;  %v3909_v33 = vld [vmem:[%s5350_s5 + $0x58] sm:$0xff] }
 0xe10   : > { %v4760_v36 = vsub.f32 %v1346_v19, %v1356_v34  ;;  %v3908_v34 = vld [vmem:[%s5350_s5 + $0x50] sm:$0xff] }
 0xe12   : > { %v1360_v37 = vmul.f32 %v4760_v36, %v4760_v36 }
 0xe13   : > { %v1639_v35 = vpop.xlane.xlu2 %1638 }
 0xe14   : > { %v1640_v38 = vsub.f32 %v1634_v24, %v1639_v35  ;;  %v1364_v39 = vsel %vm731_vm7, %v1360_v37, 0.0  ;;  %v3912_v24 = vld [vmem:[%s5350_s5 + $0x70] sm:$0xff]  ;;  %v3906_v37 = vld [vmem:[%s5350_s5 + $0x40] sm:$0xff] }
 0xe15   : > { %1365 = vadd.xlane.f32.xlu0 %v1364_v39  ;;  %1507 = vmatpush.bf16.msrb.mxu2 %v3912_v24 }
 0xe16   : > { %v1641_v14 = vmul.f32 1.442695, %v1640_v38 }
 0xe18   : > { %4152 = vpow2.f32 %v1641_v14 }
 0xe19   : > { %1508 = vmatpush.bf16.msrb.mxu2 %v3911_v31 }
 0xe1b   : > { %v1730_v51 = vpop.permute.xlu2 %1729 }
 0xe1c   : > { %v1735_v20 = vsel %vm379_vm1, %v1730_v51, 0 }
 0xe1d   : > { %1509 = vmatpush.bf16.msrb.mxu2 %v3910_v32 }
 0xe1e   : > { %v4765_v40 = vpop.eup %4152 }
 0xe1f   : > { %v1643_v43 = vsel %vm379_vm1, %v4765_v40, 0.0 }
 0xe20   : > { %1644 = vadd.xlane.f32.xlu2 %v1643_v43  ;;  %v4050_v43 = vld [vmem:[%s5351_s6 + $0xc] ss:$0 sm:$0xff] }
 0xe21   : > { %1510 = vmatpush.bf16.msrb.mxu2 %v3909_v33 }
 0xe25   : > { %1511 = vmatpush.bf16.msrb.mxu2 %v3908_v34 }
 0xe26   : > { %1649 = vrot.lane.b32.xlu1 %v4715_v53, %s5409_s9 }
 0xe29   : > { %1673 = vrot.lane.b32.xlu0 %v4715_v53, %s5408_s29 }
 0xe2e   : > { %1727 = vrot.lane.b32.xlu1 %v4715_v53, %s5407_s8 }
 0xe31   : > { %1671 = vrot.lane.b32.xlu0 %v4715_v53, %s5423_s1 }
 0xe38   : > { %1785 = vrot.lane.b32.xlu2 %v4715_v53, %s5410_s13 }
 0xe39   : > { %1783 = vrot.lane.b32.xlu0 %v4715_v53, %s5411_s18 }
 0xe80   : > { %v1363_v46 = vpop.xlane.xlu1 %1362 }
 0xe81   : > { %v1367_v47 = vmul.f32 %v1363_v46, %v4542_v2 }
 0xe83   : > { %v1369_v48 = vadd.f32 1e-05, %v1367_v47 }
 0xe85   : > { %4154 = vrsqrt.f32 %v1369_v48  ;;  %vm1377_vm13 = vweird.f32 %v1369_v48 }
 0xe88   : > { %v1366_v49 = vpop.xlane.xlu0 %1365 }
 0xe89   : > { %v1368_v50 = vmul.f32 %v1366_v49, %v4542_v2 }
 0xe8b   : > { %v4155_v26 = vpop.eup %4154  ;;  %v1370_v52 = vadd.f32 1e-05, %v1368_v50 }
 0xe8c   : > { %v1372_v3 = vmul.f32 %v4155_v26, %v1369_v48  ;;  %vm1378_vm3 = vweird.f32 %v4155_v26 }
 0xe8d   : > { %4156 = vrsqrt.f32 %v1370_v52  ;;  %vm1379_vm15 = vmor %vm1377_vm13, %vm1378_vm3  ;;  %vm1387_vm9 = vweird.f32 %v1370_v52 }
 0xe8e   : > { %v1373_v54 = vmul.f32 %v4155_v26, %v1372_v3 }
 0xe90   : > { %v1374_v55 = vmul.f32 0.5, %v1373_v54 }
 0xe92   : > { %v1375_v56 = vsub.f32 1.5, %v1374_v55 }
 0xe93   : > { %v4157_v57 = vpop.eup %4156  ;;  %v1645_v58 = vpop.xlane.xlu2 %1644 }
 0xe94   : > { %v1376_v59 = vmul.f32 %v4155_v26, %v1375_v56  ;;  %v1382_v60 = vmul.f32 %v4157_v57, %v1370_v52  ;;  %vm1388_vm8 = vweird.f32 %v4157_v57  ;;  %4158 = vrcp.f32 %v1645_v58 }
 0xe95   : > { %vm1389_vm10 = vmor %vm1387_vm9, %vm1388_vm8 }
 0xe96   : > { %v1383_v61 = vmul.f32 %v4157_v57, %v1382_v60  ;;  %v1380_v62 = vsel %vm1379_vm15, %v4155_v26, %v1376_v59 }
 0xe97   : > { %v1391_v6 = vmul.f32 %v1380_v62, %v1357_v41 }
 0xe98   : > { %v1384_v63 = vmul.f32 0.5, %v1383_v61  ;;  %v1650_v0 = vpop.permute.xlu1 %1649 }
 0xe99   : > { %v1656_v1 = vsel %vm1654_vm14, %v1650_v0, 0  ;;  %v1394_v23 = vmul.f32 %v4048_v5, %v1391_v6 }
 0xe9a   : > { %v1385_v4 = vsub.f32 1.5, %v1384_v63  ;;  %1665 = vmatpush.bf16.msrb.mxu3 %v1656_v1  ;;  %v4159_v25 = vpop.eup %4158 }
 0xe9b   : > { %v1674_v7 = vpop.permute.xlu0 %1673  ;;  %v1786_v8 = vpop.permute.xlu2 %1785  ;;  %v4799_v16 = vadd.f32 %v4049_v22, %v1394_v23  ;;  %v1647_v27 = vmul.f32 %v4159_v25, %v4765_v40 }
 0xe9c   : > { %v1386_v9 = vmul.f32 %v4157_v57, %v1385_v4  ;;  %v1679_v10 = vsel %vm379_vm1, %v1674_v7, 0  ;;  %v1791_v11 = vsel %vm379_vm1, %v1786_v8, 0 }
 0xe9d   : > { %1688 = vmatpush.bf16.xpose.msrb.mxu0 %v1679_v10  ;;  %v1648_v29 = vpack.c.bf16 %v1647_v27, %v1647_v27 }
 0xe9e   : > { %v1390_v12 = vsel %vm1389_vm10, %v4157_v57, %v1386_v9 }
 0xe9f   : > { %v1392_v13 = vmul.f32 %v1390_v12, %v4760_v36  ;;  %v3907_v36 = vld [vmem:[%s5350_s5 + $0x48] sm:$0xff] }
 0xea0   : > { %v1728_v41 = vpop.permute.xlu1 %1727  ;;  %1512 = vmatpush.bf16.msrb.mxu2 %v3907_v36 }
 0xea1   : > { %v1395_v15 = vmul.f32 %v4048_v5, %v1392_v13 }
 0xea3   : > { %v4801_v17 = vadd.f32 %v4049_v22, %v1395_v15  ;;  %v1672_v18 = vpop.permute.xlu0 %1671  ;;  %v4051_v22 = vld [vmem:[%s5351_s6 + $0xd] ss:$0 sm:$0xff] }
 0xea4   : > { %3623 = vmatmul.msk.bf16.vlgmr.msrb.gmra.mxu0 %vm379_vm1, %v1672_v18  ;;  %1513 = vmatpush.bf16.msrb.mxu2 %v3906_v37 }
 0xea5   : > { %1800 = vmatpush.bf16.xpose.msra.mxu0 %v1791_v11  ;;  %v1399_v19 = vpack.c.bf16 %v4801_v17, %v4799_v16 }
 0xea7   : > { %3559 = vmatmul.msk.bf16.vlgmr.msra.gmra.mxu3 %vm349_vm0, %v1399_v19 }
 0xea8   : > { %1744 = vmatpush.bf16.xpose.msra.mxu3 %v1735_v20 }
 0xeab   : > { %v1784_v28 = vpop.permute.xlu0 %1783 }
 0xeb4   : > { %3627 = vmatmul.msk.bf16.vlgmr.msra.gmra.mxu0 %vm379_vm1, %v1784_v28 }
 0xeb7   : > { %3622 = vmatmul.msk.bf16.vlgmr.msrb.gmra.mxu3 %vm379_vm1, %v1648_v29 }
 0xec7   : > { %3625 = vmatmul.msk.bf16.vlgmr.msra.gmra.mxu3 %vm379_vm1, %v1728_v41 }
 0xf21   : > { %v1690_v35 = vpop.f32.mrf.mxu0 }
 0xf22   : > { %v1691_v38 = vadd.f32 %v1690_v35, %v4751_v21 }
 0xf24   : > { %v1694_v39 = vsel %vm379_vm1, %v1691_v38, -inf }
 0xf25   : > { %1695 = vmax.xlane.f32.xlu1 %v1694_v39 }
 0xf29   : > { %v1692_v14 = vpop.f32.mrf.mxu0 }
 0xf2a   : > { %v1431_v40 = vpop.f32.mrf.mxu3 }
 0xf2b   : > { %v1432_v44 = vadd.f32 %v4050_v43, %v1431_v40 }
 0xf2d   : > { %v1436_v50 = vmax.f32 %v1432_v44, 0.0 }
 0xf31   : > { %v1802_v45 = vpop.f32.mrf.mxu0 }
 0xf32   : > { %v1803_v46 = vadd.f32 %v1802_v45, %v4751_v21  ;;  %v1433_v47 = vpop.f32.mrf.mxu3 }
 0xf33   : > { %v1434_v48 = vadd.f32 %v4050_v43, %v1433_v47 }
 0xf34   : > { %v1806_v49 = vsel %vm379_vm1, %v1803_v46, -inf }
 0xf35   : > { %v1437_v26 = vmax.f32 %v1434_v48, 0.0  ;;  %1807 = vmax.xlane.f32.xlu0 %v1806_v49 }
 0xf37   : > { %v1438_v51 = vpack.c.bf16 %v1437_v26, %v1436_v50  ;;  %v3917_v26 = vld [vmem:[%s5349_s4 + $0x78] sm:$0xff] }
 0xf38   : > { %1883 = vmatpush.bf16.msrb.mxu3 %v3917_v26 }
 0xf39   : > { %1514 = vmatmul.bf16.vlgmr.msrb.gmra.mxu2 %v1438_v51  ;;  %v1804_v52 = vpop.f32.mrf.mxu0 }
 0xf3a   : > { %v4843_v3 = vpop.f32.mrf.mxu3  ;;  %v3916_v52 = vld [vmem:[%s5349_s4 + $0x70] sm:$0xff] }
 0xf3c   : > { %1884 = vmatpush.bf16.msrb.mxu3 %v3916_v52 }
 0xf3e   : > { %1706 = vrot.lane.b32.xlu1 %v4715_v53, %s5412_s23 }
 0xf42   : > { %v1669_v54 = vpop.f32.mrf.mxu3 }
 0xf4a   : > { %v1746_v55 = vpop.f32.mrf.mxu3 }
 0xf4b   : > { %v1747_v56 = vadd.f32 %v1746_v55, %v4751_v21 }
 0xf4d   : > { %v1750_v57 = vsel %vm379_vm1, %v1747_v56, -inf }
 0xf4e   : > { %1751 = vmax.xlane.f32.xlu2 %v1750_v57 }
 0xf52   : > { %v1748_v58 = vpop.f32.mrf.mxu3 }
 0xf98   : > { %v1696_v59 = vpop.xlane.xlu1 %1695 }
 0xf99   : > { %v1697_v60 = vsub.f32 %v1691_v38, %v1696_v59 }
 0xf9b   : > { %v1698_v61 = vmul.f32 1.442695, %v1697_v60 }
 0xf9d   : > { %4160 = vpow2.f32 %v1698_v61 }
 0xfa3   : > { %v4161_v62 = vpop.eup %4160 }
 0xfa4   : > { %v1700_v63 = vsel %vm379_vm1, %v4161_v62, 0.0 }
 0xfa5   : > { %1701 = vadd.xlane.f32.xlu2 %v1700_v63 }
 0xfa8   : > { %v1808_v0 = vpop.xlane.xlu0 %1807 }
 0xfa9   : > { %v1809_v1 = vsub.f32 %v1803_v46, %v1808_v0 }
 0xfab   : > { %v1810_v4 = vmul.f32 1.442695, %v1809_v1 }
 0xfad   : > { %4162 = vpow2.f32 %v1810_v4 }
 0xfb0   : > { %v1707_v5 = vpop.permute.xlu1 %1706 }
 0xfb1   : > { %v1712_v6 = vsel %vm1654_vm14, %v1707_v5, 0 }
 0xfb2   : > { %1721 = vmatpush.bf16.msra.mxu1 %v1712_v6 }
 0xfb3   : > { %v4163_v21 = vpop.eup %4162 }
 0xfb4   : > { %v1812_v7 = vsel %vm379_vm1, %v4163_v21, 0.0 }
 0xfb5   : > { %1813 = vadd.xlane.f32.xlu2 %v1812_v7 }
 0xfbc   : > { %v1515_v23 = vpop.f32.mrf.mxu2 }
 0xfbd   : > { %v1516_v13 = vadd.f32 %v4051_v22, %v1515_v23 }
 0xfbf   : > { %v1520_v15 = vadd.f32 %v1516_v13, %v4799_v16 }
 0xfc1   : > { %v1752_v8 = vpop.xlane.xlu2 %1751  ;;  %v1524_v18 = vsel %vm349_vm0, %v1520_v15, 0.0 }
 0xfc2   : > { %v1753_v9 = vsub.f32 %v1747_v56, %v1752_v8 }
 0xfc4   : > { %v1754_v10 = vmul.f32 1.442695, %v1753_v9  ;;  %v1517_v46 = vpop.f32.mrf.mxu2 }
 0xfc5   : > { %v1518_v49 = vadd.f32 %v4051_v22, %v1517_v46  ;;  %v4055_v46 = vld [vmem:[%s5351_s6 + $0x18] ss:$0 sm:$0xff] }
 0xfc6   : > { %4164 = vpow2.f32 %v1754_v10  ;;  %v3919_v10 = vld [vmem:[%s5349_s4 + $0xa8] sm:$0xff] }
 0xfc7   : > { %v1521_v50 = vadd.f32 %v1518_v49, %v4801_v17  ;;  %1965 = vmatpush.bf16.msrb.mxu0 %v3919_v10 }
 0xfc9   : > { %v1527_v51 = vsel %vm731_vm7, %v1521_v50, 0.0 }
 0xfcc   : > { %v4165_v11 = vpop.eup %4164 }
 0xfcd   : > { %1818 = vrot.lane.b32.xlu2 %v4715_v53, %s5414_s22  ;;  %v1756_v12 = vsel %vm379_vm1, %v4165_v11, 0.0 }
 0xfce   : > { %1757 = vadd.xlane.f32.xlu0 %v1756_v12 }
 0xfe2   : > { %1762 = vrot.lane.b32.xlu0 %v4715_v53, %s5413_s15 }
 0xff6   : > { %1525 = vadd.xlane.f32.xlu2 %v1524_v18 }
0x1018   : > { %v1702_v19 = vpop.xlane.xlu2 %1701 }
0x1019   : > { %4166 = vrcp.f32 %v1702_v19 }
0x101f   : > { %v4167_v20 = vpop.eup %4166 }
0x1020   : > { %v1704_v30 = vmul.f32 %v4167_v20, %v4161_v62 }
0x1022   : > { %v1705_v24 = vpack.c.bf16 %v1704_v30, %v1704_v30 }
0x1024   : > { %3624 = vmatmul.msk.bf16.vlgmr.msra.gmra.mxu1 %vm379_vm1, %v1705_v24 }
0x1028   : > { %v1814_v25 = vpop.xlane.xlu2 %1813 }
0x1029   : > { %4168 = vrcp.f32 %v1814_v25 }
0x102f   : > { %v4169_v53 = vpop.eup %4168 }
0x1030   : > { %v1816_v27 = vmul.f32 %v4169_v53, %v4163_v21  ;;  %v1819_v28 = vpop.permute.xlu2 %1818 }
0x1031   : > { %v1824_v29 = vsel %vm1654_vm14, %v1819_v28, 0 }
0x1032   : > { %v1817_v41 = vpack.c.bf16 %v1816_v27, %v1816_v27  ;;  %1833 = vmatpush.bf16.msrb.mxu1 %v1824_v29  ;;  %v4052_v29 = vld [vmem:[%s5351_s6 + $0xe] ss:$0 sm:$0xff] }
0x1035   : > { %3628 = vmatmul.msk.bf16.vlgmr.msrb.gmra.mxu1 %vm379_vm1, %v1817_v41 }
0x1041   : > { %v1758_v16 = vpop.xlane.xlu0 %1757 }
0x1042   : > { %4170 = vrcp.f32 %v1758_v16 }
0x1048   : > { %v4171_v31 = vpop.eup %4170 }
0x1049   : > { %v1760_v32 = vmul.f32 %v4171_v31, %v4165_v11 }
0x104b   : > { %v1761_v36 = vpack.c.bf16 %v1760_v32, %v1760_v32  ;;  %v4053_v32 = vld [vmem:[%s5351_s6 + $0xf] ss:$0 sm:$0xff] }
0x1054   : > { %v1763_v33 = vpop.permute.xlu0 %1762 }
0x1055   : > { %v1768_v34 = vsel %vm1654_vm14, %v1763_v33, 0 }
0x1056   : > { %1777 = vmatpush.bf16.msra.mxu2 %v1768_v34 }
0x1059   : > { %3626 = vmatmul.msk.bf16.vlgmr.msra.gmra.mxu2 %vm379_vm1, %v1761_v36 }
0x105a   : > { %1948 = vmatpush.bf16.msrb.mxu2 %v3919_v10 }
0x1069   : > { %v1526_v37 = vpop.xlane.xlu2 %1525 }
0x106a   : > { %v1530_v35 = vmul.f32 %v1526_v37, %v4542_v2 }
0x106c   : > { %v4868_v38 = vsub.f32 %v1520_v15, %v1530_v35 }
0x106e   : > { %v1534_v39 = vmul.f32 %v4868_v38, %v4868_v38 }
0x1070   : > { %v1536_v14 = vsel %vm349_vm0, %v1534_v39, 0.0 }
0x1071   : > { %1537 = vadd.xlane.f32.xlu2 %v1536_v14 }
0x10a1   : > { %v1723_v40 = vpop.f32.mrf.mxu1 }
0x10a2   : > { %1840 = vrot.lane.b32.xlu1 %v1723_v40, %s5415_s20 }
0x10a9   : > { %v1725_v43 = vpop.f32.mrf.mxu1 }
0x10b2   : > { %v1835_v44 = vpop.f32.mrf.mxu1 }
0x10b3   : > { %1848 = vrot.lane.b32.xlu1 %v1835_v44, %s5418_s14 }
0x10ba   : > { %v1837_v45 = vpop.f32.mrf.mxu1 }
0x10dc   : > { %v1779_v47 = vpop.f32.mrf.mxu2 }
0x10dd   : > { %1844 = vrot.lane.b32.xlu0 %v1779_v47, %s5417_s0 }
0x10e4   : > { %v1781_v48 = vpop.f32.mrf.mxu2  ;;  %v1538_v21 = vpop.xlane.xlu2 %1537 }
0x10e5   : > { %v1542_v8 = vmul.f32 %v1538_v21, %v4542_v2 }
0x10e7   : > { %v1544_v9 = vadd.f32 1e-05, %v1542_v8 }
0x10e9   : > { %4172 = vrsqrt.f32 %v1544_v9  ;;  %vm1552_vm11 = vweird.f32 %v1544_v9 }
0x10ef   : > { %v4173_v11 = vpop.eup %4172 }
0x10f0   : > { %v1547_v12 = vmul.f32 %v4173_v11, %v1544_v9 }
0x10f2   : > { %v1548_v22 = vmul.f32 %v4173_v11, %v1547_v12 }
0x10f4   : > { %v1549_v18 = vmul.f32 0.5, %v1548_v22 }
0x10f6   : > { %v1550_v19 = vsub.f32 1.5, %v1549_v18 }
0x10f8   : > { %v1551_v30 = vmul.f32 %v4173_v11, %v1550_v19 }
0x1107   : > { %1528 = vadd.xlane.f32.xlu0 %v1527_v51 }
0x1114   : > { %v1841_v54 = vpop.permute.xlu1 %1840 }
0x1115   : > { %v1851_v55 = vsel %vm379_vm1, %v4843_v3, %v1841_v54  ;;  %v4054_v3 = vld [vmem:[%s5351_s6 + $0x11] ss:$0 sm:$0xff] }
0x1125   : > { %v1849_v57 = vpop.permute.xlu1 %1848 }
0x114f   : > { %v1845_v56 = vpop.permute.xlu0 %1844 }
0x1150   : > { %v1852_v17 = vsel %vm681_vm5, %v1851_v55, %v1845_v56 }
0x1151   : > { %v1853_v58 = vsel %vm684_vm6, %v1852_v17, %v1849_v57 }
0x1152   : > { %v1854_v59 = vpack.c.bf16 %v1853_v58, %v1853_v58 }
0x1154   : > { %3641 = vmatmul.msk.bf16.vlgmr.msrb.gmra.mxu3 %vm349_vm0, %v1854_v59 }
0x117a   : > { %v1529_v60 = vpop.xlane.xlu0 %1528 }
0x117b   : > { %v1531_v61 = vmul.f32 %v1529_v60, %v4542_v2 }
0x117d   : > { %v1533_v62 = vsub.f32 %v1521_v50, %v1531_v61 }
0x117f   : > { %v1535_v63 = vmul.f32 %v1533_v62, %v1533_v62 }
0x1181   : > { %v1539_v0 = vsel %vm731_vm7, %v1535_v63, 0.0  ;;  %vm1553_vm7 = vweird.f32 %v4173_v11  ;;  %v4056_v63 = vld [vmem:[%s5351_s6 + $0x12] ss:$0 sm:$0xff] }
0x1182   : > { %1540 = vadd.xlane.f32.xlu0 %v1539_v0  ;;  %vm1554_vm12 = vmor %vm1552_vm11, %vm1553_vm7 }
0x1183   : > { %v1555_v53 = vsel %vm1554_vm12, %v4173_v11, %v1551_v30 }
0x1184   : > { %v1566_v41 = vmul.f32 %v1555_v53, %v4868_v38 }
0x1186   : > { %v1569_v33 = vmul.f32 %v4052_v29, %v1566_v41 }
0x1188   : > { %v1572_v37 = vadd.f32 %v4053_v32, %v1569_v33 }
0x11d7   : > { %v1886_v1 = vpop.f32.mrf.mxu3 }
0x11d8   : > { %v1887_v4 = vadd.f32 %v4054_v3, %v1886_v1  ;;  %v4057_v3 = vld [vmem:[%s5351_s6 + $0x13] ss:$0 sm:$0xff] }
0x11da   : > { %v1890_v5 = vadd.f32 %v1887_v4, %v4705_v42  ;;  %v3918_v42 = vld [vmem:[%s5349_s4 + $0xa0] sm:$0xff] }
0x11db   : > { %1966 = vmatpush.bf16.msrb.mxu0 %v3918_v42  ;;  %1949 = vmatpush.bf16.msrb.mxu2 %v3918_v42 }
0x11dc   : > { %v1893_v6 = vsel %vm349_vm0, %v1890_v5, 0.0 }
0x11dd   : > { %1894 = vadd.xlane.f32.xlu1 %v1893_v6 }
0x11df   : > { %v1888_v7 = vpop.f32.mrf.mxu3 }
0x11f5   : > { %v1541_v23 = vpop.xlane.xlu0 %1540 }
0x11f6   : > { %v1543_v13 = vmul.f32 %v1541_v23, %v4542_v2 }
0x11f8   : > { %v1545_v15 = vadd.f32 1e-05, %v1543_v13 }
0x11fa   : > { %4174 = vrsqrt.f32 %v1545_v15  ;;  %vm1562_vm13 = vweird.f32 %v1545_v15 }
0x1200   : > { %v4175_v20 = vpop.eup %4174 }
0x1201   : > { %v1557_v24 = vmul.f32 %v4175_v20, %v1545_v15  ;;  %vm1563_vm3 = vweird.f32 %v4175_v20 }
0x1202   : > { %vm1564_vm15 = vmor %vm1562_vm13, %vm1563_vm3 }
0x1203   : > { %v1558_v25 = vmul.f32 %v4175_v20, %v1557_v24  ;;  %v4952_v24 = vld [vmem:[%s4420_s21] ss:$0 sm:$0xff] }
0x1205   : > { %v1559_v27 = vmul.f32 0.5, %v1558_v25 }
0x1207   : > { %v1560_v28 = vsub.f32 1.5, %v1559_v27 }
0x1209   : > { %v1561_v16 = vmul.f32 %v4175_v20, %v1560_v28 }
0x120b   : > { %v1565_v31 = vsel %vm1564_vm15, %v4175_v20, %v1561_v16 }
0x120c   : > { %v1567_v34 = vmul.f32 %v1565_v31, %v1533_v62 }
0x120e   : > { %v1570_v36 = vmul.f32 %v4052_v29, %v1567_v34 }
0x1210   : > { %v1573_v35 = vadd.f32 %v4053_v32, %v1570_v36 }
0x1212   : > { %v4911_v39 = vpack.c.bf16 %v1573_v35, %v1572_v37 }
0x1214   : > { %3655 = vmatmul.msk.bf16.vlgmr.msrb.gmra.mxu0 %vm349_vm0, %v4911_v39 }
0x1250   : > { %v1895_v14 = vpop.xlane.xlu1 %1894 }
0x1251   : > { %v1896_v38 = vmul.f32 %v1895_v14, %v4542_v2 }
0x1253   : > { %v1897_v40 = vsub.f32 %v1890_v5, %v1896_v38 }
0x1255   : > { %v1898_v43 = vmul.f32 %v1897_v40, %v1897_v40 }
0x1257   : > { %v1899_v44 = vsel %vm349_vm0, %v1898_v43, 0.0 }
0x1258   : > { %1900 = vadd.xlane.f32.xlu1 %v1899_v44 }
0x1291   : > { %v1968_v45 = vpop.f32.mrf.mxu0 }
0x1292   : > { %v1969_v47 = vadd.f32 %v4055_v46, %v1968_v45 }
0x1294   : > { %v1973_v49 = vpack.c.bf16 %v1969_v47, %v1969_v47 }
0x1296   : > { %v1977_v51 = vunpack.c.l.b16 %v1973_v49 }
0x1299   : > { %v1970_v48 = vpop.f32.mrf.mxu0 }
0x129a   : > { %v1971_v50 = vadd.f32 %v4055_v46, %v1970_v48 }
0x129c   : > { %v1974_v26 = vpack.c.bf16 %v1971_v50, %v1971_v50 }
0x129e   : > { %v1978_v52 = vunpack.c.l.b16 %v1974_v26 }
0x12a0   : > { %v4920_v54 = vpack.c.b16 %v1978_v52, %v1977_v51 }
0x12a2   : > { %2039 = vrot.lane.b32.xlu0 %v4920_v54, %s5408_s29  ;;  %1980 = vrot.lane.b32.xlu2 %v4920_v54, %s5419_s10 }
0x12aa   : > { %2095 = vrot.lane.b32.xlu0 %v4920_v54, %s5422_s17  ;;  %2151 = vrot.lane.b32.xlu2 %v4920_v54, %s5410_s13 }
0x12cb   : > { %v1901_v55 = vpop.xlane.xlu1 %1900 }
0x12cc   : > { %v1902_v56 = vmul.f32 %v1901_v55, %v4542_v2 }
0x12ce   : > { %v1903_v57 = vadd.f32 1e-05, %v1902_v56 }
0x12d0   : > { %4176 = vrsqrt.f32 %v1903_v57  ;;  %vm1910_vm9 = vweird.f32 %v1903_v57 }
0x12d6   : > { %v4177_v17 = vpop.eup %4176 }
0x12d7   : > { %v1905_v58 = vmul.f32 %v4177_v17, %v1903_v57  ;;  %vm1911_vm8 = vweird.f32 %v4177_v17 }
0x12d8   : > { %vm1912_vm10 = vmor %vm1910_vm9, %vm1911_vm8 }
0x12d9   : > { %v1906_v59 = vmul.f32 %v4177_v17, %v1905_v58 }
0x12db   : > { %v1907_v60 = vmul.f32 0.5, %v1906_v59 }
0x12dd   : > { %v1908_v61 = vsub.f32 1.5, %v1907_v60 }
0x12df   : > { %v1909_v62 = vmul.f32 %v4177_v17, %v1908_v61 }
0x12e1   : > { %v1913_v0 = vsel %vm1912_vm10, %v4177_v17, %v1909_v62 }
0x12e2   : > { %v1914_v1 = vmul.f32 %v1913_v0, %v1897_v40 }
0x12e4   : > { %v1916_v4 = vmul.f32 %v4056_v63, %v1914_v1 }
0x12e6   : > { %v4937_v5 = vadd.f32 %v4057_v3, %v1916_v4 }
0x12e8   : > { %v1919_v6 = vpack.c.bf16 %v4937_v5, %v4937_v5 }
0x12ea   : > { %3654 = vmatmul.msk.bf16.vlgmr.msrb.gmra.mxu2 %vm349_vm0, %v1919_v6 }
0x12fc   : > { %v1981_v21 = vpop.permute.xlu2 %1980 }
0x12fd   : > { %v1986_v7 = vsel %vm379_vm1, %v1981_v21, 0 }
0x12fe   : > { %1995 = vmatpush.bf16.xpose.msra.mxu1 %v1986_v7 }
0x1304   : > { %v2152_v8 = vpop.permute.xlu2 %2151 }
0x1305   : > { %v2157_v11 = vsel %vm379_vm1, %v2152_v8, 0 }
0x1314   : > { %v2040_v9 = vpop.permute.xlu0 %2039 }
0x1315   : > { %v2045_v10 = vsel %vm379_vm1, %v2040_v9, 0 }
0x1316   : > { %2054 = vmatpush.bf16.xpose.msra.mxu2 %v2045_v10 }
0x131c   : > { %v2096_v42 = vpop.permute.xlu0 %2095 }
0x131d   : > { %v2101_v12 = vsel %vm379_vm1, %v2096_v42, 0 }
0x131e   : > { %2166 = vmatpush.bf16.xpose.msrb.mxu2 %v2157_v11  ;;  %2110 = vmatpush.bf16.xpose.msrb.mxu1 %v2101_v12 }
0x136d   : > { %v1951_v22 = vpop.f32.mrf.mxu2 }
0x136e   : > { %v1952_v23 = vadd.f32 %v4055_v46, %v1951_v22 }
0x1370   : > { %v1955_v13 = vpack.c.bf16 %v1952_v23, %v1952_v23 }
0x1372   : > { %v2035_v15 = vunpack.c.l.b16 %v1955_v13  ;;  %3656 = vmatmul.msk.bf16.vlgmr.msra.gmra.mxu1 %vm379_vm1, %v1955_v13 }
0x1374   : > { %v2036_v18 = vpack.c.b16 %v2035_v15, %v2035_v15 }
0x1375   : > { %v1953_v19 = vpop.f32.mrf.mxu2 }
0x1376   : > { %2037 = vrot.lane.b32.xlu1 %v2036_v18, %s5423_s1  ;;  %2149 = vrot.lane.b32.xlu0 %v2036_v18, %s5411_s18 }
0x137e   : > { %2093 = vrot.lane.b32.xlu1 %v2036_v18, %s5407_s8 }
0x13e8   : > { %v2038_v20 = vpop.permute.xlu1 %2037  ;;  %v2150_v29 = vpop.permute.xlu0 %2149 }
0x13e9   : > { %3658 = vmatmul.msk.bf16.vlgmr.msra.gmra.mxu2 %vm379_vm1, %v2038_v20 }
0x13ef   : > { %v1997_v30 = vpop.f32.mrf.mxu1 }
0x13f0   : > { %v1998_v25 = vadd.f32 %v4952_v24, %v1997_v30  ;;  %v2094_v53 = vpop.permute.xlu1 %2093 }
0x13f1   : > { %3660 = vmatmul.msk.bf16.vlgmr.msrb.gmra.mxu1 %vm379_vm1, %v2094_v53 }
0x13f2   : > { %v2001_v27 = vsel %vm400_vm2, %v1998_v25, -inf }
0x13f3   : > { %2002 = vmax.xlane.f32.xlu2 %v2001_v27 }
0x13f7   : > { %v1999_v28 = vpop.f32.mrf.mxu1 }
0x13f9   : > { %3662 = vmatmul.msk.bf16.vlgmr.msrb.gmra.mxu2 %vm379_vm1, %v2150_v29 }
0x1466   : > { %v2003_v41 = vpop.xlane.xlu2 %2002 }
0x1467   : > { %v2004_v16 = vsub.f32 %v1998_v25, %v2003_v41 }
0x1469   : > { %v2005_v31 = vmul.f32 1.442695, %v2004_v16 }
0x146b   : > { %4178 = vpow2.f32 %v2005_v31 }
0x146c   : > { %v2056_v32 = vpop.f32.mrf.mxu2 }
0x146d   : > { %v2057_v33 = vadd.f32 %v4952_v24, %v2056_v32 }
0x146e   : > { %v2112_v34 = vpop.f32.mrf.mxu1 }
0x146f   : > { %v2113_v36 = vadd.f32 %v4952_v24, %v2112_v34  ;;  %v2060_v37 = vsel %vm400_vm2, %v2057_v33, -inf  ;;  %v3920_v34 = vld [vmem:[%s5349_s4 + $0xb0] sm:$0xff] }
0x1470   : > { %2061 = vmax.xlane.f32.xlu1 %v2060_v37 }
0x1471   : > { %v2116_v35 = vsel %vm400_vm2, %v2113_v36, -inf  ;;  %v4179_v14 = vpop.eup %4178 }
0x1472   : > { %2117 = vmax.xlane.f32.xlu0 %v2116_v35  ;;  %v2007_v43 = vsel %vm400_vm2, %v4179_v14, 0.0 }
0x1474   : > { %v2058_v38 = vpop.f32.mrf.mxu2 }
0x1476   : > { %v2114_v40 = vpop.f32.mrf.mxu1 }
0x1478   : > { %2008 = vadd.xlane.f32.xlu1 %v2007_v43 }
0x147c   : > { %v2168_v44 = vpop.f32.mrf.mxu2 }
0x147d   : > { %v2169_v45 = vadd.f32 %v4952_v24, %v2168_v44  ;;  %v4058_v44 = vld [vmem:[%s5351_s6 + $0x19] ss:$0 sm:$0xff] }
0x147f   : > { %v2172_v46 = vsel %vm400_vm2, %v2169_v45, -inf }
0x1480   : > { %2173 = vmax.xlane.f32.xlu2 %v2172_v46 }
0x1484   : > { %v2170_v47 = vpop.f32.mrf.mxu2 }
0x1491   : > { %2072 = vrot.lane.b32.xlu1 %v4920_v54, %s5412_s23 }
0x1498   : > { %2013 = vrot.lane.b32.xlu2 %v4920_v54, %s5409_s9 }
0x14a0   : > { %2184 = vrot.lane.b32.xlu2 %v4920_v54, %s5414_s22 }
0x14e3   : > { %v2062_v48 = vpop.xlane.xlu1 %2061 }
0x14e4   : > { %v2063_v26 = vsub.f32 %v2057_v33, %v2062_v48  ;;  %v3921_v33 = vld [vmem:[%s5349_s4 + $0xb8] sm:$0xff] }
0x14e5   : > { %v2118_v49 = vpop.xlane.xlu0 %2117  ;;  %2249 = vmatpush.bf16.msra.mxu1 %v3921_v33 }
0x14e6   : > { %v2119_v50 = vsub.f32 %v2113_v36, %v2118_v49  ;;  %v2064_v52 = vmul.f32 1.442695, %v2063_v26 }
0x14e8   : > { %v2120_v51 = vmul.f32 1.442695, %v2119_v50 }
0x14e9   : > { %2250 = vmatpush.bf16.msra.mxu1 %v3920_v34 }
0x14ea   : > { %4180 = vpow2.f32 %v2120_v51 }
0x14eb   : > { %v2009_v55 = vpop.xlane.xlu1 %2008  ;;  %4182 = vpow2.f32 %v2064_v52 }
0x14ec   : > { %4184 = vrcp.f32 %v2009_v55 }
0x14f0   : > { %v4181_v56 = vpop.eup %4180 }
0x14f1   : > { %v2122_v57 = vsel %vm400_vm2, %v4181_v56, 0.0  ;;  %v4183_v59 = vpop.eup %4182 }
0x14f2   : > { %2123 = vadd.xlane.f32.xlu0 %v2122_v57  ;;  %v4185_v61 = vpop.eup %4184  ;;  %v2066_v62 = vsel %vm400_vm2, %v4183_v59, 0.0  ;;  %v3931_v57 = vld [vmem:[%s5350_s5 + $0xb8] sm:$0xff] }
0x14f3   : > { %v2174_v17 = vpop.xlane.xlu2 %2173  ;;  %v2011_v63 = vmul.f32 %v4185_v61, %v4179_v14  ;;  %2390 = vmatpush.bf16.msra.mxu2 %v3931_v57  ;;  %v3929_v61 = vld [vmem:[%s5350_s5 + $0xa8] sm:$0xff] }
0x14f4   : > { %v2175_v58 = vsub.f32 %v2169_v45, %v2174_v17 }
0x14f5   : > { %v2012_v4 = vpack.c.bf16 %v2011_v63, %v2011_v63 }
0x14f6   : > { %v2176_v60 = vmul.f32 1.442695, %v2175_v58 }
0x14f8   : > { %4186 = vpow2.f32 %v2176_v60 }
0x14fa   : > { %2067 = vadd.xlane.f32.xlu0 %v2066_v62  ;;  %v3928_v62 = vld [vmem:[%s5350_s5 + $0xa0] sm:$0xff] }
0x14fb   : > { %v2014_v0 = vpop.permute.xlu2 %2013 }
0x14fc   : > { %v2019_v3 = vsel %vm430_vm4, %v2014_v0, 0 }
0x14fd   : > { %2028 = vmatpush.bf16.msra.mxu3 %v2019_v3  ;;  %v3927_v3 = vld [vmem:[%s5350_s5 + $0x98] sm:$0xff] }
0x14fe   : > { %v4187_v1 = vpop.eup %4186 }
0x14ff   : > { %v2178_v6 = vsel %vm400_vm2, %v4187_v1, 0.0 }
0x1500   : > { %3657 = vmatmul.msk.bf16.vlgmr.msra.gmra.mxu3 %vm400_vm2, %v2012_v4 }
0x1502   : > { %2179 = vadd.xlane.f32.xlu0 %v2178_v6  ;;  %v3926_v6 = vld [vmem:[%s5350_s5 + $0x90] sm:$0xff] }
0x1503   : > { %v2073_v21 = vpop.permute.xlu1 %2072  ;;  %v2185_v7 = vpop.permute.xlu2 %2184 }
0x1504   : > { %v2078_v8 = vsel %vm430_vm4, %v2073_v21, 0  ;;  %v2190_v9 = vsel %vm430_vm4, %v2185_v7, 0 }
0x1505   : > { %2087 = vmatpush.bf16.msra.mxu0 %v2078_v8  ;;  %v4059_v8 = vld [vmem:[%s5351_s6 + $0x1a] ss:$0 sm:$0xff] }
0x1509   : > { %2199 = vmatpush.bf16.msrb.mxu0 %v2190_v9 }
0x1516   : > { %2128 = vrot.lane.b32.xlu0 %v4920_v54, %s5413_s15 }
0x1565   : > { %v2124_v10 = vpop.xlane.xlu0 %2123 }
0x156d   : > { %v2068_v11 = vpop.xlane.xlu0 %2067 }
0x156e   : > { %4188 = vrcp.f32 %v2068_v11 }
0x1574   : > { %v4189_v42 = vpop.eup %4188 }
0x1575   : > { %v2070_v12 = vmul.f32 %v4189_v42, %v4183_v59  ;;  %v2180_v23 = vpop.xlane.xlu0 %2179  ;;  %v3930_v59 = vld [vmem:[%s5350_s5 + $0xb0] sm:$0xff] }
0x1576   : > { %4190 = vrcp.f32 %v2180_v23  ;;  %2391 = vmatpush.bf16.msra.mxu2 %v3930_v59  ;;  %v3925_v23 = vld [vmem:[%s5350_s5 + $0x88] sm:$0xff] }
0x1577   : > { %v2071_v22 = vpack.c.bf16 %v2070_v12, %v2070_v12  ;;  %4192 = vrcp.f32 %v2124_v10  ;;  %v4060_v10 = vld [vmem:[%s5351_s6 + $0x1b] ss:$0 sm:$0xff] }
0x1579   : > { %3659 = vmatmul.msk.bf16.vlgmr.msra.gmra.mxu0 %vm400_vm2, %v2071_v22 }
0x157a   : > { %2392 = vmatpush.bf16.msra.mxu2 %v3929_v61 }
0x157c   : > { %v4191_v13 = vpop.eup %4190 }
0x157d   : > { %v2182_v15 = vmul.f32 %v4191_v13, %v4187_v1  ;;  %v4193_v19 = vpop.eup %4192  ;;  %v3924_v13 = vld [vmem:[%s5350_s5 + $0x80] sm:$0xff] }
0x157e   : > { %v2126_v20 = vmul.f32 %v4193_v19, %v4181_v56  ;;  %v3923_v56 = vld [vmem:[%s5349_s4 + $0xc8] sm:$0xff]  ;;  %2393 = vmatpush.bf16.msra.mxu2 %v3928_v62 }
0x157f   : > { %v2183_v30 = vpack.c.bf16 %v2182_v15, %v2182_v15  ;;  %v4061_v15 = vld [vmem:[%s5351_s6 + $0x1c] ss:$0 sm:$0xff] }
0x1580   : > { %v2127_v53 = vpack.c.bf16 %v2126_v20, %v2126_v20 }
0x1582   : > { %2394 = vmatpush.bf16.msra.mxu2 %v3927_v3 }
0x1583   : > { %v2030_v18 = vpop.f32.mrf.mxu3 }
0x1586   : > { %2395 = vmatpush.bf16.msra.mxu2 %v3926_v6  ;;  %v4237_v6 = vld [vmem:[%s4746_s16] sm:$0xff] }
0x1588   : > { %v2129_v25 = vpop.permute.xlu0 %2128 }
0x1589   : > { %v2134_v54 = vsel %vm430_vm4, %v2129_v25, 0  ;;  %3663 = vmatmul.msk.bf16.vlgmr.msrb.gmra.mxu0 %vm400_vm2, %v2183_v30 }
0x158a   : > { %2143 = vmatpush.bf16.msrb.mxu3 %v2134_v54  ;;  %2396 = vmatpush.bf16.msra.mxu2 %v3925_v23  ;;  %v4062_v54 = vld [vmem:[%s5351_s6 + $0x1d] ss:$0 sm:$0xff] }
0x158b   : > { %v2032_v27 = vpop.f32.mrf.mxu3 }
0x158d   : > { %3661 = vmatmul.msk.bf16.vlgmr.msrb.gmra.mxu3 %vm400_vm2, %v2127_v53 }
0x158e   : > { %2314 = vmatpush.bf16.msra.mxu3 %v3923_v56  ;;  %2397 = vmatpush.bf16.msra.mxu2 %v3924_v13  ;;  %v4065_v56 = vld [vmem:[%s5351_s6 + $0x14] ss:$0 sm:$0xff] }
0x15f6   : > { %v2089_v28 = vpop.f32.mrf.mxu0 }
0x15f7   : > { %2206 = vrot.lane.b32.xlu1 %v2089_v28, %s5415_s20 }
0x15fe   : > { %v2091_v29 = vpop.f32.mrf.mxu0 }
0x1606   : > { %v2201_v41 = vpop.f32.mrf.mxu0 }
0x1607   : > { %2214 = vrot.lane.b32.xlu1 %v2201_v41, %s5418_s14 }
0x160e   : > { %v2203_v16 = vpop.f32.mrf.mxu0 }
0x1610   : > { %v2145_v31 = vpop.f32.mrf.mxu3 }
0x1611   : > { %2210 = vrot.lane.b32.xlu2 %v2145_v31, %s5417_s0 }
0x1618   : > { %v2147_v32 = vpop.f32.mrf.mxu3 }
0x1669   : > { %v2207_v36 = vpop.permute.xlu1 %2206 }
0x166a   : > { %v2217_v37 = vsel %vm379_vm1, %v2030_v18, %v2207_v36  ;;  %v3933_v36 = vld [vmem:[%s5349_s4 + $0x88] sm:$0xff] }
0x166b   : > { %v2211_v35 = vpop.permute.xlu2 %2210  ;;  %2461 = vmatpush.bf16.msra.mxu0 %v3933_v36 }
0x166c   : > { %v2218_v14 = vsel %vm681_vm5, %v2217_v37, %v2211_v35  ;;  %v3932_v37 = vld [vmem:[%s5349_s4 + $0x80] sm:$0xff] }
0x166f   : > { %2462 = vmatpush.bf16.msra.mxu0 %v3932_v37 }
0x1679   : > { %v2215_v38 = vpop.permute.xlu1 %2214 }
0x167a   : > { %v2219_v40 = vsel %vm684_vm6, %v2218_v14, %v2215_v38 }
0x167b   : > { %v2220_v43 = vpack.c.bf16 %v2219_v40, %v2219_v40 }
0x167d   : > { %3676 = vmatmul.msk.bf16.vlgmr.msra.gmra.mxu1 %vm349_vm0, %v2220_v43 }
0x16fa   : > { %v2252_v45 = vpop.f32.mrf.mxu1 }
0x16fb   : > { %v2253_v46 = vadd.f32 %v4058_v44, %v2252_v45 }
0x16fd   : > { %v2256_v47 = vadd.f32 %v2253_v46, %v4937_v5  ;;  %v3922_v5 = vld [vmem:[%s5349_s4 + $0xc0] sm:$0xff] }
0x16fe   : > { %2315 = vmatpush.bf16.msra.mxu3 %v3922_v5 }
0x16ff   : > { %v2259_v48 = vsel %vm349_vm0, %v2256_v47, 0.0 }
0x1700   : > { %2260 = vadd.xlane.f32.xlu2 %v2259_v48  ;;  %v4063_v48 = vld [vmem:[%s5351_s6 + $0x1e] ss:$0 sm:$0xff] }
0x1702   : > { %v2254_v49 = vpop.f32.mrf.mxu1 }
0x1773   : > { %v2261_v50 = vpop.xlane.xlu2 %2260 }
0x1774   : > { %v2262_v26 = vmul.f32 %v2261_v50, %v4542_v2  ;;  %v4064_v50 = vld [vmem:[%s5351_s6 + $0x1f] ss:$0 sm:$0xff] }
0x1776   : > { %v2263_v51 = vsub.f32 %v2256_v47, %v2262_v26 }
0x1778   : > { %v2264_v52 = vmul.f32 %v2263_v51, %v2263_v51 }
0x177a   : > { %v2265_v55 = vsel %vm349_vm0, %v2264_v52, 0.0 }
0x177b   : > { %2266 = vadd.xlane.f32.xlu0 %v2265_v55 }
0x17ee   : > { %v2267_v17 = vpop.xlane.xlu0 %2266 }
0x17ef   : > { %v2268_v58 = vmul.f32 %v2267_v17, %v4542_v2 }
0x17f1   : > { %v2269_v60 = vadd.f32 1e-05, %v2268_v58 }
0x17f3   : > { %4194 = vrsqrt.f32 %v2269_v60  ;;  %vm2276_vm11 = vweird.f32 %v2269_v60 }
0x17f9   : > { %v4195_v63 = vpop.eup %4194 }
0x17fa   : > { %v2271_v0 = vmul.f32 %v4195_v63, %v2269_v60  ;;  %vm2277_vm7 = vweird.f32 %v4195_v63 }
0x17fb   : > { %vm2278_vm12 = vmor %vm2276_vm11, %vm2277_vm7 }
0x17fc   : > { %v2272_v1 = vmul.f32 %v4195_v63, %v2271_v0 }
0x17fe   : > { %v2273_v4 = vmul.f32 0.5, %v2272_v1 }
0x1800   : > { %v2274_v21 = vsub.f32 1.5, %v2273_v4 }
0x1802   : > { %v2275_v7 = vmul.f32 %v4195_v63, %v2274_v21 }
0x1804   : > { %v2279_v9 = vsel %vm2278_vm12, %v4195_v63, %v2275_v7 }
0x1805   : > { %v2280_v11 = vmul.f32 %v2279_v9, %v2263_v51 }
0x1807   : > { %v2282_v42 = vmul.f32 %v4059_v8, %v2280_v11 }
0x1809   : > { %v2284_v12 = vadd.f32 %v4060_v10, %v2282_v42 }
0x180b   : > { %v2285_v22 = vpack.c.bf16 %v2284_v12, %v2284_v12 }
0x180d   : > { %3689 = vmatmul.msk.bf16.vlgmr.msra.gmra.mxu3 %vm349_vm0, %v2285_v22 }
0x1890   : > { %v2317_v18 = vpop.f32.mrf.mxu3 }
0x1891   : > { %v2318_v19 = vadd.f32 %v4061_v15, %v2317_v18 }
0x1893   : > { %v2321_v20 = vmax.f32 %v2318_v19, 0.0 }
0x1895   : > { %v2322_v30 = vpack.c.bf16 %v2321_v20, %v2321_v20 }
0x1897   : > { %2398 = vmatmul.bf16.vlgmr.msra.gmra.mxu2 %v2322_v30 }
0x1898   : > { %v2319_v25 = vpop.f32.mrf.mxu3 }
0x191a   : > { %v2399_v53 = vpop.f32.mrf.mxu2 }
0x191b   : > { %v2400_v27 = vadd.f32 %v4062_v54, %v2399_v53 }
0x191d   : > { %v2403_v28 = vadd.f32 %v2400_v27, %v2284_v12 }
0x191f   : > { %v2406_v29 = vsel %vm349_vm0, %v2403_v28, 0.0 }
0x1920   : > { %2407 = vadd.xlane.f32.xlu1 %v2406_v29  ;;  %v5107_v29 = vld [vmem:[%s5349_s4 + $0xd8] sm:$0xff] }
0x1922   : > { %v2401_v41 = vpop.f32.mrf.mxu2 }
0x1923   : > { %v5113_v41 = vld [vmem:[%s5349_s4 + $0xd0] sm:$0xff] }
0x1993   : > { %v2408_v16 = vpop.xlane.xlu1 %2407 }
0x1994   : > { %v2409_v31 = vmul.f32 %v2408_v16, %v4542_v2 }
0x1996   : > { %v2410_v32 = vsub.f32 %v2403_v28, %v2409_v31 }
0x1998   : > { %v2411_v33 = vmul.f32 %v2410_v32, %v2410_v32 }
0x199a   : > { %v2412_v34 = vsel %vm349_vm0, %v2411_v33, 0.0 }
0x199b   : > { %2413 = vadd.xlane.f32.xlu2 %v2412_v34 }
0x1a0e   : > { %v2414_v35 = vpop.xlane.xlu2 %2413 }
0x1a0f   : > { %v2415_v14 = vmul.f32 %v2414_v35, %v4542_v2 }
0x1a11   : > { %v2416_v38 = vadd.f32 1e-05, %v2415_v14 }
0x1a13   : > { %4196 = vrsqrt.f32 %v2416_v38  ;;  %vm2423_vm13 = vweird.f32 %v2416_v38 }
0x1a19   : > { %v4197_v40 = vpop.eup %4196 }
0x1a1a   : > { %v2418_v43 = vmul.f32 %v4197_v40, %v2416_v38  ;;  %vm2424_vm3 = vweird.f32 %v4197_v40 }
0x1a1b   : > { %vm2425_vm15 = vmor %vm2423_vm13, %vm2424_vm3 }
0x1a1c   : > { %v2419_v44 = vmul.f32 %v4197_v40, %v2418_v43 }
0x1a1e   : > { %v2420_v45 = vmul.f32 0.5, %v2419_v44 }
0x1a20   : > { %v2421_v46 = vsub.f32 1.5, %v2420_v45 }
0x1a22   : > { %v2422_v47 = vmul.f32 %v4197_v40, %v2421_v46 }
0x1a24   : > { %v2426_v49 = vsel %vm2425_vm15, %v4197_v40, %v2422_v47 }
0x1a25   : > { %v2427_v26 = vmul.f32 %v2426_v49, %v2410_v32 }
0x1a27   : > { %v2429_v51 = vmul.f32 %v4063_v48, %v2427_v26 }
0x1a29   : > { %v5064_v52 = vadd.f32 %v4064_v50, %v2429_v51 }
0x1a2b   : > { %v2432_v55 = vpack.c.bf16 %v5064_v52, %v5064_v52 }
0x1a2d   : > { %3750 = vmatmul.msk.bf16.vlgmr.msra.gmra.mxu0 %vm349_vm0, %v2432_v55 }
0x1aaa   : > { %v2464_v5 = vpop.f32.mrf.mxu0 }
0x1aab   : > { %v2465_v57 = vadd.f32 %v4065_v56, %v2464_v5 }
0x1aad   : > { %v2468_v17 = vpack.c.bf16 %v2465_v57, %v2465_v57 }
0x1aaf   : > { %v2470_v58 = vunpack.c.l.b16 %v2468_v17 }
0x1ab1   : > { %v5072_v59 = vpack.c.b16 %v2470_v58, %v2470_v58 }
0x1ab2   : > { %v2466_v60 = vpop.f32.mrf.mxu0 }
0x1ab3   : > { %2528 = vrot.lane.b32.xlu2 %v5072_v59, %s5408_s29  ;;  %2472 = vrot.lane.b32.xlu0 %v5072_v59, %s5419_s10 }
0x1abb   : > { %2584 = vrot.lane.b32.xlu0 %v5072_v59, %s5422_s17 }
0x1ac3   : > { %2526 = vrot.lane.b32.xlu0 %v5072_v59, %s5423_s1 }
0x1acb   : > { %2582 = vrot.lane.b32.xlu0 %v5072_v59, %s5407_s8 }
0x1b0d   : > { %v2529_v61 = vpop.permute.xlu2 %2528 }
0x1b0e   : > { %v2534_v62 = vsel %vm379_vm1, %v2529_v61, 0 }
0x1b0f   : > { %2543 = vmatpush.bf16.xpose.msrb.mxu0 %v2534_v62 }
0x1b25   : > { %v2473_v63 = vpop.permute.xlu0 %2472 }
0x1b26   : > { %v2478_v0 = vsel %vm379_vm1, %v2473_v63, 0 }
0x1b27   : > { %2487 = vmatpush.bf16.xpose.msrb.mxu1 %v2478_v0 }
0x1b2d   : > { %v2585_v3 = vpop.permute.xlu0 %2584 }
0x1b2e   : > { %3751 = vmatmul.msk.bf16.vlgmr.msrb.gmra.mxu1 %vm379_vm1, %v2468_v17  ;;  %v2590_v25 = vsel %vm379_vm1, %v2585_v3, 0 }
0x1b35   : > { %v2527_v1 = vpop.permute.xlu0 %2526 }
0x1b36   : > { %3753 = vmatmul.msk.bf16.vlgmr.msrb.gmra.mxu0 %vm379_vm1, %v2527_v1 }
0x1b3d   : > { %v2583_v15 = vpop.permute.xlu0 %2582 }
0x1bab   : > { %v2489_v4 = vpop.f32.mrf.mxu1 }
0x1bac   : > { %v2490_v21 = vadd.f32 %v4237_v6, %v2489_v4 }
0x1bae   : > { %v2493_v7 = vsel %vm379_vm1, %v2490_v21, -inf }
0x1baf   : > { %2494 = vmax.xlane.f32.xlu1 %v2493_v7 }
0x1bb3   : > { %v2491_v8 = vpop.f32.mrf.mxu1  ;;  %v2545_v9 = vpop.f32.mrf.mxu0 }
0x1bb4   : > { %v2546_v10 = vadd.f32 %v4237_v6, %v2545_v9 }
0x1bb6   : > { %v2549_v11 = vsel %vm379_vm1, %v2546_v10, -inf }
0x1bb7   : > { %2550 = vmax.xlane.f32.xlu0 %v2549_v11 }
0x1bbb   : > { %v2547_v42 = vpop.f32.mrf.mxu0 }
0x1bc8   : > { %2505 = vrot.lane.b32.xlu1 %v5072_v59, %s5409_s9 }
0x1bcb   : > { %2561 = vrot.lane.b32.xlu0 %v5072_v59, %s5412_s23 }
0x1bd0   : > { %2640 = vrot.lane.b32.xlu1 %v5072_v59, %s5410_s13 }
0x1c22   : > { %v2495_v12 = vpop.xlane.xlu1 %2494 }
0x1c23   : > { %v2496_v22 = vsub.f32 %v2490_v21, %v2495_v12 }
0x1c25   : > { %v2497_v23 = vmul.f32 1.442695, %v2496_v22 }
0x1c27   : > { %4198 = vpow2.f32 %v2497_v23 }
0x1c2a   : > { %v2551_v19 = vpop.xlane.xlu0 %2550 }
0x1c2b   : > { %v2552_v36 = vsub.f32 %v2546_v10, %v2551_v19 }
0x1c2d   : > { %v4199_v13 = vpop.eup %4198  ;;  %v2553_v37 = vmul.f32 1.442695, %v2552_v36  ;;  %v3934_v36 = vld [vmem:[%s5349_s4 + $0x90] sm:$0xff] }
0x1c2e   : > { %v2499_v18 = vsel %vm379_vm1, %v4199_v13, 0.0 }
0x1c2f   : > { %2500 = vadd.xlane.f32.xlu2 %v2499_v18 }
0x1c3a   : > { %v2506_v20 = vpop.permute.xlu1 %2505 }
0x1c3b   : > { %v2511_v30 = vsel %vm1654_vm14, %v2506_v20, 0 }
0x1c3c   : > { %2520 = vmatpush.bf16.msrb.mxu3 %v2511_v30 }
0x1c3d   : > { %v2562_v54 = vpop.permute.xlu0 %2561 }
0x1c3e   : > { %v2567_v53 = vsel %vm1654_vm14, %v2562_v54, 0 }
0x1c3f   : > { %2576 = vmatpush.bf16.msra.mxu1 %v2567_v53 }
0x1c40   : > { %2599 = vmatpush.bf16.xpose.msra.mxu3 %v2590_v25 }
0x1c42   : > { %v2641_v27 = vpop.permute.xlu1 %2640 }
0x1c43   : > { %v2646_v28 = vsel %vm379_vm1, %v2641_v27, 0 }
0x1c44   : > { %2655 = vmatpush.bf16.xpose.msra.mxu0 %v2646_v28 }
0x1c47   : > { %2638 = vrot.lane.b32.xlu2 %v5072_v59, %s5411_s18 }
0x1c4c   : > { %2817 = vmatpush.bf16.msrb.mxu0 %v5107_v29 }
0x1c50   : > { %2818 = vmatpush.bf16.msrb.mxu0 %v5113_v41 }
0x1ca2   : > { %v2501_v16 = vpop.xlane.xlu2 %2500 }
0x1ca3   : > { %4200 = vrcp.f32 %v2501_v16  ;;  %v3935_v16 = vld [vmem:[%s5349_s4 + $0x98] sm:$0xff] }
0x1ca4   : > { %4202 = vpow2.f32 %v2553_v37 }
0x1ca9   : > { %v4201_v31 = vpop.eup %4200 }
0x1caa   : > { %v2503_v32 = vmul.f32 %v4201_v31, %v4199_v13  ;;  %v2639_v33 = vpop.permute.xlu2 %2638  ;;  %v4203_v40 = vpop.eup %4202 }
0x1cab   : > { %3757 = vmatmul.msk.bf16.vlgmr.msra.gmra.mxu0 %vm379_vm1, %v2639_v33  ;;  %v2555_v45 = vsel %vm379_vm1, %v4203_v40, 0.0 }
0x1cac   : > { %v2504_v34 = vpack.c.bf16 %v2503_v32, %v2503_v32 }
0x1cae   : > { %3752 = vmatmul.msk.bf16.vlgmr.msrb.gmra.mxu3 %vm379_vm1, %v2504_v34 }
0x1caf   : > { %2738 = vmatpush.bf16.msrb.mxu3 %v3935_v16 }
0x1cb3   : > { %2739 = vmatpush.bf16.msrb.mxu3 %v3934_v36 }
0x1cbb   : > { %3785 = vmatmul.msk.bf16.vlgmr.msrb.gmra.mxu0 %vm349_vm0, %v4911_v39 }
0x1cbe   : > { %3755 = vmatmul.msk.bf16.vlgmr.msra.gmra.mxu3 %vm379_vm1, %v2583_v15  ;;  %v5143_v15 = vld [vmem:[%s5351_s6 + $0x20] ss:$0 sm:$0xff] }
0x1d28   : > { %v2657_v35 = vpop.f32.mrf.mxu0 }
0x1d29   : > { %v2658_v14 = vadd.f32 %v4237_v6, %v2657_v35 }
0x1d2b   : > { %v2661_v38 = vsel %vm379_vm1, %v2658_v14, -inf }
0x1d2c   : > { %2662 = vmax.xlane.f32.xlu2 %v2661_v38 }
0x1d30   : > { %v2659_v43 = vpop.f32.mrf.mxu0 }
0x1d31   : > { %v5122_v44 = vpop.f32.mrf.mxu3 }
0x1d34   : > { %2556 = vadd.xlane.f32.xlu2 %v2555_v45 }
0x1d38   : > { %v2820_v23 = vpop.f32.mrf.mxu0 }
0x1d39   : > { %v2524_v46 = vpop.f32.mrf.mxu3  ;;  %v2821_v19 = vadd.f32 %v5143_v15, %v2820_v23 }
0x1d3b   : > { %v2825_v25 = vpack.c.bf16 %v2821_v19, %v2821_v19 }
0x1d3d   : > { %v2829_v53 = vunpack.c.l.b16 %v2825_v25 }
0x1d40   : > { %v2822_v13 = vpop.f32.mrf.mxu0 }
0x1d41   : > { %v2601_v47 = vpop.f32.mrf.mxu3  ;;  %v2823_v18 = vadd.f32 %v5143_v15, %v2822_v13 }
0x1d42   : > { %v2602_v39 = vadd.f32 %v4237_v6, %v2601_v47 }
0x1d43   : > { %v2826_v20 = vpack.c.bf16 %v2823_v18, %v2823_v18 }
0x1d44   : > { %v2605_v48 = vsel %vm379_vm1, %v2602_v39, -inf }
0x1d45   : > { %2606 = vmax.xlane.f32.xlu1 %v2605_v48  ;;  %v2830_v54 = vunpack.c.l.b16 %v2826_v20 }
0x1d47   : > { %v5148_v27 = vpack.c.b16 %v2830_v54, %v2829_v53 }
0x1d49   : > { %v2603_v49 = vpop.f32.mrf.mxu3 }
0x1d9f   : > { %v2663_v50 = vpop.xlane.xlu2 %2662 }
0x1da0   : > { %v2664_v26 = vsub.f32 %v2658_v14, %v2663_v50 }
0x1da2   : > { %v2665_v51 = vmul.f32 1.442695, %v2664_v26 }
0x1da4   : > { %4204 = vpow2.f32 %v2665_v51 }
0x1da7   : > { %v2557_v55 = vpop.xlane.xlu2 %2556 }
0x1da8   : > { %4206 = vrcp.f32 %v2557_v55 }
0x1daa   : > { %v4205_v56 = vpop.eup %4204 }
0x1dab   : > { %v2667_v5 = vsel %vm379_vm1, %v4205_v56, 0.0 }
0x1dac   : > { %2668 = vadd.xlane.f32.xlu2 %v2667_v5 }
0x1dae   : > { %v4207_v57 = vpop.eup %4206 }
0x1daf   : > { %v2559_v17 = vmul.f32 %v4207_v57, %v4203_v40 }
0x1db1   : > { %v2560_v58 = vpack.c.bf16 %v2559_v17, %v2559_v17 }
0x1db3   : > { %3754 = vmatmul.msk.bf16.vlgmr.msra.gmra.mxu1 %vm379_vm1, %v2560_v58 }
0x1db8   : > { %v2607_v60 = vpop.xlane.xlu1 %2606 }
0x1db9   : > { %v2608_v61 = vsub.f32 %v2602_v39, %v2607_v60  ;;  %v4067_v39 = vld [vmem:[%s5351_s6 + $0x15] ss:$0 sm:$0xff] }
0x1dbb   : > { %v2609_v62 = vmul.f32 1.442695, %v2608_v61 }
0x1dbd   : > { %4208 = vpow2.f32 %v2609_v62 }
0x1dc3   : > { %v4209_v63 = vpop.eup %4208 }
0x1dc4   : > { %2673 = vrot.lane.b32.xlu2 %v5072_v59, %s5414_s22  ;;  %v2611_v0 = vsel %vm379_vm1, %v4209_v63, 0.0 }
0x1dc5   : > { %2612 = vadd.xlane.f32.xlu1 %v2611_v0 }
0x1dde   : > { %2617 = vrot.lane.b32.xlu1 %v5072_v59, %s5413_s15 }
0x1e1f   : > { %v2669_v3 = vpop.xlane.xlu2 %2668 }
0x1e20   : > { %4210 = vrcp.f32 %v2669_v3 }
0x1e26   : > { %v4211_v1 = vpop.eup %4210 }
0x1e27   : > { %v2671_v4 = vmul.f32 %v4211_v1, %v4205_v56  ;;  %v2674_v6 = vpop.permute.xlu2 %2673  ;;  %v4068_v1 = vld [vmem:[%s5351_s6 + $0x16] ss:$0 sm:$0xff] }
0x1e28   : > { %v2679_v21 = vsel %vm1654_vm14, %v2674_v6, 0  ;;  %v4069_v6 = vld [vmem:[%s5351_s6 + $0x17] ss:$0 sm:$0xff] }
0x1e29   : > { %v2672_v7 = vpack.c.bf16 %v2671_v4, %v2671_v4  ;;  %2688 = vmatpush.bf16.msrb.mxu1 %v2679_v21 }
0x1e2c   : > { %3758 = vmatmul.msk.bf16.vlgmr.msrb.gmra.mxu1 %vm379_vm1, %v2672_v7 }
0x1e30   : > { %v2578_v8 = vpop.f32.mrf.mxu1 }
0x1e31   : > { %2695 = vrot.lane.b32.xlu0 %v2578_v8, %s5415_s20 }
0x1e38   : > { %v2580_v9 = vpop.f32.mrf.mxu1  ;;  %v2613_v10 = vpop.xlane.xlu1 %2612 }
0x1e39   : > { %4212 = vrcp.f32 %v2613_v10 }
0x1e3f   : > { %v4213_v11 = vpop.eup %4212 }
0x1e40   : > { %v2615_v42 = vmul.f32 %v4213_v11, %v4209_v63 }
0x1e42   : > { %v2616_v22 = vpack.c.bf16 %v2615_v42, %v2615_v42 }
0x1e50   : > { %v2618_v59 = vpop.permute.xlu1 %2617 }
0x1e51   : > { %v2623_v12 = vsel %vm1654_vm14, %v2618_v59, 0 }
0x1e52   : > { %2632 = vmatpush.bf16.msrb.mxu2 %v2623_v12 }
0x1e55   : > { %3756 = vmatmul.msk.bf16.vlgmr.msrb.gmra.mxu2 %vm379_vm1, %v2616_v22 }
0x1e56   : > { %2803 = vmatpush.bf16.msra.mxu2 %v5107_v29 }
0x1e5a   : > { %2804 = vmatpush.bf16.msra.mxu2 %v5113_v41 }
0x1ea3   : > { %v2696_v38 = vpop.permute.xlu0 %2695 }
0x1ea4   : > { %v2706_v40 = vsel %vm379_vm1, %v5122_v44, %v2696_v38 }
0x1ea9   : > { %v2690_v30 = vpop.f32.mrf.mxu1 }
0x1eaa   : > { %2703 = vrot.lane.b32.xlu1 %v2690_v30, %s5418_s14 }
0x1eb1   : > { %v2692_v28 = vpop.f32.mrf.mxu1 }
0x1eb2   : > { %2832 = vrot.lane.b32.xlu1 %v5148_v27, %s5419_s10  ;;  %s3433_s10 = sshll.u32 %s306_s2, 3 }
0x1eba   : > { %2891 = vrot.lane.b32.xlu1 %v5148_v27, %s5408_s29 }
0x1ec2   : > { %2947 = vrot.lane.b32.xlu1 %v5148_v27, %s5422_s17 }
0x1ed8   : > { %v2634_v29 = vpop.f32.mrf.mxu2 }
0x1ed9   : > { %2699 = vrot.lane.b32.xlu0 %v2634_v29, %s5417_s0 }
0x1ee0   : > { %v2636_v41 = vpop.f32.mrf.mxu2 }
0x1f1c   : > { %v2704_v31 = vpop.permute.xlu1 %2703 }
0x1f24   : > { %v2833_v32 = vpop.permute.xlu1 %2832 }
0x1f25   : > { %v2838_v33 = vsel %vm379_vm1, %v2833_v32, 0 }
0x1f26   : > { %2847 = vmatpush.bf16.xpose.msra.mxu1 %v2838_v33 }
0x1f2c   : > { %v2892_v34 = vpop.permute.xlu1 %2891 }
0x1f2d   : > { %v2897_v37 = vsel %vm379_vm1, %v2892_v34, 0 }
0x1f2e   : > { %2906 = vmatpush.bf16.xpose.msrb.mxu2 %v2897_v37 }
0x1f34   : > { %v2948_v35 = vpop.permute.xlu1 %2947 }
0x1f35   : > { %v2953_v14 = vsel %vm379_vm1, %v2948_v35, 0 }
0x1f36   : > { %2962 = vmatpush.bf16.xpose.msrb.mxu1 %v2953_v14 }
0x1f4b   : > { %v2700_v43 = vpop.permute.xlu0 %2699 }
0x1f4c   : > { %v2707_v45 = vsel %vm681_vm5, %v2706_v40, %v2700_v43 }
0x1f4d   : > { %v2708_v46 = vsel %vm684_vm6, %v2707_v45, %v2704_v31 }
0x1f4e   : > { %v2709_v47 = vpack.c.bf16 %v2708_v46, %v2708_v46 }
0x1f50   : > { %3771 = vmatmul.msk.bf16.vlgmr.msrb.gmra.mxu3 %vm349_vm0, %v2709_v47 }
0x1fd3   : > { %v2741_v48 = vpop.f32.mrf.mxu3 }
0x1fd4   : > { %v2742_v49 = vadd.f32 %v4067_v39, %v2741_v48 }
0x1fd6   : > { %v2745_v50 = vadd.f32 %v2742_v49, %v5064_v52 }
0x1fd8   : > { %v2748_v26 = vsel %vm349_vm0, %v2745_v50, 0.0 }
0x1fd9   : > { %2749 = vadd.xlane.f32.xlu0 %v2748_v26 }
0x1fdb   : > { %v2743_v44 = vpop.f32.mrf.mxu3 }
0x204c   : > { %v2750_v51 = vpop.xlane.xlu0 %2749 }
0x204d   : > { %v2751_v55 = vmul.f32 %v2750_v51, %v4542_v2 }
0x204f   : > { %v2752_v56 = vsub.f32 %v2745_v50, %v2751_v55 }
0x2051   : > { %v2753_v5 = vmul.f32 %v2752_v56, %v2752_v56 }
0x2053   : > { %v2754_v57 = vsel %vm349_vm0, %v2753_v5, 0.0 }
0x2054   : > { %2755 = vadd.xlane.f32.xlu2 %v2754_v57 }
0x20c7   : > { %v2756_v17 = vpop.xlane.xlu2 %2755 }
0x20c8   : > { %v2757_v58 = vmul.f32 %v2756_v17, %v4542_v2 }
0x20ca   : > { %v2758_v60 = vadd.f32 1e-05, %v2757_v58 }
0x20cc   : > { %4214 = vrsqrt.f32 %v2758_v60  ;;  %vm2765_vm8 = vweird.f32 %v2758_v60 }
0x20d2   : > { %v4215_v61 = vpop.eup %4214 }
0x20d3   : > { %v2760_v62 = vmul.f32 %v4215_v61, %v2758_v60  ;;  %vm2766_vm14 = vweird.f32 %v4215_v61 }
0x20d4   : > { %vm2767_vm9 = vmor %vm2765_vm8, %vm2766_vm14 }
0x20d5   : > { %v2761_v52 = vmul.f32 %v4215_v61, %v2760_v62 }
0x20d7   : > { %v2762_v63 = vmul.f32 0.5, %v2761_v52 }
0x20d9   : > { %v2763_v0 = vsub.f32 1.5, %v2762_v63 }
0x20db   : > { %v2764_v3 = vmul.f32 %v4215_v61, %v2763_v0 }
0x20dd   : > { %v2768_v4 = vsel %vm2767_vm9, %v4215_v61, %v2764_v3 }
0x20de   : > { %v2769_v21 = vmul.f32 %v2768_v4, %v2752_v56 }
0x20e0   : > { %v2771_v7 = vmul.f32 %v4068_v1, %v2769_v21 }
0x20e2   : > { %v5185_v8 = vadd.f32 %v4069_v6, %v2771_v7 }
0x20e4   : > { %v2774_v9 = vpack.c.bf16 %v5185_v8, %v5185_v8 }
0x20e6   : > { %3784 = vmatmul.msk.bf16.vlgmr.msra.gmra.mxu2 %vm349_vm0, %v2774_v9 }
0x2169   : > { %v2806_v10 = vpop.f32.mrf.mxu2 }
0x216a   : > { %v2807_v11 = vadd.f32 %v5143_v15, %v2806_v10 }
0x216c   : > { %v2810_v42 = vpack.c.bf16 %v2807_v11, %v2807_v11 }
0x216e   : > { %v2887_v59 = vunpack.c.l.b16 %v2810_v42  ;;  %3786 = vmatmul.msk.bf16.vlgmr.msra.gmra.mxu1 %vm379_vm1, %v2810_v42 }
0x2170   : > { %v2888_v12 = vpack.c.b16 %v2887_v59, %v2887_v59 }
0x2171   : > { %v2808_v22 = vpop.f32.mrf.mxu2 }
0x2172   : > { %3001 = vrot.lane.b32.xlu2 %v2888_v12, %s5411_s18  ;;  %2945 = vrot.lane.b32.xlu0 %v2888_v12, %s5407_s8  ;;  %s308_s8 = scalar_lea.vmem [#allocation2], %s3433_s10  ;;  %s3322_s18 = scalar_lea.sflag [#allocation3], %s306_s2 }
0x2173   : > { %2889 = vrot.lane.b32.xlu1 %v2888_v12, %s5423_s1 }
0x217b   : > { %3003 = vrot.lane.b32.xlu1 %v5148_v27, %s5410_s13  ;;  %s3336_s13 = sshll.u32 %s3332_s7, 4  ;;  %s3337_s13 = int_to_ptr.hbm [resolvable:$true] %s3336_s13 }
0x217c   : > { %s4252_s28 = sshra.s32 %s3337_s13, 4  ;;  %s4253_s28 = int_to_ptr.hbm [resolvable:$true] %s4252_s28 }
0x217d   : > { %p4259_p0 = scmp.lt.s32.totalorder %s4253_s28, %s5424_s3 }
0x21cc   : > { %v3002_v54 = vpop.permute.xlu2 %3001 }
0x21e4   : > { %v2946_v23 = vpop.permute.xlu0 %2945 }
0x21e5   : > { %v2890_v13 = vpop.permute.xlu1 %2889  ;;  %3790 = vmatmul.msk.bf16.vlgmr.msrb.gmra.mxu1 %vm379_vm1, %v2946_v23 }
0x21e6   : > { %3788 = vmatmul.msk.bf16.vlgmr.msrb.gmra.mxu2 %vm379_vm1, %v2890_v13 }
0x21eb   : > { %v2849_v15 = vpop.f32.mrf.mxu1 }
0x21ec   : > { %v2850_v18 = vadd.f32 %v4952_v24, %v2849_v15 }
0x21ed   : > { %v3004_v19 = vpop.permute.xlu1 %3003 }
0x21ee   : > { %v3009_v20 = vsel %vm379_vm1, %v3004_v19, 0  ;;  %v2853_v30 = vsel %vm400_vm2, %v2850_v18, -inf }
0x21ef   : > { %3018 = vmatpush.bf16.xpose.msra.mxu2 %v3009_v20  ;;  %2854 = vmax.xlane.f32.xlu1 %v2853_v30 }
0x21f3   : > { %v2851_v25 = vpop.f32.mrf.mxu1 }
0x21f6   : > { %3792 = vmatmul.msk.bf16.vlgmr.msra.gmra.mxu2 %vm379_vm1, %v3002_v54 }
0x2262   : > { %v2964_v53 = vpop.f32.mrf.mxu1  ;;  %v2855_v28 = vpop.xlane.xlu1 %2854 }
0x2263   : > { %v2965_v29 = vadd.f32 %v4952_v24, %v2964_v53  ;;  %v2856_v41 = vsub.f32 %v2850_v18, %v2855_v28 }
0x2265   : > { %v2857_v16 = vmul.f32 1.442695, %v2856_v41  ;;  %v2968_v31 = vsel %vm400_vm2, %v2965_v29, -inf  ;;  %v3938_v41 = vld [vmem:[%s5349_s4 + $0xe0] sm:$0xff] }
0x2266   : > { %2969 = vmax.xlane.f32.xlu2 %v2968_v31 }
0x2267   : > { %4216 = vpow2.f32 %v2857_v16 }
0x2269   : > { %v2908_v32 = vpop.f32.mrf.mxu2 }
0x226a   : > { %v2909_v33 = vadd.f32 %v4952_v24, %v2908_v32  ;;  %v2966_v34 = vpop.f32.mrf.mxu1 }
0x226c   : > { %v2912_v36 = vsel %vm400_vm2, %v2909_v33, -inf }
0x226d   : > { %v4217_v37 = vpop.eup %4216  ;;  %2913 = vmax.xlane.f32.xlu0 %v2912_v36 }
0x226e   : > { %v2859_v35 = vsel %vm400_vm2, %v4217_v37, 0.0 }
0x226f   : > { %2860 = vadd.xlane.f32.xlu1 %v2859_v35  ;;  %v4070_v35 = vld [vmem:[%s5351_s6 + $0x21] ss:$0 sm:$0xff] }
0x2271   : > { %v2910_v14 = vpop.f32.mrf.mxu2 }
0x2279   : > { %v3020_v38 = vpop.f32.mrf.mxu2 }
0x227a   : > { %v3021_v40 = vadd.f32 %v4952_v24, %v3020_v38 }
0x227c   : > { %v3024_v43 = vsel %vm400_vm2, %v3021_v40, -inf }
0x227d   : > { %3025 = vmax.xlane.f32.xlu1 %v3024_v43 }
0x227e   : > { %2924 = vrot.lane.b32.xlu2 %v5148_v27, %s5412_s23  ;;  %s4254_s23 = scalar_lea.hbm %s4253_s28, 8 }
0x227f   : > { %p4255_p11 = scmp.ne.s32.totalorder %s4253_s28, %s4254_s23 }
0x2281   : > { %2865 = vrot.lane.b32.xlu0 %v5148_v27, %s5409_s9  ;;  %v3022_v45 = vpop.f32.mrf.mxu2  ;;  %s3334_s9 = sshll.u32 %s308_s8, 4  ;;  %p4256_p12 = pnand %p4255_p11, %p4395_p5  ;;  %s3335_s9 = int_to_ptr.vmem [resolvable:$true] %s3334_s9 }
0x2283   : > { %p4257_p13 = pneg %p4256_p12 }
0x2289   : > { %2980 = vrot.lane.b32.xlu0 %v5148_v27, %s5413_s15 }
0x22d9   : > { %v2970_v46 = vpop.xlane.xlu2 %2969 }
0x22da   : > { %v2971_v47 = vsub.f32 %v2965_v29, %v2970_v46  ;;  %v3939_v29 = vld [vmem:[%s5349_s4 + $0xe8] sm:$0xff] }
0x22db   : > { %3101 = vmatpush.bf16.msra.mxu1 %v3939_v29  ;;  %v3951_v29 = vld [vmem:[%s5349_s4 + $0x108] sm:$0xff] }
0x22dc   : > { %v2972_v39 = vmul.f32 1.442695, %v2971_v47 }
0x22de   : > { %4218 = vpow2.f32 %v2972_v39 }
0x22df   : > { %3102 = vmatpush.bf16.msra.mxu1 %v3938_v41  ;;  %v3950_v41 = vld [vmem:[%s5349_s4 + $0x100] sm:$0xff] }
0x22e0   : > { %v2914_v48 = vpop.xlane.xlu0 %2913 }
0x22e1   : > { %v2915_v49 = vsub.f32 %v2909_v33, %v2914_v48  ;;  %v2925_v24 = vpop.permute.xlu2 %2924 }
0x22e2   : > { %v2930_v50 = vsel %vm430_vm4, %v2925_v24, 0  ;;  %v2861_v55 = vpop.xlane.xlu1 %2860  ;;  %v3941_v24 = vld [vmem:[%s5349_s4 + $0xf8] sm:$0xff] }
0x22e3   : > { %v2916_v26 = vmul.f32 1.442695, %v2915_v49  ;;  %2939 = vmatpush.bf16.msra.mxu0 %v2930_v50  ;;  %v3949_v50 = vld [vmem:[%s5350_s5 + $0xf8] sm:$0xff] }
0x22e4   : > { %v4219_v44 = vpop.eup %4218  ;;  %3242 = vmatpush.bf16.msrb.mxu2 %v3949_v50 }
0x22e5   : > { %4220 = vpow2.f32 %v2916_v26  ;;  %v2974_v51 = vsel %vm400_vm2, %v4219_v44, 0.0 }
0x22e6   : > { %2975 = vadd.xlane.f32.xlu1 %v2974_v51  ;;  %4222 = vrcp.f32 %v2861_v55  ;;  %v3948_v51 = vld [vmem:[%s5350_s5 + $0xf0] sm:$0xff] }
0x22e8   : > { %3243 = vmatpush.bf16.msrb.mxu2 %v3948_v51 }
0x22eb   : > { %v4221_v56 = vpop.eup %4220 }
0x22ec   : > { %v2918_v5 = vsel %vm400_vm2, %v4221_v56, 0.0  ;;  %v4223_v57 = vpop.eup %4222 }
0x22ed   : > { %v2863_v60 = vmul.f32 %v4223_v57, %v4217_v37 }
0x22ee   : > { %2919 = vadd.xlane.f32.xlu1 %v2918_v5  ;;  %v3946_v5 = vld [vmem:[%s5350_s5 + $0xe0] sm:$0xff] }
0x22ef   : > { %v2864_v63 = vpack.c.bf16 %v2863_v60, %v2863_v60 }
0x22f0   : > { %v3026_v17 = vpop.xlane.xlu1 %3025 }
0x22f1   : > { %v3027_v58 = vsub.f32 %v3021_v40, %v3026_v17 }
0x22f3   : > { %v3028_v61 = vmul.f32 1.442695, %v3027_v58  ;;  %v2866_v62 = vpop.permute.xlu0 %2865  ;;  %v3945_v58 = vld [vmem:[%s5350_s5 + $0xd8] sm:$0xff] }
0x22f4   : > { %v2871_v52 = vsel %vm430_vm4, %v2866_v62, 0  ;;  %v3944_v62 = vld [vmem:[%s5350_s5 + $0xd0] sm:$0xff] }
0x22f5   : > { %4224 = vpow2.f32 %v3028_v61  ;;  %2880 = vmatpush.bf16.msra.mxu3 %v2871_v52 }
0x22f8   : > { %3787 = vmatmul.msk.bf16.vlgmr.msra.gmra.mxu3 %vm400_vm2, %v2864_v63 }
0x22fb   : > { %v4225_v0 = vpop.eup %4224  ;;  %v2981_v3 = vpop.permute.xlu0 %2980 }
0x22fc   : > { %v2986_v1 = vsel %vm430_vm4, %v2981_v3, 0  ;;  %v3030_v4 = vsel %vm400_vm2, %v4225_v0, 0.0 }
0x22fd   : > { %2995 = vmatpush.bf16.msrb.mxu3 %v2986_v1  ;;  %3031 = vadd.xlane.f32.xlu1 %v3030_v4  ;;  %v4072_v1 = vld [vmem:[%s5351_s6 + $0x23] ss:$0 sm:$0xff] }
0x2301   : > { %3166 = vmatpush.bf16.msra.mxu3 %v3941_v24 }
0x2316   : > { %3036 = vrot.lane.b32.xlu1 %v5148_v27, %s5414_s22 }
0x2359   : > { %v2976_v6 = vpop.xlane.xlu1 %2975 }
0x235a   : > { %4226 = vrcp.f32 %v2976_v6 }
0x2360   : > { %v4227_v21 = vpop.eup %4226 }
0x2361   : > { %v2978_v7 = vmul.f32 %v4227_v21, %v4219_v44  ;;  %v2920_v9 = vpop.xlane.xlu1 %2919 }
0x2362   : > { %4228 = vrcp.f32 %v2920_v9  ;;  %v3943_v9 = vld [vmem:[%s5350_s5 + $0xc8] sm:$0xff] }
0x2363   : > { %v2979_v10 = vpack.c.bf16 %v2978_v7, %v2978_v7 }
0x2365   : > { %3791 = vmatmul.msk.bf16.vlgmr.msrb.gmra.mxu3 %vm400_vm2, %v2979_v10  ;;  %v3942_v10 = vld [vmem:[%s5350_s5 + $0xc0] sm:$0xff] }
0x2368   : > { %v4229_v11 = vpop.eup %4228 }
0x2369   : > { %v2922_v42 = vmul.f32 %v4229_v11, %v4221_v56  ;;  %v3947_v56 = vld [vmem:[%s5350_s5 + $0xe8] sm:$0xff]  ;;  %v4073_v11 = vld [vmem:[%s5351_s6 + $0x24] ss:$0 sm:$0xff] }
0x236a   : > { %3244 = vmatpush.bf16.msrb.mxu2 %v3947_v56 }
0x236b   : > { %v2923_v59 = vpack.c.bf16 %v2922_v42, %v2922_v42 }
0x236d   : > { %3789 = vmatmul.msk.bf16.vlgmr.msra.gmra.mxu0 %vm400_vm2, %v2923_v59 }
0x236e   : > { %3245 = vmatpush.bf16.msrb.mxu2 %v3946_v5 }
0x2370   : > { %v3032_v12 = vpop.xlane.xlu1 %3031 }
0x2371   : > { %4230 = vrcp.f32 %v3032_v12 }
0x2372   : > { %3246 = vmatpush.bf16.msrb.mxu2 %v3945_v58 }
0x2376   : > { %3247 = vmatpush.bf16.msrb.mxu2 %v3944_v62 }
0x2377   : > { %v4231_v13 = vpop.eup %4230 }
0x2378   : > { %v3034_v27 = vmul.f32 %v4231_v13, %v4225_v0  ;;  %v4071_v0 = vld [vmem:[%s5351_s6 + $0x22] ss:$0 sm:$0xff]  ;;  %v4074_v13 = vld [vmem:[%s5351_s6 + $0x25] ss:$0 sm:$0xff] }
0x237a   : > { %v3035_v19 = vpack.c.bf16 %v3034_v27, %v3034_v27  ;;  %3248 = vmatpush.bf16.msrb.mxu2 %v3943_v9 }
0x237b   : > { %v2882_v22 = vpop.f32.mrf.mxu3 }
0x237e   : > { %3249 = vmatpush.bf16.msrb.mxu2 %v3942_v10 }
0x2383   : > { %v2884_v23 = vpop.f32.mrf.mxu3 }
0x2388   : > { %v3037_v15 = vpop.permute.xlu1 %3036 }
0x2389   : > { %v3042_v18 = vsel %vm430_vm4, %v3037_v15, 0 }
0x238a   : > { %3051 = vmatpush.bf16.msrb.mxu0 %v3042_v18 }
0x238d   : > { %3793 = vmatmul.msk.bf16.vlgmr.msrb.gmra.mxu0 %vm400_vm2, %v3035_v19 }
0x238e   : > { %3313 = vmatpush.bf16.msra.mxu0 %v3951_v29 }
0x2392   : > { %3314 = vmatpush.bf16.msra.mxu0 %v3950_v41 }
0x23e8   : > { %v2997_v20 = vpop.f32.mrf.mxu3 }
0x23e9   : > { %3062 = vrot.lane.b32.xlu2 %v2997_v20, %s5417_s0 }
0x23ea   : > { %v2941_v30 = vpop.f32.mrf.mxu0 }
0x23eb   : > { %3058 = vrot.lane.b32.xlu0 %v2941_v30, %s5415_s20  ;;  %s4258_s20 = scalar_lea.hbm %s5424_s3, 16 }
0x23ec   : > { %p4260_p1 = scmp.lt.s32.totalorder %s4258_s20, %s4254_s23 }
0x23ee   : > { %p4261_p2 = por %p4260_p1, %p4259_p0 }
0x23f0   : > { %v2999_v25 = vpop.f32.mrf.mxu3  ;;  %p4262_p3 = pnand %p4261_p2, %p4257_p13 }
0x23f2   : > { %v2943_v54 = vpop.f32.mrf.mxu0 }
0x240a   : > { %v3053_v53 = vpop.f32.mrf.mxu0 }
0x240b   : > { %3066 = vrot.lane.b32.xlu0 %v3053_v53, %s5418_s14 }
0x2412   : > { %v3055_v28 = vpop.f32.mrf.mxu0 }
0x2443   : > { %v3063_v32 = vpop.permute.xlu2 %3062 }
0x245d   : > { %v3059_v16 = vpop.permute.xlu0 %3058 }
0x245e   : > { %v3069_v31 = vsel %vm379_vm1, %v2882_v22, %v3059_v16 }
0x245f   : > { %v3070_v33 = vsel %vm681_vm5, %v3069_v31, %v3063_v32 }
0x247d   : > { %v3067_v34 = vpop.permute.xlu0 %3066 }
0x247e   : > { %v3071_v36 = vsel %vm684_vm6, %v3070_v33, %v3067_v34 }
0x247f   : > { %v3072_v37 = vpack.c.bf16 %v3071_v36, %v3071_v36 }
0x2481   : > { %3806 = vmatmul.msk.bf16.vlgmr.msra.gmra.mxu1 %vm349_vm0, %v3072_v37 }
0x24fe   : > { %v3104_v14 = vpop.f32.mrf.mxu1 }
0x24ff   : > { %v3105_v38 = vadd.f32 %v4070_v35, %v3104_v14 }
0x2501   : > { %v3108_v40 = vadd.f32 %v3105_v38, %v5185_v8  ;;  %v3940_v8 = vld [vmem:[%s5349_s4 + $0xf0] sm:$0xff]  ;;  %v4075_v38 = vld [vmem:[%s5351_s6 + $0x26] ss:$0 sm:$0xff] }
0x2502   : > { %3167 = vmatpush.bf16.msra.mxu3 %v3940_v8 }
0x2503   : > { %v3111_v43 = vsel %vm349_vm0, %v3108_v40, 0.0 }
0x2504   : > { %3112 = vadd.xlane.f32.xlu2 %v3111_v43 }
0x2506   : > { %v3106_v45 = vpop.f32.mrf.mxu1 }
0x2577   : > { %v3113_v46 = vpop.xlane.xlu2 %3112 }
0x2578   : > { %v3114_v47 = vmul.f32 %v3113_v46, %v4542_v2 }
0x257a   : > { %v3115_v39 = vsub.f32 %v3108_v40, %v3114_v47 }
0x257c   : > { %v3116_v48 = vmul.f32 %v3115_v39, %v3115_v39 }
0x257e   : > { %v3117_v49 = vsel %vm349_vm0, %v3116_v48, 0.0 }
0x257f   : > { %3118 = vadd.xlane.f32.xlu0 %v3117_v49 }
0x25f2   : > { %v3119_v26 = vpop.xlane.xlu0 %3118 }
0x25f3   : > { %v3120_v44 = vmul.f32 %v3119_v26, %v4542_v2 }
0x25f5   : > { %v3121_v55 = vadd.f32 1e-05, %v3120_v44 }
0x25f7   : > { %4232 = vrsqrt.f32 %v3121_v55  ;;  %vm3128_vm2 = vweird.f32 %v3121_v55 }
0x25fd   : > { %v4233_v57 = vpop.eup %4232 }
0x25fe   : > { %v3123_v17 = vmul.f32 %v4233_v57, %v3121_v55  ;;  %vm3129_vm1 = vweird.f32 %v4233_v57 }
0x25ff   : > { %vm3130_vm4 = vmor %vm3128_vm2, %vm3129_vm1 }
0x2600   : > { %v3124_v60 = vmul.f32 %v4233_v57, %v3123_v17 }
0x2602   : > { %v3125_v61 = vmul.f32 0.5, %v3124_v60 }
0x2604   : > { %v3126_v52 = vsub.f32 1.5, %v3125_v61 }
0x2606   : > { %v3127_v63 = vmul.f32 %v4233_v57, %v3126_v52 }
0x2608   : > { %v3131_v3 = vsel %vm3130_vm4, %v4233_v57, %v3127_v63 }
0x2609   : > { %v3132_v4 = vmul.f32 %v3131_v3, %v3115_v39  ;;  %v4077_v39 = vld [vmem:[%s5351_s6 + $0x28] ss:$0 sm:$0xff] }
0x260b   : > { %v3134_v6 = vmul.f32 %v4071_v0, %v3132_v4 }
0x260d   : > { %v3136_v21 = vadd.f32 %v4072_v1, %v3134_v6 }
0x260f   : > { %v3137_v7 = vpack.c.bf16 %v3136_v21, %v3136_v21 }
0x2611   : > { %3819 = vmatmul.msk.bf16.vlgmr.msra.gmra.mxu3 %vm349_vm0, %v3137_v7 }
0x2694   : > { %v3169_v42 = vpop.f32.mrf.mxu3 }
0x2695   : > { %v3170_v59 = vadd.f32 %v4073_v11, %v3169_v42 }
0x2697   : > { %v3173_v12 = vmax.f32 %v3170_v59, 0.0 }
0x2699   : > { %v3174_v22 = vpack.c.bf16 %v3173_v12, %v3173_v12 }
0x269b   : > { %3250 = vmatmul.bf16.vlgmr.msrb.gmra.mxu2 %v3174_v22 }
0x269c   : > { %v3171_v23 = vpop.f32.mrf.mxu3 }
0x271e   : > { %v3251_v27 = vpop.f32.mrf.mxu2 }
0x271f   : > { %v3252_v15 = vadd.f32 %v4074_v13, %v3251_v27 }
0x2721   : > { %v3255_v18 = vadd.f32 %v3252_v15, %v3136_v21 }
0x2723   : > { %v3258_v19 = vsel %vm349_vm0, %v3255_v18, 0.0 }
0x2724   : > { %3259 = vadd.xlane.f32.xlu1 %v3258_v19 }
0x2726   : > { %v3253_v20 = vpop.f32.mrf.mxu2 }
0x2797   : > { %v3260_v30 = vpop.xlane.xlu1 %3259 }
0x2798   : > { %v3261_v25 = vmul.f32 %v3260_v30, %v4542_v2 }
0x279a   : > { %v3262_v54 = vsub.f32 %v3255_v18, %v3261_v25 }
0x279c   : > { %v3263_v53 = vmul.f32 %v3262_v54, %v3262_v54 }
0x279e   : > { %v3264_v28 = vsel %vm349_vm0, %v3263_v53, 0.0 }
0x279f   : > { %3265 = vadd.xlane.f32.xlu2 %v3264_v28 }
0x2812   : > { %v3266_v16 = vpop.xlane.xlu2 %3265 }
0x2813   : > { %v3267_v31 = vmul.f32 %v3266_v16, %v4542_v2  ;;  %v4076_v2 = vld [vmem:[%s5351_s6 + $0x27] ss:$0 sm:$0xff] }
0x2815   : > { %v3268_v32 = vadd.f32 1e-05, %v3267_v31 }
0x2817   : > { %4234 = vrsqrt.f32 %v3268_v32  ;;  %vm3275_vm6 = vweird.f32 %v3268_v32 }
0x281d   : > { %v4235_v33 = vpop.eup %4234 }
0x281e   : > { %v3270_v34 = vmul.f32 %v4235_v33, %v3268_v32  ;;  %vm3276_vm5 = vweird.f32 %v4235_v33 }
0x281f   : > { %vm3277_vm10 = vmor %vm3275_vm6, %vm3276_vm5 }
0x2820   : > { %v3271_v36 = vmul.f32 %v4235_v33, %v3270_v34 }
0x2822   : > { %v3272_v37 = vmul.f32 0.5, %v3271_v36 }
0x2824   : > { %v3273_v35 = vsub.f32 1.5, %v3272_v37 }
0x2826   : > { %v3274_v14 = vmul.f32 %v4235_v33, %v3273_v35 }
0x2828   : > { %v3278_v40 = vsel %vm3277_vm10, %v4235_v33, %v3274_v14 }
0x2829   : > { %v3279_v43 = vmul.f32 %v3278_v40, %v3262_v54 }
0x282b   : > { %v3281_v45 = vmul.f32 %v4075_v38, %v3279_v43 }
0x282d   : > { %v3283_v46 = vadd.f32 %v4076_v2, %v3281_v45 }
0x282f   : > { %v3284_v47 = vpack.c.bf16 %v3283_v46, %v3283_v46 }
0x2831   : > { %3880 = vmatmul.msk.bf16.vlgmr.msra.gmra.mxu0 %vm349_vm0, %v3284_v47 }
0x28ae   : > { %v3316_v48 = vpop.f32.mrf.mxu0 }
0x28af   : > { %v3317_v49 = vadd.f32 %v4077_v39, %v3316_v48 }
0x28b1   : > { %3320 = vst [vmem:[%s308_s8] sm:$0xff] %v3317_v49 }
0x28b2   : > { %4265 = shalt.err (!%p4262_p3)
}
0x28b3   : > { %3952 = dma.vmem_to_hbm [thread:$0]  (%p4395_p5), %s3335_s9, 128, %s3337_s13, %s3322_s18  }
0x28b6   : > { %v3318_v24 = vpop.f32.mrf.mxu0 }
0x28b7 PF: > { %s5426_s1 = sld [smem:[#allocation7_spill]] }
0x28b8   : > { %s5427_s21 = sld [smem:[#allocation5_spill]] }
0x28bd   : > { %p3958_p4 = scmp.ge.s32.totalorder %s5426_s1, 2 }
0x28be   : > { %s3348_s12 = sand.u32 1, %s5427_s21  }
0x28bf   : > { %p3955_p7 = pnand %p3958_p4, %p4399_p6  ;;  %s3349_s19 = scalar_lea.sflag [#allocation3], %s3348_s12 }
0x28c1   : > { %p3956_p8 = pneg %p3955_p7 }
0x28c3   : > { %4283 = dma.done.wait (%p3956_p8), %s3349_s19, 128  }
0x28c4   : > { %4285 = vsyncadd (%p3956_p8), %s3349_s19, 4294967168  ;;  %s5429_s27 = sld [smem:[#allocation8_spill]]  ;;  %s5432_s24 = smov %s4292_s25 }
0x28c5   : > { %s5430_s26 = sld [smem:[#allocation6_spill]] }
0x28c6   : > { %s5431_s2 = sld [smem:[#allocation9_spill]] }
0x28ca   : > { %p17_p9 = scmp.ge.s32.totalorder %s5429_s27, 4  }
0x28cb   : > { %s5433_s25 = smov %s5430_s26 }
0x28cc   : > { %s5434_s26 = smov %s5431_s2  ;;  %19 = sbr.rel (!%p17_p9) target bundleno = 9 (0x9), region = 111 }
0x28d1   :  { %3355 = vsyncpa [#allocation3], 1 }
0x28d2   :  { %3357 = vsyncpa [#allocation3 + $0x1], 1 }

</bundles_post_ra>
